<compile_context>
chip_gen: v5e
topology: v5e:2x2
jax: 0.10.0
libtpu: 0.0.40
codegen_flags: <defaults>
</compile_context>

<pallas_src>
import math
import numpy as np
import jax
import jax.numpy as jnp
from jax.experimental import pallas as pl
from jax.experimental.pallas import tpu as pltpu

# ---- scaled-down shapes consistent with the module (real model: D=512, FF=2048) ----
EMBED_DIM = 128          # module default is 512
NUM_HEADS = 4
HEAD_DIM = EMBED_DIM // NUM_HEADS
FF_DIM = 256             # PyTorch TransformerEncoderLayer default is 2048
NUM_CLASSES = 50
CLASS_PAD = 128          # lane-dense classifier output width (sliced back to 50 outside)
NUM_LAYERS = 2
MAX_LEN = 64
LN_EPS = 1e-5


def _ln_f32(v, g, b):
    mu = jnp.mean(v, axis=-1, keepdims=True)
    var = jnp.mean((v - mu) ** 2, axis=-1, keepdims=True)
    return (v - mu) * jax.lax.rsqrt(var + LN_EPS) * g + b


# ----------------------------------------------------------------------------
# Single fused kernel: one grid step = BB batch rows' full forward pass.
# ----------------------------------------------------------------------------
def _fused_forward_kernel(x_ref, pos_ref,
                          wqkv_ref, bqkv_ref, wo_ref,
                          w1_ref, b1_ref, w2_ref,
                          vec_ref, wc_ref, bc_ref, o_ref):
    bf16, f32 = jnp.bfloat16, jnp.float32
    BB, S, D = x_ref.shape
    M = BB * S
    H, hd = NUM_HEADS, HEAD_DIM

    # positional-embedding add, then fold the BB rows into the matmul M dim
    # ((BB, S, D) -> (BB*S, D) is a free leading-dim merge: S is a multiple of 8).
    x3 = x_ref[...].astype(f32) + pos_ref[...][None].astype(f32)      # (BB, S, D)
    xm = x3.reshape(M, D)                                             # (M, D)

    for l in range(NUM_LAYERS):                                       # static unroll (L=2)
        vec_l = vec_ref[l]                                            # (6, D) f32
        bo, g1, be1, b2, g2, be2 = (vec_l[i:i + 1] for i in range(6))

        # --- fused full-width QKV projection: (M, D) @ (D, 3D) on the MXU -------
        # (1/sqrt(hd) already folded into the Q columns of wqkv / bqkv.)
        qkv = jnp.dot(xm.astype(bf16), wqkv_ref[l],
                      preferred_element_type=f32) + bqkv_ref[l]       # (M, 3D) f32
        qf = qkv[:, 0 * D:1 * D].reshape(BB, S, D)                    # lane-tile slices (free)
        kf = qkv[:, 1 * D:2 * D].reshape(BB, S, D)
        vf = qkv[:, 2 * D:3 * D].reshape(BB, S, D)

        # --- attention: per-head loop, single-batch-dim einsums over the BB rows -
        # TODO(synk): at S near MAX_LEN=64 switch to lax.fori_loop(unroll=True) over
        # heads to bound live ranges / avoid vreg spills (unnecessary at S=8).
        wo_l = wo_ref[l]                                              # (H, hd, D) bf16
        attn = jnp.zeros((M, D), f32)
        for h in range(H):
            lo, hi = h * hd, (h + 1) * hd
            qh = qf[:, :, lo:hi].astype(bf16)                         # (BB, S, hd)
            kh = kf[:, :, lo:hi].astype(bf16)
            vh = vf[:, :, lo:hi].astype(bf16)

            s = jnp.einsum('bqe,bke->bqk', qh, kh,
                           preferred_element_type=f32)                # (BB, S, S)
            s = s - jnp.max(s, axis=-1, keepdims=True)
            p = jnp.exp(s)
            p = p * pl.reciprocal(jnp.sum(p, axis=-1, keepdims=True), approx=True)

            ctx = jnp.einsum('bqk,bke->bqe', p.astype(bf16), vh,
                             preferred_element_type=f32)              # (BB, S, hd)
            # per-head out-projection contribution, pre-transposed weight (hd, D)
            attn = attn + jnp.dot(ctx.reshape(M, hd).astype(bf16), wo_l[h],
                                  preferred_element_type=f32)         # (M, D)
        attn = attn + bo

        # --- residual + LayerNorm1 (post-norm; dropouts are identity in eval) ----
        y = _ln_f32(xm + attn, g1, be1)

        # --- feed-forward (ReLU), pre-transposed weights: (M,D)@(D,F), (M,F)@(F,D)
        h1 = jnp.dot(y.astype(bf16), w1_ref[l],
                     preferred_element_type=f32) + b1_ref[l]          # (M, F)
        h1 = jnp.maximum(h1, 0.0)
        h2 = jnp.dot(h1.astype(bf16), w2_ref[l],
                     preferred_element_type=f32) + b2                 # (M, D)

        # --- residual + LayerNorm2 -----------------------------------------------
        xm = _ln_f32(y + h2, g2, be2)

    # --- mean-pool over the sequence + lane-dense classifier ---------------------
    pooled = jnp.mean(xm.reshape(BB, S, D), axis=1)                   # (BB, D)
    logits = jnp.dot(pooled.astype(bf16), wc_ref[...],
                     preferred_element_type=f32) + bc_ref[...]        # (BB, CLASS_PAD)
    o_ref[...] = logits[:, None, :].astype(o_ref.dtype)


def transformer_with_lora_forward(packed, x):
    B, S, D = x.shape
    assert D == EMBED_DIM and S <= MAX_LEN and S % 8 == 0

    # Row-block size: batch as many rows per grid step as sensible (BB*S <= ~256)
    # while keeping grid length >= 2 so both v7x TensorCores get work.
    bb = max(1, min(max(1, B // 2), max(1, 256 // S)))
    while B % bb:
        bb -= 1
    grid = (B // bb,)

    pos = packed['pos_embed'][0, :S, :]                               # (S, D) f32
    weights = (pos, packed['wqkv'], packed['bqkv'], packed['wo'],
               packed['w1'], packed['b1'], packed['w2'],
               packed['vec'], packed['wc'], packed['bc'])

    def rep_spec(a):                      # whole array, same block for every grid step
        nd = a.ndim
        return pl.BlockSpec(a.shape, lambda b, _nd=nd: (0,) * _nd)

    in_specs = ([pl.BlockSpec((bb, S, D), lambda b: (b, 0, 0))]
                + [rep_spec(a) for a in weights])

    m_tot = B * S
    flops = NUM_LAYERS * (2 * m_tot * D * (3 * D)          # fused QKV projection
                          + 4 * B * NUM_HEADS * S * S * HEAD_DIM  # scores + ctx
                          + 2 * m_tot * D * D              # out-projection
                          + 4 * m_tot * D * FF_DIM)        # FFN
    flops += 2 * B * D * CLASS_PAD
    transcendentals = NUM_LAYERS * B * NUM_HEADS * S * S + 2 * NUM_LAYERS * m_tot
    bytes_accessed = (int(x.size) * 4 + B * CLASS_PAD * 4
                      + sum(int(a.size) * a.dtype.itemsize for a in weights))

    out = pl.pallas_call(
        _fused_forward_kernel,
        out_shape=jax.ShapeDtypeStruct((B, 1, CLASS_PAD), jnp.float32),
        grid=grid,
        in_specs=in_specs,
        out_specs=pl.BlockSpec((bb, 1, CLASS_PAD), lambda b: (b, 0, 0)),
        compiler_params=pltpu.CompilerParams(
            dimension_semantics=("parallel",),
            vmem_limit_bytes=32 * 1024 * 1024),
        cost_estimate=pl.CostEstimate(flops=int(flops),
                                      transcendentals=int(transcendentals),
                                      bytes_accessed=int(bytes_accessed)),
    )(x, *weights)
    return out[:, 0, :NUM_CLASSES]


# ----------------------------------------------------------------------------
# Parameters: PyTorch-layout init + packing into kernel-ready layouts.
# ----------------------------------------------------------------------------
def init_params(key):
    D, F, C = EMBED_DIM, FF_DIM, NUM_CLASSES
    keys = iter(jax.random.split(key, 40))

    def nrm(shape, scale=0.02):
        return (scale * jax.random.normal(next(keys), shape)).astype(jnp.float32)

    params = {
        'pos_embed': jax.random.normal(next(keys), (1, MAX_LEN, D)).astype(jnp.float32),
        'layers': [],
    }
    for _ in range(NUM_LAYERS):
        params['layers'].append(dict(
            in_proj_w=nrm((3 * D, D)), in_proj_b=nrm((3 * D,)),
            out_proj_w=nrm((D, D)), out_proj_b=nrm((D,)),
            ln1_g=jnp.ones((D,), jnp.float32), ln1_b=jnp.zeros((D,), jnp.float32),
            lin1_w=nrm((F, D)), lin1_b=nrm((F,)),
            lin2_w=nrm((D, F)), lin2_b=nrm((D,)),
            ln2_g=jnp.ones((D,), jnp.float32), ln2_b=jnp.zeros((D,), jnp.float32)))
    params['cls_w'] = nrm((C, D))
    params['cls_b'] = nrm((C,))
    return params


def pack_params(params):
    """PyTorch layout -> fused/pre-transposed, layer-stacked, bf16-matmul-weight layout."""
    D, F, H, hd, C = EMBED_DIM, FF_DIM, NUM_HEADS, HEAD_DIM, NUM_CLASSES
    scale = 1.0 / math.sqrt(hd)
    bf16 = jnp.bfloat16

    wqkv, bqkv, wo, w1, b1, w2, vec = [], [], [], [], [], [], []
    for lp in params['layers']:
        w_in, b_in = lp['in_proj_w'], lp['in_proj_b']
        wq, wk, wv = w_in[:D], w_in[D:2 * D], w_in[2 * D:]
        bq, bk, bv = b_in[:D], b_in[D:2 * D], b_in[2 * D:]
        # fused QKV weight, contraction dim leading: (D_in, 3D_out); fold 1/sqrt(hd) into Q
        wqkv.append(jnp.concatenate([wq.T * scale, wk.T, wv.T], axis=1))       # (D, 3D)
        bqkv.append(jnp.concatenate([bq * scale, bk, bv]).reshape(1, 3 * D))   # (1, 3D)
        # out_proj (D_out, D_in): per-head slab -> (H, hd, D_out), contraction dim leading
        wo.append(jnp.transpose(lp['out_proj_w'].reshape(D, H, hd), (1, 2, 0)))
        # FFN weights pre-transposed to [K, N]
        w1.append(lp['lin1_w'].T)                                              # (D, F)
        b1.append(lp['lin1_b'].reshape(1, F))
        w2.append(lp['lin2_w'].T)                                              # (F, D)
        # coalesced small D-width f32 vectors: [out_proj_b, ln1_g, ln1_b, lin2_b, ln2_g, ln2_b]
        vec.append(jnp.stack([lp['out_proj_b'], lp['ln1_g'], lp['ln1_b'],
                              lp['lin2_b'], lp['ln2_g'], lp['ln2_b']], axis=0))  # (6, D)

    packed = {
        'pos_embed': params['pos_embed'],
        'wqkv': jnp.stack(wqkv).astype(bf16),          # (L, D, 3D)
        'bqkv': jnp.stack(bqkv).astype(jnp.float32),   # (L, 1, 3D)
        'wo': jnp.stack(wo).astype(bf16),              # (L, H, hd, D)
        'w1': jnp.stack(w1).astype(bf16),              # (L, D, F)
        'b1': jnp.stack(b1).astype(jnp.float32),       # (L, 1, F)
        'w2': jnp.stack(w2).astype(bf16),              # (L, F, D)
        'vec': jnp.stack(vec).astype(jnp.float32),     # (L, 6, D)
        'wc': jnp.zeros((D, CLASS_PAD), bf16).at[:, :C].set(
            params['cls_w'].T.astype(bf16)),           # (D, CLASS_PAD)
        'bc': jnp.zeros((1, CLASS_PAD), jnp.float32).at[0, :C].set(params['cls_b']),
    }
    return packed


# ----------------------------------------------------------------------------
# Pure-JAX reference (same bf16-operand / f32-accumulate mixed-precision policy).
# ----------------------------------------------------------------------------
def reference_forward(params, x):
    bf16, f32 = jnp.bfloat16, jnp.float32
    D, H, hd = EMBED_DIM, NUM_HEADS, HEAD_DIM

    def mm(a, w):  # a @ w.T with bf16 operands, f32 accumulation
        return jnp.einsum('...d,ed->...e', a.astype(bf16), w.astype(bf16),
                          preferred_element_type=f32)

    def ln(v, g, b):
        mu = v.mean(-1, keepdims=True)
        var = ((v - mu) ** 2).mean(-1, keepdims=True)
        return (v - mu) / jnp.sqrt(var + LN_EPS) * g + b

    x = x + params['pos_embed'][:, :x.shape[1], :]
    B, S, _ = x.shape
    for lp in params['layers']:
        qkv = mm(x, lp['in_proj_w']) + lp['in_proj_b']
        q, k, v = qkv[..., :D], qkv[..., D:2 * D], qkv[..., 2 * D:]

        def split(t):
            return t.reshape(B, S, H, hd).transpose(0, 2, 1, 3)

        qh, kh, vh = split(q), split(k), split(v)
        s = jnp.einsum('bhqe,bhke->bhqk', qh.astype(bf16), kh.astype(bf16),
                       preferred_element_type=f32) / math.sqrt(hd)
        p = jax.nn.softmax(s, axis=-1)
        o = jnp.einsum('bhqk,bhke->bhqe', p.astype(bf16), vh.astype(bf16),
                       preferred_element_type=f32)
        o = o.transpose(0, 2, 1, 3).reshape(B, S, D)
        attn = mm(o, lp['out_proj_w']) + lp['out_proj_b']
        y = ln(x + attn, lp['ln1_g'], lp['ln1_b'])
        h = jnp.maximum(mm(y, lp['lin1_w']) + lp['lin1_b'], 0.0)
        x = ln(y + mm(h, lp['lin2_w']) + lp['lin2_b'], lp['ln2_g'], lp['ln2_b'])
    pooled = x.mean(axis=1)
    return mm(pooled, params['cls_w']) + params['cls_b']


if __name__ == "__main__":
    key = jax.random.PRNGKey(0)
    pkey, xkey = jax.random.split(key)
    params = init_params(pkey)
    packed = pack_params(params)

    B, S = 4, 8                       # grid = 2 steps of 2 rows each (both v7x TCs busy)
    x = jax.random.normal(xkey, (B, S, EMBED_DIM), dtype=jnp.float32)

    out = transformer_with_lora_forward(packed, x)
    out = jax.block_until_ready(out)
    assert out.shape == (B, NUM_CLASSES)

    ref = reference_forward(params, x)
    np.testing.assert_allclose(np.asarray(out), np.asarray(ref), rtol=2e-3, atol=2e-3)
    print("KERNEL_OK")
</pallas_src>

<mosaic_0001>
module attributes {stable_mosaic.version = 11 : i64} {
  func.func @_fused_forward_kernel(%arg0: i32, %arg1: memref<2x8x128xf32, #tpu.memory_space<vmem>>, %arg2: memref<8x128xf32, #tpu.memory_space<vmem>>, %arg3: memref<2x128x384xbf16, #tpu.memory_space<vmem>>, %arg4: memref<2x1x384xf32, #tpu.memory_space<vmem>>, %arg5: memref<2x4x32x128xbf16, #tpu.memory_space<vmem>>, %arg6: memref<2x128x256xbf16, #tpu.memory_space<vmem>>, %arg7: memref<2x1x256xf32, #tpu.memory_space<vmem>>, %arg8: memref<2x256x128xbf16, #tpu.memory_space<vmem>>, %arg9: memref<2x6x128xf32, #tpu.memory_space<vmem>>, %arg10: memref<128x128xbf16, #tpu.memory_space<vmem>>, %arg11: memref<1x128xf32, #tpu.memory_space<vmem>>, %arg12: memref<2x1x128xf32, #tpu.memory_space<vmem>>) attributes {dimension_semantics = [#tpu.dimension_semantics<parallel>], iteration_bounds = array<i64: 2>, scalar_prefetch = 0 : i64, scratch_operands = 0 : i64, tpu.core_type = #tpu.core_type<tc>, window_params = [{transform_indices = @transform_0, window_bounds = array<i64: 2, 8, 128>}, {pipeline_mode = #tpu.pipeline_mode<synchronous>, transform_indices = @transform_1, window_bounds = array<i64: 8, 128>}, {pipeline_mode = #tpu.pipeline_mode<synchronous>, transform_indices = @transform_2, window_bounds = array<i64: 2, 128, 384>}, {pipeline_mode = #tpu.pipeline_mode<synchronous>, transform_indices = @transform_3, window_bounds = array<i64: 2, 1, 384>}, {pipeline_mode = #tpu.pipeline_mode<synchronous>, transform_indices = @transform_4, window_bounds = array<i64: 2, 4, 32, 128>}, {pipeline_mode = #tpu.pipeline_mode<synchronous>, transform_indices = @transform_5, window_bounds = array<i64: 2, 128, 256>}, {pipeline_mode = #tpu.pipeline_mode<synchronous>, transform_indices = @transform_6, window_bounds = array<i64: 2, 1, 256>}, {pipeline_mode = #tpu.pipeline_mode<synchronous>, transform_indices = @transform_7, window_bounds = array<i64: 2, 256, 128>}, {pipeline_mode = #tpu.pipeline_mode<synchronous>, transform_indices = @transform_8, window_bounds = array<i64: 2, 6, 128>}, {pipeline_mode = #tpu.pipeline_mode<synchronous>, transform_indices = @transform_9, window_bounds = array<i64: 128, 128>}, {pipeline_mode = #tpu.pipeline_mode<synchronous>, transform_indices = @transform_10, window_bounds = array<i64: 1, 128>}, {transform_indices = @transform_11, window_bounds = array<i64: 2, 1, 128>}]} {
    %c0 = arith.constant 0 : index
    %c0_0 = arith.constant 0 : index
    %c0_1 = arith.constant 0 : index
    %0 = vector.load %arg1[%c0, %c0_0, %c0_1] : memref<2x8x128xf32, #tpu.memory_space<vmem>>, vector<2x8x128xf32>
    %c0_2 = arith.constant 0 : index
    %c0_3 = arith.constant 0 : index
    %1 = vector.load %arg2[%c0_2, %c0_3] : memref<8x128xf32, #tpu.memory_space<vmem>>, vector<8x128xf32>
    %2 = vector.shape_cast %1 : vector<8x128xf32> to vector<1x8x128xf32>
    %3 = vector.broadcast %2 : vector<1x8x128xf32> to vector<2x8x128xf32>
    %4 = arith.addf %0, %3 : vector<2x8x128xf32>
    %5 = vector.shape_cast %4 : vector<2x8x128xf32> to vector<16x128xf32>
    %c0_4 = arith.constant 0 : index
    %c0_5 = arith.constant 0 : index
    %c0_6 = arith.constant 0 : index
    %6 = vector.load %arg9[%c0_4, %c0_5, %c0_6] : memref<2x6x128xf32, #tpu.memory_space<vmem>>, vector<1x6x128xf32>
    %7 = vector.shape_cast %6 : vector<1x6x128xf32> to vector<6x128xf32>
    %8 = vector.extract_strided_slice %7 {offsets = [0, 0], sizes = [1, 128], strides = [1, 1]} : vector<6x128xf32> to vector<1x128xf32>
    %9 = vector.extract_strided_slice %7 {offsets = [1, 0], sizes = [1, 128], strides = [1, 1]} : vector<6x128xf32> to vector<1x128xf32>
    %10 = vector.extract_strided_slice %7 {offsets = [2, 0], sizes = [1, 128], strides = [1, 1]} : vector<6x128xf32> to vector<1x128xf32>
    %11 = vector.extract_strided_slice %7 {offsets = [3, 0], sizes = [1, 128], strides = [1, 1]} : vector<6x128xf32> to vector<1x128xf32>
    %12 = vector.extract_strided_slice %7 {offsets = [4, 0], sizes = [1, 128], strides = [1, 1]} : vector<6x128xf32> to vector<1x128xf32>
    %13 = vector.extract_strided_slice %7 {offsets = [5, 0], sizes = [1, 128], strides = [1, 1]} : vector<6x128xf32> to vector<1x128xf32>
    %14 = arith.truncf %5 : vector<16x128xf32> to vector<16x128xbf16>
    %c0_7 = arith.constant 0 : index
    %c0_8 = arith.constant 0 : index
    %c0_9 = arith.constant 0 : index
    %15 = vector.load %arg3[%c0_7, %c0_8, %c0_9] : memref<2x128x384xbf16, #tpu.memory_space<vmem>>, vector<1x128x384xbf16>
    %16 = vector.shape_cast %15 : vector<1x128x384xbf16> to vector<128x384xbf16>
    %cst = arith.constant dense<0.000000e+00> : vector<16x384xf32>
    %17 = tpu.matmul %14, %16, %cst {dimension_numbers = #tpu.dot_dimension_numbers<[1], [0], [0], [1], [0, 0, 1, 1], [], []>} : vector<16x128xbf16>, vector<128x384xbf16>, vector<16x384xf32> -> vector<16x384xf32>
    %c0_10 = arith.constant 0 : index
    %c0_11 = arith.constant 0 : index
    %c0_12 = arith.constant 0 : index
    %18 = vector.load %arg4[%c0_10, %c0_11, %c0_12] : memref<2x1x384xf32, #tpu.memory_space<vmem>>, vector<1x1x384xf32>
    %19 = vector.shape_cast %18 : vector<1x1x384xf32> to vector<1x384xf32>
    %20 = vector.broadcast %19 : vector<1x384xf32> to vector<16x384xf32>
    %21 = arith.addf %17, %20 : vector<16x384xf32>
    %22 = vector.extract_strided_slice %21 {offsets = [0, 0], sizes = [16, 128], strides = [1, 1]} : vector<16x384xf32> to vector<16x128xf32>
    %23 = vector.shape_cast %22 : vector<16x128xf32> to vector<2x8x128xf32>
    %24 = vector.extract_strided_slice %21 {offsets = [0, 128], sizes = [16, 128], strides = [1, 1]} : vector<16x384xf32> to vector<16x128xf32>
    %25 = vector.shape_cast %24 : vector<16x128xf32> to vector<2x8x128xf32>
    %26 = vector.extract_strided_slice %21 {offsets = [0, 256], sizes = [16, 128], strides = [1, 1]} : vector<16x384xf32> to vector<16x128xf32>
    %27 = vector.shape_cast %26 : vector<16x128xf32> to vector<2x8x128xf32>
    %c0_13 = arith.constant 0 : index
    %c0_14 = arith.constant 0 : index
    %c0_15 = arith.constant 0 : index
    %c0_16 = arith.constant 0 : index
    %28 = vector.load %arg5[%c0_13, %c0_14, %c0_15, %c0_16] : memref<2x4x32x128xbf16, #tpu.memory_space<vmem>>, vector<1x4x32x128xbf16>
    %29 = vector.shape_cast %28 : vector<1x4x32x128xbf16> to vector<4x32x128xbf16>
    %cst_17 = arith.constant 0.000000e+00 : f32
    %30 = vector.broadcast %cst_17 : f32 to vector<16x128xf32>
    %31 = vector.extract_strided_slice %23 {offsets = [0, 0, 0], sizes = [2, 8, 32], strides = [1, 1, 1]} : vector<2x8x128xf32> to vector<2x8x32xf32>
    %32 = arith.truncf %31 : vector<2x8x32xf32> to vector<2x8x32xbf16>
    %33 = vector.extract_strided_slice %25 {offsets = [0, 0, 0], sizes = [2, 8, 32], strides = [1, 1, 1]} : vector<2x8x128xf32> to vector<2x8x32xf32>
    %34 = arith.truncf %33 : vector<2x8x32xf32> to vector<2x8x32xbf16>
    %35 = vector.extract_strided_slice %27 {offsets = [0, 0, 0], sizes = [2, 8, 32], strides = [1, 1, 1]} : vector<2x8x128xf32> to vector<2x8x32xf32>
    %36 = arith.truncf %35 : vector<2x8x32xf32> to vector<2x8x32xbf16>
    "tpu.trace_start"() <{level = 10 : i32, message = "bqe,bke->bqk"}> : () -> ()
    %cst_18 = arith.constant dense<0.000000e+00> : vector<2x8x8xf32>
    %37 = tpu.matmul %32, %34, %cst_18 {dimension_numbers = #tpu.dot_dimension_numbers<[2], [2], [1], [1], [0, 0, 0, 1, 1, 1], [0], [0]>} : vector<2x8x32xbf16>, vector<2x8x32xbf16>, vector<2x8x8xf32> -> vector<2x8x8xf32>
    "tpu.trace_stop"() : () -> ()
    %cst_19 = arith.constant dense<0xFF800000> : vector<2x8xf32>
    %38 = vector.multi_reduction <maximumf>, %37, %cst_19 [2] : vector<2x8x8xf32> to vector<2x8xf32>
    %39 = vector.shape_cast %38 : vector<2x8xf32> to vector<2x8x1xf32>
    %40 = vector.broadcast %39 : vector<2x8x1xf32> to vector<2x8x8xf32>
    %41 = arith.subf %37, %40 : vector<2x8x8xf32>
    %42 = math.exp %41 : vector<2x8x8xf32>
    %cst_20 = arith.constant dense<0.000000e+00> : vector<2x8xf32>
    %43 = vector.multi_reduction <add>, %42, %cst_20 [2] : vector<2x8x8xf32> to vector<2x8xf32>
    %44 = vector.shape_cast %43 : vector<2x8xf32> to vector<2x8x1xf32>
    %45 = tpu.reciprocal %44 {approx = true} : vector<2x8x1xf32> -> vector<2x8x1xf32>
    %46 = vector.broadcast %45 : vector<2x8x1xf32> to vector<2x8x8xf32>
    %47 = arith.mulf %42, %46 : vector<2x8x8xf32>
    %48 = arith.truncf %47 : vector<2x8x8xf32> to vector<2x8x8xbf16>
    "tpu.trace_start"() <{level = 10 : i32, message = "bqk,bke->bqe"}> : () -> ()
    %cst_21 = arith.constant dense<0.000000e+00> : vector<2x8x32xf32>
    %49 = tpu.matmul %48, %36, %cst_21 {dimension_numbers = #tpu.dot_dimension_numbers<[2], [1], [1], [2], [0, 0, 0, 1, 1, 2], [0], [0]>} : vector<2x8x8xbf16>, vector<2x8x32xbf16>, vector<2x8x32xf32> -> vector<2x8x32xf32>
    "tpu.trace_stop"() : () -> ()
    %50 = vector.shape_cast %49 : vector<2x8x32xf32> to vector<16x32xf32>
    %51 = arith.truncf %50 : vector<16x32xf32> to vector<16x32xbf16>
    %52 = vector.extract_strided_slice %29 {offsets = [0, 0, 0], sizes = [1, 32, 128], strides = [1, 1, 1]} : vector<4x32x128xbf16> to vector<1x32x128xbf16>
    %53 = vector.shape_cast %52 : vector<1x32x128xbf16> to vector<32x128xbf16>
    %cst_22 = arith.constant dense<0.000000e+00> : vector<16x128xf32>
    %54 = tpu.matmul %51, %53, %cst_22 {dimension_numbers = #tpu.dot_dimension_numbers<[1], [0], [0], [1], [0, 0, 1, 1], [], []>} : vector<16x32xbf16>, vector<32x128xbf16>, vector<16x128xf32> -> vector<16x128xf32>
    %55 = arith.addf %30, %54 : vector<16x128xf32>
    %56 = vector.extract_strided_slice %23 {offsets = [0, 0, 32], sizes = [2, 8, 32], strides = [1, 1, 1]} : vector<2x8x128xf32> to vector<2x8x32xf32>
    %57 = arith.truncf %56 : vector<2x8x32xf32> to vector<2x8x32xbf16>
    %58 = vector.extract_strided_slice %25 {offsets = [0, 0, 32], sizes = [2, 8, 32], strides = [1, 1, 1]} : vector<2x8x128xf32> to vector<2x8x32xf32>
    %59 = arith.truncf %58 : vector<2x8x32xf32> to vector<2x8x32xbf16>
    %60 = vector.extract_strided_slice %27 {offsets = [0, 0, 32], sizes = [2, 8, 32], strides = [1, 1, 1]} : vector<2x8x128xf32> to vector<2x8x32xf32>
    %61 = arith.truncf %60 : vector<2x8x32xf32> to vector<2x8x32xbf16>
    "tpu.trace_start"() <{level = 10 : i32, message = "bqe,bke->bqk"}> : () -> ()
    %cst_23 = arith.constant dense<0.000000e+00> : vector<2x8x8xf32>
    %62 = tpu.matmul %57, %59, %cst_23 {dimension_numbers = #tpu.dot_dimension_numbers<[2], [2], [1], [1], [0, 0, 0, 1, 1, 1], [0], [0]>} : vector<2x8x32xbf16>, vector<2x8x32xbf16>, vector<2x8x8xf32> -> vector<2x8x8xf32>
    "tpu.trace_stop"() : () -> ()
    %cst_24 = arith.constant dense<0xFF800000> : vector<2x8xf32>
    %63 = vector.multi_reduction <maximumf>, %62, %cst_24 [2] : vector<2x8x8xf32> to vector<2x8xf32>
    %64 = vector.shape_cast %63 : vector<2x8xf32> to vector<2x8x1xf32>
    %65 = vector.broadcast %64 : vector<2x8x1xf32> to vector<2x8x8xf32>
    %66 = arith.subf %62, %65 : vector<2x8x8xf32>
    %67 = math.exp %66 : vector<2x8x8xf32>
    %cst_25 = arith.constant dense<0.000000e+00> : vector<2x8xf32>
    %68 = vector.multi_reduction <add>, %67, %cst_25 [2] : vector<2x8x8xf32> to vector<2x8xf32>
    %69 = vector.shape_cast %68 : vector<2x8xf32> to vector<2x8x1xf32>
    %70 = tpu.reciprocal %69 {approx = true} : vector<2x8x1xf32> -> vector<2x8x1xf32>
    %71 = vector.broadcast %70 : vector<2x8x1xf32> to vector<2x8x8xf32>
    %72 = arith.mulf %67, %71 : vector<2x8x8xf32>
    %73 = arith.truncf %72 : vector<2x8x8xf32> to vector<2x8x8xbf16>
    "tpu.trace_start"() <{level = 10 : i32, message = "bqk,bke->bqe"}> : () -> ()
    %cst_26 = arith.constant dense<0.000000e+00> : vector<2x8x32xf32>
    %74 = tpu.matmul %73, %61, %cst_26 {dimension_numbers = #tpu.dot_dimension_numbers<[2], [1], [1], [2], [0, 0, 0, 1, 1, 2], [0], [0]>} : vector<2x8x8xbf16>, vector<2x8x32xbf16>, vector<2x8x32xf32> -> vector<2x8x32xf32>
    "tpu.trace_stop"() : () -> ()
    %75 = vector.shape_cast %74 : vector<2x8x32xf32> to vector<16x32xf32>
    %76 = arith.truncf %75 : vector<16x32xf32> to vector<16x32xbf16>
    %77 = vector.extract_strided_slice %29 {offsets = [1, 0, 0], sizes = [1, 32, 128], strides = [1, 1, 1]} : vector<4x32x128xbf16> to vector<1x32x128xbf16>
    %78 = vector.shape_cast %77 : vector<1x32x128xbf16> to vector<32x128xbf16>
    %cst_27 = arith.constant dense<0.000000e+00> : vector<16x128xf32>
    %79 = tpu.matmul %76, %78, %cst_27 {dimension_numbers = #tpu.dot_dimension_numbers<[1], [0], [0], [1], [0, 0, 1, 1], [], []>} : vector<16x32xbf16>, vector<32x128xbf16>, vector<16x128xf32> -> vector<16x128xf32>
    %80 = arith.addf %55, %79 : vector<16x128xf32>
    %81 = vector.extract_strided_slice %23 {offsets = [0, 0, 64], sizes = [2, 8, 32], strides = [1, 1, 1]} : vector<2x8x128xf32> to vector<2x8x32xf32>
    %82 = arith.truncf %81 : vector<2x8x32xf32> to vector<2x8x32xbf16>
    %83 = vector.extract_strided_slice %25 {offsets = [0, 0, 64], sizes = [2, 8, 32], strides = [1, 1, 1]} : vector<2x8x128xf32> to vector<2x8x32xf32>
    %84 = arith.truncf %83 : vector<2x8x32xf32> to vector<2x8x32xbf16>
    %85 = vector.extract_strided_slice %27 {offsets = [0, 0, 64], sizes = [2, 8, 32], strides = [1, 1, 1]} : vector<2x8x128xf32> to vector<2x8x32xf32>
    %86 = arith.truncf %85 : vector<2x8x32xf32> to vector<2x8x32xbf16>
    "tpu.trace_start"() <{level = 10 : i32, message = "bqe,bke->bqk"}> : () -> ()
    %cst_28 = arith.constant dense<0.000000e+00> : vector<2x8x8xf32>
    %87 = tpu.matmul %82, %84, %cst_28 {dimension_numbers = #tpu.dot_dimension_numbers<[2], [2], [1], [1], [0, 0, 0, 1, 1, 1], [0], [0]>} : vector<2x8x32xbf16>, vector<2x8x32xbf16>, vector<2x8x8xf32> -> vector<2x8x8xf32>
    "tpu.trace_stop"() : () -> ()
    %cst_29 = arith.constant dense<0xFF800000> : vector<2x8xf32>
    %88 = vector.multi_reduction <maximumf>, %87, %cst_29 [2] : vector<2x8x8xf32> to vector<2x8xf32>
    %89 = vector.shape_cast %88 : vector<2x8xf32> to vector<2x8x1xf32>
    %90 = vector.broadcast %89 : vector<2x8x1xf32> to vector<2x8x8xf32>
    %91 = arith.subf %87, %90 : vector<2x8x8xf32>
    %92 = math.exp %91 : vector<2x8x8xf32>
    %cst_30 = arith.constant dense<0.000000e+00> : vector<2x8xf32>
    %93 = vector.multi_reduction <add>, %92, %cst_30 [2] : vector<2x8x8xf32> to vector<2x8xf32>
    %94 = vector.shape_cast %93 : vector<2x8xf32> to vector<2x8x1xf32>
    %95 = tpu.reciprocal %94 {approx = true} : vector<2x8x1xf32> -> vector<2x8x1xf32>
    %96 = vector.broadcast %95 : vector<2x8x1xf32> to vector<2x8x8xf32>
    %97 = arith.mulf %92, %96 : vector<2x8x8xf32>
    %98 = arith.truncf %97 : vector<2x8x8xf32> to vector<2x8x8xbf16>
    "tpu.trace_start"() <{level = 10 : i32, message = "bqk,bke->bqe"}> : () -> ()
    %cst_31 = arith.constant dense<0.000000e+00> : vector<2x8x32xf32>
    %99 = tpu.matmul %98, %86, %cst_31 {dimension_numbers = #tpu.dot_dimension_numbers<[2], [1], [1], [2], [0, 0, 0, 1, 1, 2], [0], [0]>} : vector<2x8x8xbf16>, vector<2x8x32xbf16>, vector<2x8x32xf32> -> vector<2x8x32xf32>
    "tpu.trace_stop"() : () -> ()
    %100 = vector.shape_cast %99 : vector<2x8x32xf32> to vector<16x32xf32>
    %101 = arith.truncf %100 : vector<16x32xf32> to vector<16x32xbf16>
    %102 = vector.extract_strided_slice %29 {offsets = [2, 0, 0], sizes = [1, 32, 128], strides = [1, 1, 1]} : vector<4x32x128xbf16> to vector<1x32x128xbf16>
    %103 = vector.shape_cast %102 : vector<1x32x128xbf16> to vector<32x128xbf16>
    %cst_32 = arith.constant dense<0.000000e+00> : vector<16x128xf32>
    %104 = tpu.matmul %101, %103, %cst_32 {dimension_numbers = #tpu.dot_dimension_numbers<[1], [0], [0], [1], [0, 0, 1, 1], [], []>} : vector<16x32xbf16>, vector<32x128xbf16>, vector<16x128xf32> -> vector<16x128xf32>
    %105 = arith.addf %80, %104 : vector<16x128xf32>
    %106 = vector.extract_strided_slice %23 {offsets = [0, 0, 96], sizes = [2, 8, 32], strides = [1, 1, 1]} : vector<2x8x128xf32> to vector<2x8x32xf32>
    %107 = arith.truncf %106 : vector<2x8x32xf32> to vector<2x8x32xbf16>
    %108 = vector.extract_strided_slice %25 {offsets = [0, 0, 96], sizes = [2, 8, 32], strides = [1, 1, 1]} : vector<2x8x128xf32> to vector<2x8x32xf32>
    %109 = arith.truncf %108 : vector<2x8x32xf32> to vector<2x8x32xbf16>
    %110 = vector.extract_strided_slice %27 {offsets = [0, 0, 96], sizes = [2, 8, 32], strides = [1, 1, 1]} : vector<2x8x128xf32> to vector<2x8x32xf32>
    %111 = arith.truncf %110 : vector<2x8x32xf32> to vector<2x8x32xbf16>
    "tpu.trace_start"() <{level = 10 : i32, message = "bqe,bke->bqk"}> : () -> ()
    %cst_33 = arith.constant dense<0.000000e+00> : vector<2x8x8xf32>
    %112 = tpu.matmul %107, %109, %cst_33 {dimension_numbers = #tpu.dot_dimension_numbers<[2], [2], [1], [1], [0, 0, 0, 1, 1, 1], [0], [0]>} : vector<2x8x32xbf16>, vector<2x8x32xbf16>, vector<2x8x8xf32> -> vector<2x8x8xf32>
    "tpu.trace_stop"() : () -> ()
    %cst_34 = arith.constant dense<0xFF800000> : vector<2x8xf32>
    %113 = vector.multi_reduction <maximumf>, %112, %cst_34 [2] : vector<2x8x8xf32> to vector<2x8xf32>
    %114 = vector.shape_cast %113 : vector<2x8xf32> to vector<2x8x1xf32>
    %115 = vector.broadcast %114 : vector<2x8x1xf32> to vector<2x8x8xf32>
    %116 = arith.subf %112, %115 : vector<2x8x8xf32>
    %117 = math.exp %116 : vector<2x8x8xf32>
    %cst_35 = arith.constant dense<0.000000e+00> : vector<2x8xf32>
    %118 = vector.multi_reduction <add>, %117, %cst_35 [2] : vector<2x8x8xf32> to vector<2x8xf32>
    %119 = vector.shape_cast %118 : vector<2x8xf32> to vector<2x8x1xf32>
    %120 = tpu.reciprocal %119 {approx = true} : vector<2x8x1xf32> -> vector<2x8x1xf32>
    %121 = vector.broadcast %120 : vector<2x8x1xf32> to vector<2x8x8xf32>
    %122 = arith.mulf %117, %121 : vector<2x8x8xf32>
    %123 = arith.truncf %122 : vector<2x8x8xf32> to vector<2x8x8xbf16>
    "tpu.trace_start"() <{level = 10 : i32, message = "bqk,bke->bqe"}> : () -> ()
    %cst_36 = arith.constant dense<0.000000e+00> : vector<2x8x32xf32>
    %124 = tpu.matmul %123, %111, %cst_36 {dimension_numbers = #tpu.dot_dimension_numbers<[2], [1], [1], [2], [0, 0, 0, 1, 1, 2], [0], [0]>} : vector<2x8x8xbf16>, vector<2x8x32xbf16>, vector<2x8x32xf32> -> vector<2x8x32xf32>
    "tpu.trace_stop"() : () -> ()
    %125 = vector.shape_cast %124 : vector<2x8x32xf32> to vector<16x32xf32>
    %126 = arith.truncf %125 : vector<16x32xf32> to vector<16x32xbf16>
    %127 = vector.extract_strided_slice %29 {offsets = [3, 0, 0], sizes = [1, 32, 128], strides = [1, 1, 1]} : vector<4x32x128xbf16> to vector<1x32x128xbf16>
    %128 = vector.shape_cast %127 : vector<1x32x128xbf16> to vector<32x128xbf16>
    %cst_37 = arith.constant dense<0.000000e+00> : vector<16x128xf32>
    %129 = tpu.matmul %126, %128, %cst_37 {dimension_numbers = #tpu.dot_dimension_numbers<[1], [0], [0], [1], [0, 0, 1, 1], [], []>} : vector<16x32xbf16>, vector<32x128xbf16>, vector<16x128xf32> -> vector<16x128xf32>
    %130 = arith.addf %105, %129 : vector<16x128xf32>
    %131 = vector.broadcast %8 : vector<1x128xf32> to vector<16x128xf32>
    %132 = arith.addf %130, %131 : vector<16x128xf32>
    %133 = arith.addf %5, %132 : vector<16x128xf32>
    %cst_38 = arith.constant dense<0.000000e+00> : vector<16xf32>
    %134 = vector.multi_reduction <add>, %133, %cst_38 [1] : vector<16x128xf32> to vector<16xf32>
    %135 = vector.shape_cast %134 : vector<16xf32> to vector<16x1xf32>
    %cst_39 = arith.constant 1.280000e+02 : f32
    %136 = vector.broadcast %cst_39 : f32 to vector<16x1xf32>
    %137 = arith.divf %135, %136 : vector<16x1xf32>
    %138 = vector.broadcast %137 : vector<16x1xf32> to vector<16x128xf32>
    %139 = arith.subf %133, %138 : vector<16x128xf32>
    %140 = arith.mulf %139, %139 : vector<16x128xf32>
    %cst_40 = arith.constant dense<0.000000e+00> : vector<16xf32>
    %141 = vector.multi_reduction <add>, %140, %cst_40 [1] : vector<16x128xf32> to vector<16xf32>
    %142 = vector.shape_cast %141 : vector<16xf32> to vector<16x1xf32>
    %cst_41 = arith.constant 1.280000e+02 : f32
    %143 = vector.broadcast %cst_41 : f32 to vector<16x1xf32>
    %144 = arith.divf %142, %143 : vector<16x1xf32>
    %145 = vector.broadcast %137 : vector<16x1xf32> to vector<16x128xf32>
    %146 = arith.subf %133, %145 : vector<16x128xf32>
    %cst_42 = arith.constant 9.99999974E-6 : f32
    %147 = vector.broadcast %cst_42 : f32 to vector<16x1xf32>
    %148 = arith.addf %144, %147 : vector<16x1xf32>
    %149 = math.rsqrt %148 : vector<16x1xf32>
    %150 = vector.broadcast %149 : vector<16x1xf32> to vector<16x128xf32>
    %151 = arith.mulf %146, %150 : vector<16x128xf32>
    %152 = vector.broadcast %9 : vector<1x128xf32> to vector<16x128xf32>
    %153 = arith.mulf %151, %152 : vector<16x128xf32>
    %154 = vector.broadcast %10 : vector<1x128xf32> to vector<16x128xf32>
    %155 = arith.addf %153, %154 : vector<16x128xf32>
    %156 = arith.truncf %155 : vector<16x128xf32> to vector<16x128xbf16>
    %c0_43 = arith.constant 0 : index
    %c0_44 = arith.constant 0 : index
    %c0_45 = arith.constant 0 : index
    %157 = vector.load %arg6[%c0_43, %c0_44, %c0_45] : memref<2x128x256xbf16, #tpu.memory_space<vmem>>, vector<1x128x256xbf16>
    %158 = vector.shape_cast %157 : vector<1x128x256xbf16> to vector<128x256xbf16>
    %cst_46 = arith.constant dense<0.000000e+00> : vector<16x256xf32>
    %159 = tpu.matmul %156, %158, %cst_46 {dimension_numbers = #tpu.dot_dimension_numbers<[1], [0], [0], [1], [0, 0, 1, 1], [], []>} : vector<16x128xbf16>, vector<128x256xbf16>, vector<16x256xf32> -> vector<16x256xf32>
    %c0_47 = arith.constant 0 : index
    %c0_48 = arith.constant 0 : index
    %c0_49 = arith.constant 0 : index
    %160 = vector.load %arg7[%c0_47, %c0_48, %c0_49] : memref<2x1x256xf32, #tpu.memory_space<vmem>>, vector<1x1x256xf32>
    %161 = vector.shape_cast %160 : vector<1x1x256xf32> to vector<1x256xf32>
    %162 = vector.broadcast %161 : vector<1x256xf32> to vector<16x256xf32>
    %163 = arith.addf %159, %162 : vector<16x256xf32>
    %cst_50 = arith.constant 0.000000e+00 : f32
    %164 = vector.broadcast %cst_50 : f32 to vector<16x256xf32>
    %165 = arith.maximumf %163, %164 : vector<16x256xf32>
    %166 = arith.truncf %165 : vector<16x256xf32> to vector<16x256xbf16>
    %c0_51 = arith.constant 0 : index
    %c0_52 = arith.constant 0 : index
    %c0_53 = arith.constant 0 : index
    %167 = vector.load %arg8[%c0_51, %c0_52, %c0_53] : memref<2x256x128xbf16, #tpu.memory_space<vmem>>, vector<1x256x128xbf16>
    %168 = vector.shape_cast %167 : vector<1x256x128xbf16> to vector<256x128xbf16>
    %cst_54 = arith.constant dense<0.000000e+00> : vector<16x128xf32>
    %169 = tpu.matmul %166, %168, %cst_54 {dimension_numbers = #tpu.dot_dimension_numbers<[1], [0], [0], [1], [0, 0, 1, 1], [], []>} : vector<16x256xbf16>, vector<256x128xbf16>, vector<16x128xf32> -> vector<16x128xf32>
    %170 = vector.broadcast %11 : vector<1x128xf32> to vector<16x128xf32>
    %171 = arith.addf %169, %170 : vector<16x128xf32>
    %172 = arith.addf %155, %171 : vector<16x128xf32>
    %cst_55 = arith.constant dense<0.000000e+00> : vector<16xf32>
    %173 = vector.multi_reduction <add>, %172, %cst_55 [1] : vector<16x128xf32> to vector<16xf32>
    %174 = vector.shape_cast %173 : vector<16xf32> to vector<16x1xf32>
    %cst_56 = arith.constant 1.280000e+02 : f32
    %175 = vector.broadcast %cst_56 : f32 to vector<16x1xf32>
    %176 = arith.divf %174, %175 : vector<16x1xf32>
    %177 = vector.broadcast %176 : vector<16x1xf32> to vector<16x128xf32>
    %178 = arith.subf %172, %177 : vector<16x128xf32>
    %179 = arith.mulf %178, %178 : vector<16x128xf32>
    %cst_57 = arith.constant dense<0.000000e+00> : vector<16xf32>
    %180 = vector.multi_reduction <add>, %179, %cst_57 [1] : vector<16x128xf32> to vector<16xf32>
    %181 = vector.shape_cast %180 : vector<16xf32> to vector<16x1xf32>
    %cst_58 = arith.constant 1.280000e+02 : f32
    %182 = vector.broadcast %cst_58 : f32 to vector<16x1xf32>
    %183 = arith.divf %181, %182 : vector<16x1xf32>
    %184 = vector.broadcast %176 : vector<16x1xf32> to vector<16x128xf32>
    %185 = arith.subf %172, %184 : vector<16x128xf32>
    %cst_59 = arith.constant 9.99999974E-6 : f32
    %186 = vector.broadcast %cst_59 : f32 to vector<16x1xf32>
    %187 = arith.addf %183, %186 : vector<16x1xf32>
    %188 = math.rsqrt %187 : vector<16x1xf32>
    %189 = vector.broadcast %188 : vector<16x1xf32> to vector<16x128xf32>
    %190 = arith.mulf %185, %189 : vector<16x128xf32>
    %191 = vector.broadcast %12 : vector<1x128xf32> to vector<16x128xf32>
    %192 = arith.mulf %190, %191 : vector<16x128xf32>
    %193 = vector.broadcast %13 : vector<1x128xf32> to vector<16x128xf32>
    %194 = arith.addf %192, %193 : vector<16x128xf32>
    %c1 = arith.constant 1 : index
    %c0_60 = arith.constant 0 : index
    %c0_61 = arith.constant 0 : index
    %195 = vector.load %arg9[%c1, %c0_60, %c0_61] : memref<2x6x128xf32, #tpu.memory_space<vmem>>, vector<1x6x128xf32>
    %196 = vector.shape_cast %195 : vector<1x6x128xf32> to vector<6x128xf32>
    %197 = vector.extract_strided_slice %196 {offsets = [0, 0], sizes = [1, 128], strides = [1, 1]} : vector<6x128xf32> to vector<1x128xf32>
    %198 = vector.extract_strided_slice %196 {offsets = [1, 0], sizes = [1, 128], strides = [1, 1]} : vector<6x128xf32> to vector<1x128xf32>
    %199 = vector.extract_strided_slice %196 {offsets = [2, 0], sizes = [1, 128], strides = [1, 1]} : vector<6x128xf32> to vector<1x128xf32>
    %200 = vector.extract_strided_slice %196 {offsets = [3, 0], sizes = [1, 128], strides = [1, 1]} : vector<6x128xf32> to vector<1x128xf32>
    %201 = vector.extract_strided_slice %196 {offsets = [4, 0], sizes = [1, 128], strides = [1, 1]} : vector<6x128xf32> to vector<1x128xf32>
    %202 = vector.extract_strided_slice %196 {offsets = [5, 0], sizes = [1, 128], strides = [1, 1]} : vector<6x128xf32> to vector<1x128xf32>
    %203 = arith.truncf %194 : vector<16x128xf32> to vector<16x128xbf16>
    %c1_62 = arith.constant 1 : index
    %c0_63 = arith.constant 0 : index
    %c0_64 = arith.constant 0 : index
    %204 = vector.load %arg3[%c1_62, %c0_63, %c0_64] : memref<2x128x384xbf16, #tpu.memory_space<vmem>>, vector<1x128x384xbf16>
    %205 = vector.shape_cast %204 : vector<1x128x384xbf16> to vector<128x384xbf16>
    %cst_65 = arith.constant dense<0.000000e+00> : vector<16x384xf32>
    %206 = tpu.matmul %203, %205, %cst_65 {dimension_numbers = #tpu.dot_dimension_numbers<[1], [0], [0], [1], [0, 0, 1, 1], [], []>} : vector<16x128xbf16>, vector<128x384xbf16>, vector<16x384xf32> -> vector<16x384xf32>
    %c1_66 = arith.constant 1 : index
    %c0_67 = arith.constant 0 : index
    %c0_68 = arith.constant 0 : index
    %207 = vector.load %arg4[%c1_66, %c0_67, %c0_68] : memref<2x1x384xf32, #tpu.memory_space<vmem>>, vector<1x1x384xf32>
    %208 = vector.shape_cast %207 : vector<1x1x384xf32> to vector<1x384xf32>
    %209 = vector.broadcast %208 : vector<1x384xf32> to vector<16x384xf32>
    %210 = arith.addf %206, %209 : vector<16x384xf32>
    %211 = vector.extract_strided_slice %210 {offsets = [0, 0], sizes = [16, 128], strides = [1, 1]} : vector<16x384xf32> to vector<16x128xf32>
    %212 = vector.shape_cast %211 : vector<16x128xf32> to vector<2x8x128xf32>
    %213 = vector.extract_strided_slice %210 {offsets = [0, 128], sizes = [16, 128], strides = [1, 1]} : vector<16x384xf32> to vector<16x128xf32>
    %214 = vector.shape_cast %213 : vector<16x128xf32> to vector<2x8x128xf32>
    %215 = vector.extract_strided_slice %210 {offsets = [0, 256], sizes = [16, 128], strides = [1, 1]} : vector<16x384xf32> to vector<16x128xf32>
    %216 = vector.shape_cast %215 : vector<16x128xf32> to vector<2x8x128xf32>
    %c1_69 = arith.constant 1 : index
    %c0_70 = arith.constant 0 : index
    %c0_71 = arith.constant 0 : index
    %c0_72 = arith.constant 0 : index
    %217 = vector.load %arg5[%c1_69, %c0_70, %c0_71, %c0_72] : memref<2x4x32x128xbf16, #tpu.memory_space<vmem>>, vector<1x4x32x128xbf16>
    %218 = vector.shape_cast %217 : vector<1x4x32x128xbf16> to vector<4x32x128xbf16>
    %cst_73 = arith.constant 0.000000e+00 : f32
    %219 = vector.broadcast %cst_73 : f32 to vector<16x128xf32>
    %220 = vector.extract_strided_slice %212 {offsets = [0, 0, 0], sizes = [2, 8, 32], strides = [1, 1, 1]} : vector<2x8x128xf32> to vector<2x8x32xf32>
    %221 = arith.truncf %220 : vector<2x8x32xf32> to vector<2x8x32xbf16>
    %222 = vector.extract_strided_slice %214 {offsets = [0, 0, 0], sizes = [2, 8, 32], strides = [1, 1, 1]} : vector<2x8x128xf32> to vector<2x8x32xf32>
    %223 = arith.truncf %222 : vector<2x8x32xf32> to vector<2x8x32xbf16>
    %224 = vector.extract_strided_slice %216 {offsets = [0, 0, 0], sizes = [2, 8, 32], strides = [1, 1, 1]} : vector<2x8x128xf32> to vector<2x8x32xf32>
    %225 = arith.truncf %224 : vector<2x8x32xf32> to vector<2x8x32xbf16>
    "tpu.trace_start"() <{level = 10 : i32, message = "bqe,bke->bqk"}> : () -> ()
    %cst_74 = arith.constant dense<0.000000e+00> : vector<2x8x8xf32>
    %226 = tpu.matmul %221, %223, %cst_74 {dimension_numbers = #tpu.dot_dimension_numbers<[2], [2], [1], [1], [0, 0, 0, 1, 1, 1], [0], [0]>} : vector<2x8x32xbf16>, vector<2x8x32xbf16>, vector<2x8x8xf32> -> vector<2x8x8xf32>
    "tpu.trace_stop"() : () -> ()
    %cst_75 = arith.constant dense<0xFF800000> : vector<2x8xf32>
    %227 = vector.multi_reduction <maximumf>, %226, %cst_75 [2] : vector<2x8x8xf32> to vector<2x8xf32>
    %228 = vector.shape_cast %227 : vector<2x8xf32> to vector<2x8x1xf32>
    %229 = vector.broadcast %228 : vector<2x8x1xf32> to vector<2x8x8xf32>
    %230 = arith.subf %226, %229 : vector<2x8x8xf32>
    %231 = math.exp %230 : vector<2x8x8xf32>
    %cst_76 = arith.constant dense<0.000000e+00> : vector<2x8xf32>
    %232 = vector.multi_reduction <add>, %231, %cst_76 [2] : vector<2x8x8xf32> to vector<2x8xf32>
    %233 = vector.shape_cast %232 : vector<2x8xf32> to vector<2x8x1xf32>
    %234 = tpu.reciprocal %233 {approx = true} : vector<2x8x1xf32> -> vector<2x8x1xf32>
    %235 = vector.broadcast %234 : vector<2x8x1xf32> to vector<2x8x8xf32>
    %236 = arith.mulf %231, %235 : vector<2x8x8xf32>
    %237 = arith.truncf %236 : vector<2x8x8xf32> to vector<2x8x8xbf16>
    "tpu.trace_start"() <{level = 10 : i32, message = "bqk,bke->bqe"}> : () -> ()
    %cst_77 = arith.constant dense<0.000000e+00> : vector<2x8x32xf32>
    %238 = tpu.matmul %237, %225, %cst_77 {dimension_numbers = #tpu.dot_dimension_numbers<[2], [1], [1], [2], [0, 0, 0, 1, 1, 2], [0], [0]>} : vector<2x8x8xbf16>, vector<2x8x32xbf16>, vector<2x8x32xf32> -> vector<2x8x32xf32>
    "tpu.trace_stop"() : () -> ()
    %239 = vector.shape_cast %238 : vector<2x8x32xf32> to vector<16x32xf32>
    %240 = arith.truncf %239 : vector<16x32xf32> to vector<16x32xbf16>
    %241 = vector.extract_strided_slice %218 {offsets = [0, 0, 0], sizes = [1, 32, 128], strides = [1, 1, 1]} : vector<4x32x128xbf16> to vector<1x32x128xbf16>
    %242 = vector.shape_cast %241 : vector<1x32x128xbf16> to vector<32x128xbf16>
    %cst_78 = arith.constant dense<0.000000e+00> : vector<16x128xf32>
    %243 = tpu.matmul %240, %242, %cst_78 {dimension_numbers = #tpu.dot_dimension_numbers<[1], [0], [0], [1], [0, 0, 1, 1], [], []>} : vector<16x32xbf16>, vector<32x128xbf16>, vector<16x128xf32> -> vector<16x128xf32>
    %244 = arith.addf %219, %243 : vector<16x128xf32>
    %245 = vector.extract_strided_slice %212 {offsets = [0, 0, 32], sizes = [2, 8, 32], strides = [1, 1, 1]} : vector<2x8x128xf32> to vector<2x8x32xf32>
    %246 = arith.truncf %245 : vector<2x8x32xf32> to vector<2x8x32xbf16>
    %247 = vector.extract_strided_slice %214 {offsets = [0, 0, 32], sizes = [2, 8, 32], strides = [1, 1, 1]} : vector<2x8x128xf32> to vector<2x8x32xf32>
    %248 = arith.truncf %247 : vector<2x8x32xf32> to vector<2x8x32xbf16>
    %249 = vector.extract_strided_slice %216 {offsets = [0, 0, 32], sizes = [2, 8, 32], strides = [1, 1, 1]} : vector<2x8x128xf32> to vector<2x8x32xf32>
    %250 = arith.truncf %249 : vector<2x8x32xf32> to vector<2x8x32xbf16>
    "tpu.trace_start"() <{level = 10 : i32, message = "bqe,bke->bqk"}> : () -> ()
    %cst_79 = arith.constant dense<0.000000e+00> : vector<2x8x8xf32>
    %251 = tpu.matmul %246, %248, %cst_79 {dimension_numbers = #tpu.dot_dimension_numbers<[2], [2], [1], [1], [0, 0, 0, 1, 1, 1], [0], [0]>} : vector<2x8x32xbf16>, vector<2x8x32xbf16>, vector<2x8x8xf32> -> vector<2x8x8xf32>
    "tpu.trace_stop"() : () -> ()
    %cst_80 = arith.constant dense<0xFF800000> : vector<2x8xf32>
    %252 = vector.multi_reduction <maximumf>, %251, %cst_80 [2] : vector<2x8x8xf32> to vector<2x8xf32>
    %253 = vector.shape_cast %252 : vector<2x8xf32> to vector<2x8x1xf32>
    %254 = vector.broadcast %253 : vector<2x8x1xf32> to vector<2x8x8xf32>
    %255 = arith.subf %251, %254 : vector<2x8x8xf32>
    %256 = math.exp %255 : vector<2x8x8xf32>
    %cst_81 = arith.constant dense<0.000000e+00> : vector<2x8xf32>
    %257 = vector.multi_reduction <add>, %256, %cst_81 [2] : vector<2x8x8xf32> to vector<2x8xf32>
    %258 = vector.shape_cast %257 : vector<2x8xf32> to vector<2x8x1xf32>
    %259 = tpu.reciprocal %258 {approx = true} : vector<2x8x1xf32> -> vector<2x8x1xf32>
    %260 = vector.broadcast %259 : vector<2x8x1xf32> to vector<2x8x8xf32>
    %261 = arith.mulf %256, %260 : vector<2x8x8xf32>
    %262 = arith.truncf %261 : vector<2x8x8xf32> to vector<2x8x8xbf16>
    "tpu.trace_start"() <{level = 10 : i32, message = "bqk,bke->bqe"}> : () -> ()
    %cst_82 = arith.constant dense<0.000000e+00> : vector<2x8x32xf32>
    %263 = tpu.matmul %262, %250, %cst_82 {dimension_numbers = #tpu.dot_dimension_numbers<[2], [1], [1], [2], [0, 0, 0, 1, 1, 2], [0], [0]>} : vector<2x8x8xbf16>, vector<2x8x32xbf16>, vector<2x8x32xf32> -> vector<2x8x32xf32>
    "tpu.trace_stop"() : () -> ()
    %264 = vector.shape_cast %263 : vector<2x8x32xf32> to vector<16x32xf32>
    %265 = arith.truncf %264 : vector<16x32xf32> to vector<16x32xbf16>
    %266 = vector.extract_strided_slice %218 {offsets = [1, 0, 0], sizes = [1, 32, 128], strides = [1, 1, 1]} : vector<4x32x128xbf16> to vector<1x32x128xbf16>
    %267 = vector.shape_cast %266 : vector<1x32x128xbf16> to vector<32x128xbf16>
    %cst_83 = arith.constant dense<0.000000e+00> : vector<16x128xf32>
    %268 = tpu.matmul %265, %267, %cst_83 {dimension_numbers = #tpu.dot_dimension_numbers<[1], [0], [0], [1], [0, 0, 1, 1], [], []>} : vector<16x32xbf16>, vector<32x128xbf16>, vector<16x128xf32> -> vector<16x128xf32>
    %269 = arith.addf %244, %268 : vector<16x128xf32>
    %270 = vector.extract_strided_slice %212 {offsets = [0, 0, 64], sizes = [2, 8, 32], strides = [1, 1, 1]} : vector<2x8x128xf32> to vector<2x8x32xf32>
    %271 = arith.truncf %270 : vector<2x8x32xf32> to vector<2x8x32xbf16>
    %272 = vector.extract_strided_slice %214 {offsets = [0, 0, 64], sizes = [2, 8, 32], strides = [1, 1, 1]} : vector<2x8x128xf32> to vector<2x8x32xf32>
    %273 = arith.truncf %272 : vector<2x8x32xf32> to vector<2x8x32xbf16>
    %274 = vector.extract_strided_slice %216 {offsets = [0, 0, 64], sizes = [2, 8, 32], strides = [1, 1, 1]} : vector<2x8x128xf32> to vector<2x8x32xf32>
    %275 = arith.truncf %274 : vector<2x8x32xf32> to vector<2x8x32xbf16>
    "tpu.trace_start"() <{level = 10 : i32, message = "bqe,bke->bqk"}> : () -> ()
    %cst_84 = arith.constant dense<0.000000e+00> : vector<2x8x8xf32>
    %276 = tpu.matmul %271, %273, %cst_84 {dimension_numbers = #tpu.dot_dimension_numbers<[2], [2], [1], [1], [0, 0, 0, 1, 1, 1], [0], [0]>} : vector<2x8x32xbf16>, vector<2x8x32xbf16>, vector<2x8x8xf32> -> vector<2x8x8xf32>
    "tpu.trace_stop"() : () -> ()
    %cst_85 = arith.constant dense<0xFF800000> : vector<2x8xf32>
    %277 = vector.multi_reduction <maximumf>, %276, %cst_85 [2] : vector<2x8x8xf32> to vector<2x8xf32>
    %278 = vector.shape_cast %277 : vector<2x8xf32> to vector<2x8x1xf32>
    %279 = vector.broadcast %278 : vector<2x8x1xf32> to vector<2x8x8xf32>
    %280 = arith.subf %276, %279 : vector<2x8x8xf32>
    %281 = math.exp %280 : vector<2x8x8xf32>
    %cst_86 = arith.constant dense<0.000000e+00> : vector<2x8xf32>
    %282 = vector.multi_reduction <add>, %281, %cst_86 [2] : vector<2x8x8xf32> to vector<2x8xf32>
    %283 = vector.shape_cast %282 : vector<2x8xf32> to vector<2x8x1xf32>
    %284 = tpu.reciprocal %283 {approx = true} : vector<2x8x1xf32> -> vector<2x8x1xf32>
    %285 = vector.broadcast %284 : vector<2x8x1xf32> to vector<2x8x8xf32>
    %286 = arith.mulf %281, %285 : vector<2x8x8xf32>
    %287 = arith.truncf %286 : vector<2x8x8xf32> to vector<2x8x8xbf16>
    "tpu.trace_start"() <{level = 10 : i32, message = "bqk,bke->bqe"}> : () -> ()
    %cst_87 = arith.constant dense<0.000000e+00> : vector<2x8x32xf32>
    %288 = tpu.matmul %287, %275, %cst_87 {dimension_numbers = #tpu.dot_dimension_numbers<[2], [1], [1], [2], [0, 0, 0, 1, 1, 2], [0], [0]>} : vector<2x8x8xbf16>, vector<2x8x32xbf16>, vector<2x8x32xf32> -> vector<2x8x32xf32>
    "tpu.trace_stop"() : () -> ()
    %289 = vector.shape_cast %288 : vector<2x8x32xf32> to vector<16x32xf32>
    %290 = arith.truncf %289 : vector<16x32xf32> to vector<16x32xbf16>
    %291 = vector.extract_strided_slice %218 {offsets = [2, 0, 0], sizes = [1, 32, 128], strides = [1, 1, 1]} : vector<4x32x128xbf16> to vector<1x32x128xbf16>
    %292 = vector.shape_cast %291 : vector<1x32x128xbf16> to vector<32x128xbf16>
    %cst_88 = arith.constant dense<0.000000e+00> : vector<16x128xf32>
    %293 = tpu.matmul %290, %292, %cst_88 {dimension_numbers = #tpu.dot_dimension_numbers<[1], [0], [0], [1], [0, 0, 1, 1], [], []>} : vector<16x32xbf16>, vector<32x128xbf16>, vector<16x128xf32> -> vector<16x128xf32>
    %294 = arith.addf %269, %293 : vector<16x128xf32>
    %295 = vector.extract_strided_slice %212 {offsets = [0, 0, 96], sizes = [2, 8, 32], strides = [1, 1, 1]} : vector<2x8x128xf32> to vector<2x8x32xf32>
    %296 = arith.truncf %295 : vector<2x8x32xf32> to vector<2x8x32xbf16>
    %297 = vector.extract_strided_slice %214 {offsets = [0, 0, 96], sizes = [2, 8, 32], strides = [1, 1, 1]} : vector<2x8x128xf32> to vector<2x8x32xf32>
    %298 = arith.truncf %297 : vector<2x8x32xf32> to vector<2x8x32xbf16>
    %299 = vector.extract_strided_slice %216 {offsets = [0, 0, 96], sizes = [2, 8, 32], strides = [1, 1, 1]} : vector<2x8x128xf32> to vector<2x8x32xf32>
    %300 = arith.truncf %299 : vector<2x8x32xf32> to vector<2x8x32xbf16>
    "tpu.trace_start"() <{level = 10 : i32, message = "bqe,bke->bqk"}> : () -> ()
    %cst_89 = arith.constant dense<0.000000e+00> : vector<2x8x8xf32>
    %301 = tpu.matmul %296, %298, %cst_89 {dimension_numbers = #tpu.dot_dimension_numbers<[2], [2], [1], [1], [0, 0, 0, 1, 1, 1], [0], [0]>} : vector<2x8x32xbf16>, vector<2x8x32xbf16>, vector<2x8x8xf32> -> vector<2x8x8xf32>
    "tpu.trace_stop"() : () -> ()
    %cst_90 = arith.constant dense<0xFF800000> : vector<2x8xf32>
    %302 = vector.multi_reduction <maximumf>, %301, %cst_90 [2] : vector<2x8x8xf32> to vector<2x8xf32>
    %303 = vector.shape_cast %302 : vector<2x8xf32> to vector<2x8x1xf32>
    %304 = vector.broadcast %303 : vector<2x8x1xf32> to vector<2x8x8xf32>
    %305 = arith.subf %301, %304 : vector<2x8x8xf32>
    %306 = math.exp %305 : vector<2x8x8xf32>
    %cst_91 = arith.constant dense<0.000000e+00> : vector<2x8xf32>
    %307 = vector.multi_reduction <add>, %306, %cst_91 [2] : vector<2x8x8xf32> to vector<2x8xf32>
    %308 = vector.shape_cast %307 : vector<2x8xf32> to vector<2x8x1xf32>
    %309 = tpu.reciprocal %308 {approx = true} : vector<2x8x1xf32> -> vector<2x8x1xf32>
    %310 = vector.broadcast %309 : vector<2x8x1xf32> to vector<2x8x8xf32>
    %311 = arith.mulf %306, %310 : vector<2x8x8xf32>
    %312 = arith.truncf %311 : vector<2x8x8xf32> to vector<2x8x8xbf16>
    "tpu.trace_start"() <{level = 10 : i32, message = "bqk,bke->bqe"}> : () -> ()
    %cst_92 = arith.constant dense<0.000000e+00> : vector<2x8x32xf32>
    %313 = tpu.matmul %312, %300, %cst_92 {dimension_numbers = #tpu.dot_dimension_numbers<[2], [1], [1], [2], [0, 0, 0, 1, 1, 2], [0], [0]>} : vector<2x8x8xbf16>, vector<2x8x32xbf16>, vector<2x8x32xf32> -> vector<2x8x32xf32>
    "tpu.trace_stop"() : () -> ()
    %314 = vector.shape_cast %313 : vector<2x8x32xf32> to vector<16x32xf32>
    %315 = arith.truncf %314 : vector<16x32xf32> to vector<16x32xbf16>
    %316 = vector.extract_strided_slice %218 {offsets = [3, 0, 0], sizes = [1, 32, 128], strides = [1, 1, 1]} : vector<4x32x128xbf16> to vector<1x32x128xbf16>
    %317 = vector.shape_cast %316 : vector<1x32x128xbf16> to vector<32x128xbf16>
    %cst_93 = arith.constant dense<0.000000e+00> : vector<16x128xf32>
    %318 = tpu.matmul %315, %317, %cst_93 {dimension_numbers = #tpu.dot_dimension_numbers<[1], [0], [0], [1], [0, 0, 1, 1], [], []>} : vector<16x32xbf16>, vector<32x128xbf16>, vector<16x128xf32> -> vector<16x128xf32>
    %319 = arith.addf %294, %318 : vector<16x128xf32>
    %320 = vector.broadcast %197 : vector<1x128xf32> to vector<16x128xf32>
    %321 = arith.addf %319, %320 : vector<16x128xf32>
    %322 = arith.addf %194, %321 : vector<16x128xf32>
    %cst_94 = arith.constant dense<0.000000e+00> : vector<16xf32>
    %323 = vector.multi_reduction <add>, %322, %cst_94 [1] : vector<16x128xf32> to vector<16xf32>
    %324 = vector.shape_cast %323 : vector<16xf32> to vector<16x1xf32>
    %cst_95 = arith.constant 1.280000e+02 : f32
    %325 = vector.broadcast %cst_95 : f32 to vector<16x1xf32>
    %326 = arith.divf %324, %325 : vector<16x1xf32>
    %327 = vector.broadcast %326 : vector<16x1xf32> to vector<16x128xf32>
    %328 = arith.subf %322, %327 : vector<16x128xf32>
    %329 = arith.mulf %328, %328 : vector<16x128xf32>
    %cst_96 = arith.constant dense<0.000000e+00> : vector<16xf32>
    %330 = vector.multi_reduction <add>, %329, %cst_96 [1] : vector<16x128xf32> to vector<16xf32>
    %331 = vector.shape_cast %330 : vector<16xf32> to vector<16x1xf32>
    %cst_97 = arith.constant 1.280000e+02 : f32
    %332 = vector.broadcast %cst_97 : f32 to vector<16x1xf32>
    %333 = arith.divf %331, %332 : vector<16x1xf32>
    %334 = vector.broadcast %326 : vector<16x1xf32> to vector<16x128xf32>
    %335 = arith.subf %322, %334 : vector<16x128xf32>
    %cst_98 = arith.constant 9.99999974E-6 : f32
    %336 = vector.broadcast %cst_98 : f32 to vector<16x1xf32>
    %337 = arith.addf %333, %336 : vector<16x1xf32>
    %338 = math.rsqrt %337 : vector<16x1xf32>
    %339 = vector.broadcast %338 : vector<16x1xf32> to vector<16x128xf32>
    %340 = arith.mulf %335, %339 : vector<16x128xf32>
    %341 = vector.broadcast %198 : vector<1x128xf32> to vector<16x128xf32>
    %342 = arith.mulf %340, %341 : vector<16x128xf32>
    %343 = vector.broadcast %199 : vector<1x128xf32> to vector<16x128xf32>
    %344 = arith.addf %342, %343 : vector<16x128xf32>
    %345 = arith.truncf %344 : vector<16x128xf32> to vector<16x128xbf16>
    %c1_99 = arith.constant 1 : index
    %c0_100 = arith.constant 0 : index
    %c0_101 = arith.constant 0 : index
    %346 = vector.load %arg6[%c1_99, %c0_100, %c0_101] : memref<2x128x256xbf16, #tpu.memory_space<vmem>>, vector<1x128x256xbf16>
    %347 = vector.shape_cast %346 : vector<1x128x256xbf16> to vector<128x256xbf16>
    %cst_102 = arith.constant dense<0.000000e+00> : vector<16x256xf32>
    %348 = tpu.matmul %345, %347, %cst_102 {dimension_numbers = #tpu.dot_dimension_numbers<[1], [0], [0], [1], [0, 0, 1, 1], [], []>} : vector<16x128xbf16>, vector<128x256xbf16>, vector<16x256xf32> -> vector<16x256xf32>
    %c1_103 = arith.constant 1 : index
    %c0_104 = arith.constant 0 : index
    %c0_105 = arith.constant 0 : index
    %349 = vector.load %arg7[%c1_103, %c0_104, %c0_105] : memref<2x1x256xf32, #tpu.memory_space<vmem>>, vector<1x1x256xf32>
    %350 = vector.shape_cast %349 : vector<1x1x256xf32> to vector<1x256xf32>
    %351 = vector.broadcast %350 : vector<1x256xf32> to vector<16x256xf32>
    %352 = arith.addf %348, %351 : vector<16x256xf32>
    %cst_106 = arith.constant 0.000000e+00 : f32
    %353 = vector.broadcast %cst_106 : f32 to vector<16x256xf32>
    %354 = arith.maximumf %352, %353 : vector<16x256xf32>
    %355 = arith.truncf %354 : vector<16x256xf32> to vector<16x256xbf16>
    %c1_107 = arith.constant 1 : index
    %c0_108 = arith.constant 0 : index
    %c0_109 = arith.constant 0 : index
    %356 = vector.load %arg8[%c1_107, %c0_108, %c0_109] : memref<2x256x128xbf16, #tpu.memory_space<vmem>>, vector<1x256x128xbf16>
    %357 = vector.shape_cast %356 : vector<1x256x128xbf16> to vector<256x128xbf16>
    %cst_110 = arith.constant dense<0.000000e+00> : vector<16x128xf32>
    %358 = tpu.matmul %355, %357, %cst_110 {dimension_numbers = #tpu.dot_dimension_numbers<[1], [0], [0], [1], [0, 0, 1, 1], [], []>} : vector<16x256xbf16>, vector<256x128xbf16>, vector<16x128xf32> -> vector<16x128xf32>
    %359 = vector.broadcast %200 : vector<1x128xf32> to vector<16x128xf32>
    %360 = arith.addf %358, %359 : vector<16x128xf32>
    %361 = arith.addf %344, %360 : vector<16x128xf32>
    %cst_111 = arith.constant dense<0.000000e+00> : vector<16xf32>
    %362 = vector.multi_reduction <add>, %361, %cst_111 [1] : vector<16x128xf32> to vector<16xf32>
    %363 = vector.shape_cast %362 : vector<16xf32> to vector<16x1xf32>
    %cst_112 = arith.constant 1.280000e+02 : f32
    %364 = vector.broadcast %cst_112 : f32 to vector<16x1xf32>
    %365 = arith.divf %363, %364 : vector<16x1xf32>
    %366 = vector.broadcast %365 : vector<16x1xf32> to vector<16x128xf32>
    %367 = arith.subf %361, %366 : vector<16x128xf32>
    %368 = arith.mulf %367, %367 : vector<16x128xf32>
    %cst_113 = arith.constant dense<0.000000e+00> : vector<16xf32>
    %369 = vector.multi_reduction <add>, %368, %cst_113 [1] : vector<16x128xf32> to vector<16xf32>
    %370 = vector.shape_cast %369 : vector<16xf32> to vector<16x1xf32>
    %cst_114 = arith.constant 1.280000e+02 : f32
    %371 = vector.broadcast %cst_114 : f32 to vector<16x1xf32>
    %372 = arith.divf %370, %371 : vector<16x1xf32>
    %373 = vector.broadcast %365 : vector<16x1xf32> to vector<16x128xf32>
    %374 = arith.subf %361, %373 : vector<16x128xf32>
    %cst_115 = arith.constant 9.99999974E-6 : f32
    %375 = vector.broadcast %cst_115 : f32 to vector<16x1xf32>
    %376 = arith.addf %372, %375 : vector<16x1xf32>
    %377 = math.rsqrt %376 : vector<16x1xf32>
    %378 = vector.broadcast %377 : vector<16x1xf32> to vector<16x128xf32>
    %379 = arith.mulf %374, %378 : vector<16x128xf32>
    %380 = vector.broadcast %201 : vector<1x128xf32> to vector<16x128xf32>
    %381 = arith.mulf %379, %380 : vector<16x128xf32>
    %382 = vector.broadcast %202 : vector<1x128xf32> to vector<16x128xf32>
    %383 = arith.addf %381, %382 : vector<16x128xf32>
    %384 = vector.shape_cast %383 : vector<16x128xf32> to vector<2x8x128xf32>
    %cst_116 = arith.constant dense<0.000000e+00> : vector<2x128xf32>
    %385 = vector.multi_reduction <add>, %384, %cst_116 [1] : vector<2x8x128xf32> to vector<2x128xf32>
    %cst_117 = arith.constant 8.000000e+00 : f32
    %386 = vector.broadcast %cst_117 : f32 to vector<2x128xf32>
    %387 = arith.divf %385, %386 : vector<2x128xf32>
    %388 = arith.truncf %387 : vector<2x128xf32> to vector<2x128xbf16>
    %c0_118 = arith.constant 0 : index
    %c0_119 = arith.constant 0 : index
    %389 = vector.load %arg10[%c0_118, %c0_119] : memref<128x128xbf16, #tpu.memory_space<vmem>>, vector<128x128xbf16>
    %cst_120 = arith.constant dense<0.000000e+00> : vector<2x128xf32>
    %390 = tpu.matmul %388, %389, %cst_120 {dimension_numbers = #tpu.dot_dimension_numbers<[1], [0], [0], [1], [0, 0, 1, 1], [], []>} : vector<2x128xbf16>, vector<128x128xbf16>, vector<2x128xf32> -> vector<2x128xf32>
    %c0_121 = arith.constant 0 : index
    %c0_122 = arith.constant 0 : index
    %391 = vector.load %arg11[%c0_121, %c0_122] : memref<1x128xf32, #tpu.memory_space<vmem>>, vector<1x128xf32>
    %392 = vector.broadcast %391 : vector<1x128xf32> to vector<2x128xf32>
    %393 = arith.addf %390, %392 : vector<2x128xf32>
    %394 = vector.shape_cast %393 : vector<2x128xf32> to vector<2x1x128xf32>
    %c0_123 = arith.constant 0 : index
    %c0_124 = arith.constant 0 : index
    %c0_125 = arith.constant 0 : index
    %395 = vector.load %arg12[%c0_123, %c0_124, %c0_125] : memref<2x1x128xf32, #tpu.memory_space<vmem>>, vector<2x1x128xf32>
    tpu.vector_store %arg12[%c0_123, %c0_124, %c0_125], %394 {strides = array<i32>} : memref<2x1x128xf32, #tpu.memory_space<vmem>>, vector<2x1x128xf32>,
    return
  }
  func.func @transform_0(%arg0: i32) -> (i32, i32, i32) {
    %c0_i32 = arith.constant 0 : i32
    %c0_i32_0 = arith.constant 0 : i32
    %c0_i32_1 = arith.constant 0 : i32
    return %arg0, %c0_i32, %c0_i32_0 : i32, i32, i32
  }
  func.func @transform_1(%arg0: i32) -> (i32, i32) {
    %c0_i32 = arith.constant 0 : i32
    %c0_i32_0 = arith.constant 0 : i32
    %c0_i32_1 = arith.constant 0 : i32
    return %c0_i32, %c0_i32_0 : i32, i32
  }
  func.func @transform_2(%arg0: i32) -> (i32, i32, i32) {
    %c0_i32 = arith.constant 0 : i32
    %c0_i32_0 = arith.constant 0 : i32
    %c0_i32_1 = arith.constant 0 : i32
    %c0_i32_2 = arith.constant 0 : i32
    return %c0_i32, %c0_i32_0, %c0_i32_1 : i32, i32, i32
  }
  func.func @transform_3(%arg0: i32) -> (i32, i32, i32) {
    %c0_i32 = arith.constant 0 : i32
    %c0_i32_0 = arith.constant 0 : i32
    %c0_i32_1 = arith.constant 0 : i32
    %c0_i32_2 = arith.constant 0 : i32
    return %c0_i32, %c0_i32_0, %c0_i32_1 : i32, i32, i32
  }
  func.func @transform_4(%arg0: i32) -> (i32, i32, i32, i32) {
    %c0_i32 = arith.constant 0 : i32
    %c0_i32_0 = arith.constant 0 : i32
    %c0_i32_1 = arith.constant 0 : i32
    %c0_i32_2 = arith.constant 0 : i32
    %c0_i32_3 = arith.constant 0 : i32
    return %c0_i32, %c0_i32_0, %c0_i32_1, %c0_i32_2 : i32, i32, i32, i32
  }
  func.func @transform_5(%arg0: i32) -> (i32, i32, i32) {
    %c0_i32 = arith.constant 0 : i32
    %c0_i32_0 = arith.constant 0 : i32
    %c0_i32_1 = arith.constant 0 : i32
    %c0_i32_2 = arith.constant 0 : i32
    return %c0_i32, %c0_i32_0, %c0_i32_1 : i32, i32, i32
  }
  func.func @transform_6(%arg0: i32) -> (i32, i32, i32) {
    %c0_i32 = arith.constant 0 : i32
    %c0_i32_0 = arith.constant 0 : i32
    %c0_i32_1 = arith.constant 0 : i32
    %c0_i32_2 = arith.constant 0 : i32
    return %c0_i32, %c0_i32_0, %c0_i32_1 : i32, i32, i32
  }
  func.func @transform_7(%arg0: i32) -> (i32, i32, i32) {
    %c0_i32 = arith.constant 0 : i32
    %c0_i32_0 = arith.constant 0 : i32
    %c0_i32_1 = arith.constant 0 : i32
    %c0_i32_2 = arith.constant 0 : i32
    return %c0_i32, %c0_i32_0, %c0_i32_1 : i32, i32, i32
  }
  func.func @transform_8(%arg0: i32) -> (i32, i32, i32) {
    %c0_i32 = arith.constant 0 : i32
    %c0_i32_0 = arith.constant 0 : i32
    %c0_i32_1 = arith.constant 0 : i32
    %c0_i32_2 = arith.constant 0 : i32
    return %c0_i32, %c0_i32_0, %c0_i32_1 : i32, i32, i32
  }
  func.func @transform_9(%arg0: i32) -> (i32, i32) {
    %c0_i32 = arith.constant 0 : i32
    %c0_i32_0 = arith.constant 0 : i32
    %c0_i32_1 = arith.constant 0 : i32
    return %c0_i32, %c0_i32_0 : i32, i32
  }
  func.func @transform_10(%arg0: i32) -> (i32, i32) {
    %c0_i32 = arith.constant 0 : i32
    %c0_i32_0 = arith.constant 0 : i32
    %c0_i32_1 = arith.constant 0 : i32
    return %c0_i32, %c0_i32_0 : i32, i32
  }
  func.func @transform_11(%arg0: i32) -> (i32, i32, i32) {
    %c0_i32 = arith.constant 0 : i32
    %c0_i32_0 = arith.constant 0 : i32
    %c0_i32_1 = arith.constant 0 : i32
    return %arg0, %c0_i32, %c0_i32_0 : i32, i32, i32
  }
}

</mosaic_0001>

<bundles_post_ra>
// kernel: tpu_custom_call.1
= control target key start
LH: loop header
LB: loop body
LE: loop exit
PB: predicated region body
PF: predicated region fallthrough
CT: control target
= control target key end

     0   :  { %s4961_s0 = inlined_call_operand.hbm [shape: f32[4,8,128], index: 0, kind: input, shape index: {}]   ;;  %s4962_s1 = inlined_call_operand.vmem [shape: f32[8,128], index: 1, kind: input, shape index: {}]   ;;  %s4963_s2 = inlined_call_operand.hbm [shape: bf16[2,128,384], index: 2, kind: input, shape index: {}]   ;;  %s4964_s3 = inlined_call_operand.vmem [shape: f32[2,1,384], index: 3, kind: input, shape index: {}]   ;;  %s4965_s4 = inlined_call_operand.hbm [shape: bf16[2,4,32,128], index: 4, kind: input, shape index: {}]   ;;  %s4966_s5 = inlined_call_operand.hbm [shape: bf16[2,128,256], index: 5, kind: input, shape index: {}]   ;;  %s4967_s6 = inlined_call_operand.vmem [shape: f32[2,1,256], index: 6, kind: input, shape index: {}]   ;;  %s4968_s7 = inlined_call_operand.hbm [shape: bf16[2,256,128], index: 7, kind: input, shape index: {}]   ;;  %s4969_s8 = inlined_call_operand.vmem [shape: f32[2,6,128], index: 8, kind: input, shape index: {}]   ;;  %s4970_s9 = inlined_call_operand.hbm [shape: bf16[128,128], index: 9, kind: input, shape index: {}]   ;;  %s4971_s10 = inlined_call_operand.vmem [shape: f32[1,128], index: 10, kind: input, shape index: {}]   ;;  %s4972_s11 = inlined_call_operand.hbm [shape: f32[4,1,128], index: 11, kind: output, shape index: {}]  }
   0x1   :  { %4975 = sst [smem:[#allocation19_spill]] %s4963_s2 }
   0x2   :  { %4976 = sst [smem:[#allocation20_spill]] %s4965_s4 }
   0x3   :  { %4977 = sst [smem:[#allocation21_spill]] %s4966_s5 }
   0x4   :  { %4978 = sst [smem:[#allocation22_spill]] %s4968_s7 }
   0x5   :  { %4979 = sst [smem:[#allocation23_spill]] %s4970_s9 }
   0x6   :  { %16 = vsyncpa [#allocation3], 0 }
   0x7   :  { %18 = vsyncpa [#allocation3 + $0x1], 0 }
   0x8   :  { %19 = vsyncpa [#allocation6], 0 }
   0x9   :  { %20 = vsyncpa [#allocation9], 0 }
   0xa   :  { %21 = vsyncpa [#allocation12], 0 }
   0xb   :  { %22 = vsyncpa [#allocation4], 0 }
   0xc   :  { %24 = vsyncpa [#allocation4 + $0x1], 0  ;;  %s4458_s17 = smov 0   ;;  %s4460_s18 = smov 0  }
   0xd   :  { %s4462_s19 = smov 0   ;;  %s4464_s20 = smov 0  }
   0xe LB: > { %s4980_s2 = sld [smem:[#allocation19_spill]]  ;;  %s4482_s24 = sadd.s32 4294967295, %s4378_s20   ;;  %s4378_s20 = sphi %s4464_s20, %s4997_s20   ;;  %s4374_s19 = sphi %s4462_s19, %s4996_s19   ;;  %s4370_s18 = sphi %s4460_s18, %s4995_s18   ;;  %s4366_s17 = sphi %s4458_s17, %s4994_s17  }
   0xf   : > { %p3179_p0 = scmp.ge.s32.totalorder %s4378_s20, 1  ;;  %p51_p1 = scmp.eq.s32.totalorder %s4482_s24, 0 }
  0x10   : > { %p297_p2 = scmp.lt.s32.totalorder %s4378_s20, 3  ;;  %s4380_s26 = smov [#allocation5]  }
  0x11   : > { %s313_s27 = sshll.u32 %s4380_s26, 4  ;;  %s4982_s5 = sld [smem:[#allocation21_spill]]  ;;  %s314_s27 = int_to_ptr.vmem [resolvable:$true] %s313_s27 }
  0x12   : > { %p4487_p3 = pnand %p3179_p0, %p297_p2  ;;  %s4381_s13 = smov [#allocation8]  }
  0x13   : > { %s344_s14 = sshll.u32 %s4381_s13, 4  ;;  %s4382_s15 = smov 192   ;;  %s345_s14 = int_to_ptr.vmem [resolvable:$true] %s344_s14 }
  0x14   : > { %s311_s23 = sshll.u32 %s4980_s2, 4  ;;  %p3949_p4 = pneg %p4487_p3  ;;  %s312_s23 = int_to_ptr.hbm [resolvable:$true] %s311_s23 }
  0x15   : > { %s4383_s16 = smov 12   ;;  %s4973_s21 = smov 128  }
  0x16   : > { %p4499_p6 = pnand %p3949_p4, %p51_p1  ;;  %s4974_s22 = smov 8  }
  0x17   : > { %s342_s30 = sshll.u32 %s4982_s5, 4  ;;  %s4984_s4 = sld [smem:[#allocation20_spill]]  ;;  %s343_s30 = int_to_ptr.hbm [resolvable:$true] %s342_s30 }
  0x18   : > { %3952 = dma.hbm_to_vmem [thread:$0]  (!%p4499_p6), %s312_s23, 6144, %s314_s27, [#allocation6], %s4382_s15, %s4382_s15, %s4383_s16  }
  0x19   : > { %3958 = dma.hbm_to_vmem [thread:$0]  (!%p4499_p6), %s343_s30, 4096, %s345_s14, [#allocation9], %s4973_s21, %s4973_s21, %s4974_s22  }
  0x1a   : > { %s4386_s13 = smov [#allocation7]   ;;  %s4985_s7 = sld [smem:[#allocation22_spill]] }
  0x1b   : > { %s330_s2 = sshll.u32 %s4386_s13, 4  ;;  %s4387_s15 = smov 64   ;;  %s331_s2 = int_to_ptr.vmem [resolvable:$true] %s330_s2 }
  0x1c   : > { %s4388_s16 = smov 4   ;;  %s4389_s30 = smov [#allocation10]  }
  0x1d   : > { %s328_s29 = sshll.u32 %s4984_s4, 4  ;;  %s361_s14 = sshll.u32 %s4389_s30, 4  ;;  %s329_s29 = int_to_ptr.hbm [resolvable:$true] %s328_s29  ;;  %s362_s14 = int_to_ptr.vmem [resolvable:$true] %s361_s14 }
  0x1e   : > { %3955 = dma.hbm_to_vmem [thread:$0]  (!%p4499_p6), %s329_s29, 2048, %s331_s2, [#allocation6], %s4387_s15, %s4387_s15, %s4388_s16  }
  0x1f   : > { %s4986_s9 = sld [smem:[#allocation23_spill]]  ;;  %s4390_s2 = smov [#allocation11]  }
  0x20   : > { %s359_s27 = sshll.u32 %s4985_s7, 4  ;;  %s378_s29 = sshll.u32 %s4390_s2, 4  ;;  %s360_s27 = int_to_ptr.hbm [resolvable:$true] %s359_s27  ;;  %s379_s29 = int_to_ptr.vmem [resolvable:$true] %s378_s29 }
  0x21   : > { %3961 = dma.hbm_to_vmem [thread:$0]  (!%p4499_p6), %s360_s27, 4096, %s362_s14, [#allocation9], %s4387_s15, %s4387_s15, %s4388_s16  }
  0x22   : > { %s3178_s13 = sadd.s32 4294967294, %s4378_s20   ;;  %s4527_s23 = sadd.s32 1, %s4378_s20  }
  0x23   : > { %s37_s30 = sadd.s32 1, %s4374_s19  ;;  %s34_s26 = ssub.s32 %s4378_s20, %s4527_s23 }
  0x24   : > { %p44_p7 = scmp.ne.s32.totalorder %s4374_s19, %s4370_s18  ;;  %p35_p8 = scmp.eq.s32.totalorder %s34_s26, 0 }
  0x25   : > { %s376_s5 = sshll.u32 %s4986_s9, 4  ;;  %p45_p9 = scmp.eq.s32.totalorder %s4378_s20, 0  ;;  %s377_s5 = int_to_ptr.hbm [resolvable:$true] %s376_s5 }
  0x26   : > { %3964 = dma.hbm_to_vmem [thread:$0]  (!%p4499_p6), %s377_s5, 1024, %s379_s29, [#allocation12], %s4387_s15, %s4387_s15, %s4388_s16  }
  0x27   : > { %p50_p10 = scmp.ne.s32.totalorder %s4370_s18, %s4366_s17  ;;  %p284_p11 = scmp.eq.s32.totalorder %s4482_s24, 1 }
  0x28   : > { %s4539_s27 = scalar_select %p35_p8, %s4374_s19, %s37_s30  }
  0x29   : > { %p4543_p12 = por %p51_p1, %p50_p10  ;;  %p4547_p13 = por %p284_p11, %p44_p7 }
  0x2a   : > { %p290_p0 = scmp.eq.s32.totalorder %s3178_s13, 1  ;;  %p46_p2 = por %p45_p9, %p44_p7 }
  0x2b   : > { %s395_s16 = sand.u32 1, %s4374_s19   ;;  %p3978_p6 = scmp.lt.s32.totalorder %s4378_s20, 2 }
  0x2c   : > { %p4552_p4 = por %p290_p0, %p50_p10  ;;  %s3186_s28 = sshll.u32 %s395_s16, 4 }
  0x2d   : > { %s3788_s5 = sshll.u32 %s4378_s20, 4  ;;  %s399_s21 = scalar_lea.vmem [#allocation2], %s3186_s28 }
  0x2e   : > { %s404_s30 = scalar_lea.hbm %s4961_s0, %s3788_s5  ;;  %s407_s22 = sshll.u32 %s399_s21, 4  ;;  %s408_s22 = int_to_ptr.vmem [resolvable:$true] %s407_s22 }
  0x2f   : > { %s405_s26 = sshll.u32 %s404_s30, 4  ;;  %p4561_p8 = pnand %p3978_p6, %p46_p2  ;;  %s406_s26 = int_to_ptr.hbm [resolvable:$true] %s405_s26 }
  0x30   : > { %s396_s4 = scalar_lea.sflag [#allocation3], %s395_s16  ;;  %s4270_s7 = sshra.s32 %s406_s26, 4  ;;  %s4271_s7 = int_to_ptr.hbm [resolvable:$true] %s4270_s7 }
  0x31   : > { %s4272_s9 = scalar_lea.hbm %s4271_s7, 16  ;;  %p4274_p9 = pneg %p4561_p8 }
  0x32   : > { %p4273_p7 = scmp.ne.s32.totalorder %s4271_s7, %s4272_s9  ;;  %s4277_s21 = scalar_lea.hbm %s4961_s0, 32 }
  0x33   : > { %p4278_p0 = scmp.lt.s32.totalorder %s4271_s7, %s4961_s0  ;;  %p4279_p2 = scmp.lt.s32.totalorder %s4277_s21, %s4272_s9 }
  0x34   : > { %p4275_p10 = pnand %p4274_p9, %p4273_p7 }
  0x35   : > { %p4280_p6 = por %p4279_p2, %p4278_p0 }
  0x36   : > { %p4276_p11 = pneg %p4275_p10 }
  0x38   : > { %p4281_p5 = pnand %p4280_p6, %p4276_p11 }
  0x3a   : > { %4284 = shalt.err (!%p4281_p5)
}
  0x3b   : > { %s4991_s16 = smov 8   ;;  %s4992_s30 = smov 128  }
  0x3c   : > { %3968 = dma.hbm_to_vmem [thread:$0]  (!%p4561_p8), %s406_s26, 256, %s408_s22, %s396_s4, %s4992_s30, %s4992_s30, %s4991_s16  }
  0x3d   : > { %419 = sbr.rel (%p4487_p3) target bundleno = 5376 (0x1500), region = 64  ;;  %s4581_s5 = sand.u32 (!%p4487_p3), 1, %s4370_s18  }
  0x3e   : > { %s3190_s7 = sshll.u32 (!%p4487_p3), %s4581_s5, 4  ;;  %s422_s9 = scalar_lea.sflag (!%p4487_p3), [#allocation3], %s4581_s5 }
  0x3f   : > { %s4585_s2 = scalar_lea.vmem (!%p4487_p3), [#allocation2], %s3190_s7 }
  0x42   : > { %4345 = dma.done.wait (%p4543_p12), %s422_s9, 256  }
  0x43   : > { %4347 = vsyncadd (%p4543_p12), %s422_s9, 4294967040 }
  0x44   : > { %4349 = dma.done.wait (%p51_p1), [#allocation6], 8192  }
  0x45   : > { %4351 = vsyncadd (%p51_p1), [#allocation6], 4294959104 }
  0x46   : > { %4353 = dma.done.wait (%p51_p1), [#allocation9], 8192  }
  0x47   : > { %4355 = vsyncadd (%p51_p1), [#allocation9], 4294959104 }
  0x48   : > { %4357 = dma.done.wait (%p51_p1), [#allocation12], 1024  }
  0x49   : > { %4359 = vsyncadd (%p51_p1), [#allocation12], 4294966272  ;;  %v3283_v0 = vld [vmem:[#allocation5 + $0xa8] sm:$0xf]  ;;  %v3811_v1 = vld [vmem:[#allocation5 + $0xb0] sm:$0xf0] }
  0x4a   : > { %v3810_v2 = vld [vmem:[#allocation5 + $0xac] sm:$0xf]  ;;  %v3284_v3 = vor.u32 %v3811_v1, %v3283_v0  ;;  %v3285_v4 = vld [vmem:[#allocation5 + $0xb4] sm:$0xf0]  ;;  %v3271_v5 = vld [vmem:[#allocation5 + $0x90] sm:$0xf] }
  0x4b   : > { %v3808_v6 = vld [vmem:[#allocation5 + $0x98] sm:$0xf0]  ;;  %v3288_v7 = vor.u32 %v3810_v2, %v3285_v4  ;;  %v3807_v8 = vld [vmem:[#allocation5 + $0x94] sm:$0xf]  ;;  %v3273_v9 = vld [vmem:[#allocation5 + $0x9c] sm:$0xf0] }
  0x4c   : > { %668 = vmatpush.bf16.msra.mxu0 %v3284_v3  ;;  %v3272_v10 = vor.u32 %v3808_v6, %v3271_v5  ;;  %v3276_v11 = vor.u32 %v3807_v8, %v3273_v9  ;;  %v3259_v12 = vld [vmem:[#allocation5 + $0x78] sm:$0xf]  ;;  %v3805_v13 = vld [vmem:[#allocation5 + $0x80] sm:$0xf0]  ;;  %v3804_v14 = vld [vmem:[#allocation5 + $0x7c] sm:$0xf] }
  0x4d   : > { %682 = vmatpush.bf16.msra.mxu1 %v3288_v7  ;;  %v3261_v15 = vld [vmem:[#allocation5 + $0x84] sm:$0xf0]  ;;  %v3260_v16 = vor.u32 %v3805_v13, %v3259_v12  ;;  %v3247_v18 = vld [vmem:[#allocation5 + $0x60] sm:$0xf]  ;;  %v3802_v19 = vld [vmem:[#allocation5 + $0x68] sm:$0xf0] }
  0x4e   : > { %v3264_v17 = vor.u32 %v3804_v14, %v3261_v15  ;;  %v3801_v20 = vld [vmem:[#allocation5 + $0x64] sm:$0xf]  ;;  %v3249_v21 = vld [vmem:[#allocation5 + $0x6c] sm:$0xf0]  ;;  %v3248_v22 = vor.u32 %v3802_v19, %v3247_v18  ;;  %v3235_v24 = vld [vmem:[#allocation5 + $0x48] sm:$0xf] }
  0x4f   : > { %v3252_v23 = vor.u32 %v3801_v20, %v3249_v21  ;;  %v3799_v25 = vld [vmem:[#allocation5 + $0x50] sm:$0xf0]  ;;  %v3798_v26 = vld [vmem:[#allocation5 + $0x4c] sm:$0xf]  ;;  %v3237_v27 = vld [vmem:[#allocation5 + $0x54] sm:$0xf0] }
  0x50   : > { %669 = vmatpush.bf16.msra.mxu0 %v3272_v10  ;;  %v3236_v28 = vor.u32 %v3799_v25, %v3235_v24  ;;  %v3240_v29 = vor.u32 %v3798_v26, %v3237_v27  ;;  %v3223_v30 = vld [vmem:[#allocation5 + $0x30] sm:$0xf]  ;;  %v3796_v31 = vld [vmem:[#allocation5 + $0x38] sm:$0xf0]  ;;  %v3795_v32 = vld [vmem:[#allocation5 + $0x34] sm:$0xf] }
  0x51   : > { %683 = vmatpush.bf16.msra.mxu1 %v3276_v11  ;;  %v3225_v33 = vld [vmem:[#allocation5 + $0x3c] sm:$0xf0]  ;;  %v3224_v34 = vor.u32 %v3796_v31, %v3223_v30  ;;  %v3211_v36 = vld [vmem:[#allocation5 + $0x18] sm:$0xf]  ;;  %v3793_v37 = vld [vmem:[#allocation5 + $0x20] sm:$0xf0] }
  0x52   : > { %v3228_v35 = vor.u32 %v3795_v32, %v3225_v33  ;;  %v3792_v38 = vld [vmem:[#allocation5 + $0x1c] sm:$0xf]  ;;  %v3213_v39 = vld [vmem:[#allocation5 + $0x24] sm:$0xf0]  ;;  %v3212_v40 = vor.u32 %v3793_v37, %v3211_v36  ;;  %v493_v41 = vld [vmem:[%s4585_s2] sm:$0xff]  ;;  %vm732_vm0 = vcmask 261120  }
  0x53   : > { %v494_v42 = vld [vmem:[%s4585_s2 + $0x8] sm:$0xff]  ;;  %v495_v43 = vld [vmem:[%s4962_s1] sm:$0xff]  ;;  %v3216_v44 = vor.u32 %v3792_v38, %v3213_v39  ;;  %v3201_v48 = vld [vmem:[#allocation5 + $0xc] sm:$0xf0]  ;;  %s4391_s26 = smov 96   ;;  %vm771_vm1 = vcmask 64512  }
  0x54   : > { %670 = vmatpush.bf16.msra.mxu0 %v3260_v16  ;;  %v3199_v45 = vld [vmem:[#allocation5] sm:$0xf]  ;;  %v3790_v46 = vld [vmem:[#allocation5 + $0x8] sm:$0xf0]  ;;  %v3789_v47 = vld [vmem:[#allocation5 + $0x4] sm:$0xf]  ;;  %v4608_v49 = vadd.f32 %v495_v43, %v493_v41  ;;  %v4610_v50 = vadd.f32 %v495_v43, %v494_v42 }
  0x55   : > { %684 = vmatpush.bf16.msra.mxu1 %v3264_v17  ;;  %v3200_v51 = vor.u32 %v3790_v46, %v3199_v45  ;;  %v3204_v52 = vor.u32 %v3789_v47, %v3201_v48  ;;  %v3291_v54 = vld [vmem:[#allocation5 + $0xb0] sm:$0xf]  ;;  %v3812_v55 = vld [vmem:[#allocation5 + $0xb8] sm:$0xf0]  ;;  %v3279_v56 = vld [vmem:[#allocation5 + $0x98] sm:$0xf] }
  0x56   : > { %v4614_v53 = vpack.c.bf16 %v4610_v50, %v4608_v49  ;;  %v4621_v57 = vld [vmem:[%s4964_s3] sm:$0x7]  ;;  %v3292_v58 = vor.u32 %v3812_v55, %v3291_v54  ;;  %v3809_v59 = vld [vmem:[#allocation5 + $0xa0] sm:$0xf0]  ;;  %v3806_v0 = vld [vmem:[#allocation5 + $0x88] sm:$0xf0] }
  0x57   : > { %v3280_v60 = vor.u32 %v3809_v59, %v3279_v56  ;;  %v534_v61 = vperm.slane %v4621_v57, 0  ;;  %v535_v62 = vperm.slane %v4621_v57, 1  ;;  %v3267_v63 = vld [vmem:[#allocation5 + $0x80] sm:$0xf]  ;;  %v3255_v6 = vld [vmem:[#allocation5 + $0x68] sm:$0xf] }
  0x58   : > { %671 = vmatpush.bf16.msra.mxu0 %v3248_v22  ;;  %696 = vmatpush.bf16.msra.mxu2 %v3292_v58  ;;  %v3268_v3 = vor.u32 %v3806_v0, %v3267_v63  ;;  %v3803_v7 = vld [vmem:[#allocation5 + $0x70] sm:$0xf0]  ;;  %v3243_v13 = vld [vmem:[#allocation5 + $0x50] sm:$0xf]  ;;  %v3800_v14 = vld [vmem:[#allocation5 + $0x58] sm:$0xf0] }
  0x59   : > { %685 = vmatpush.bf16.msra.mxu1 %v3252_v23  ;;  %v3256_v9 = vor.u32 %v3803_v7, %v3255_v6  ;;  %v3244_v18 = vor.u32 %v3800_v14, %v3243_v13  ;;  %v3231_v21 = vld [vmem:[#allocation5 + $0x38] sm:$0xf]  ;;  %v3797_v22 = vld [vmem:[#allocation5 + $0x40] sm:$0xf0]  ;;  %v3794_v30 = vld [vmem:[#allocation5 + $0x28] sm:$0xf0] }
  0x5a   : > { %v3232_v25 = vor.u32 %v3797_v22, %v3231_v21  ;;  %s4392_s13 = smov 64   ;;  %vm799_vm2 = vcmask 1043456   ;;  %s4393_s21 = smov 32  }
  0x5b   : > { %s3785_s12 = sshll.u32 %s4482_s24, 1  ;;  %s3043_s24 = scalar_lea.sflag [#allocation4], %s4581_s5 }
  0x5c   : > { %672 = vmatpush.bf16.msra.mxu0 %v3236_v28  ;;  %697 = vmatpush.bf16.msra.mxu2 %v3280_v60  ;;  %v536_v60 = vperm.slane %v4621_v57, 2  ;;  %s3053_s28 = scalar_lea.hbm %s4972_s11, %s3785_s12  ;;  %s4320_s12 = scalar_lea.hbm %s4972_s11, 4 }
  0x5d   : > { %686 = vmatpush.bf16.msra.mxu1 %v3240_v29  ;;  %v3219_v29 = vld [vmem:[#allocation5 + $0x20] sm:$0xf]  ;;  %s3056_s9 = sshll.u32 %s3053_s28, 4  ;;  %s3057_s9 = int_to_ptr.hbm [resolvable:$true] %s3056_s9 }
  0x5e   : > { %v3220_v33 = vor.u32 %v3794_v30, %v3219_v29  ;;  %s4314_s2 = sshra.s32 %s3057_s9, 4  ;;  %s4315_s2 = int_to_ptr.hbm [resolvable:$true] %s4314_s2 }
  0x5f   : > { %s4316_s4 = scalar_lea.hbm %s4315_s2, 2  ;;  %p4321_p12 = scmp.lt.s32.totalorder %s4315_s2, %s4972_s11 }
  0x60   : > { %673 = vmatpush.bf16.msra.mxu0 %v3224_v34  ;;  %698 = vmatpush.bf16.msra.mxu2 %v3268_v3  ;;  %v3207_v34 = vld [vmem:[#allocation5 + $0x8] sm:$0xf]  ;;  %p4317_p1 = scmp.ne.s32.totalorder %s4315_s2, %s4316_s4  ;;  %p4322_p8 = scmp.lt.s32.totalorder %s4320_s12, %s4316_s4 }
  0x61   : > { %687 = vmatpush.bf16.msra.mxu1 %v3228_v35  ;;  %v3791_v35 = vld [vmem:[#allocation5 + $0x10] sm:$0xf0] }
  0x62   : > { %v3208_v37 = vor.u32 %v3791_v35, %v3207_v34  ;;  %p4318_p3 = pnand %p4317_p1, %p4547_p13  ;;  %p4323_p7 = por %p4322_p8, %p4321_p12 }
  0x64   : > { %674 = vmatpush.bf16.msra.mxu0 %v3212_v40  ;;  %699 = vmatpush.bf16.msra.mxu2 %v3256_v9  ;;  %p4319_p5 = pneg %p4318_p3 }
  0x65   : > { %688 = vmatpush.bf16.msra.mxu1 %v3216_v44 }
  0x66   : > { %p4324_p9 = pnand %p4323_p7, %p4319_p5 }
  0x68   : > { %675 = vmatpush.bf16.msra.mxu0 %v3200_v51  ;;  %700 = vmatpush.bf16.msra.mxu2 %v3244_v18 }
  0x69   : > { %689 = vmatpush.bf16.msra.mxu1 %v3204_v52 }
  0x6b   : > { %676 = vmatmul.bf16.vlgmr.msra.gmra.mxu0 %v4614_v53 }
  0x6c   : > { %690 = vmatmul.bf16.vlgmr.msra.gmra.mxu1 %v4614_v53  ;;  %701 = vmatpush.bf16.msra.mxu2 %v3232_v25 }
  0x70   : > { %702 = vmatpush.bf16.msra.mxu2 %v3220_v33 }
  0x74   : > { %703 = vmatpush.bf16.msra.mxu2 %v3208_v37 }
  0x77   : > { %704 = vmatmul.bf16.vlgmr.msra.gmra.mxu2 %v4614_v53 }
  0xe8   : > { %v677_v1 = vpop.f32.mrf.mxu0 }
  0xe9   : > { %v691_v2 = vpop.f32.mrf.mxu1  ;;  %v678_v4 = vadd.f32 %v677_v1, %v534_v61 }
  0xea   : > { %v692_v5 = vadd.f32 %v691_v2, %v535_v62 }
  0xeb   : > { %v726_v10 = vpack.c.bf16 %v678_v4, %v678_v4 }
  0xec   : > { %v728_v8 = vpack.c.bf16 %v692_v5, %v692_v5 }
  0xed   : > { %v837_v19 = vunpack.c.l.b16 %v726_v10 }
  0xee   : > { %v842_v11 = vunpack.c.l.b16 %v728_v8  ;;  %v737_v12 = vsel %vm732_vm0, %v728_v8, 0 }
  0xef   : > { %746 = vmatpush.bf16.xpose.msrb.mxu0 %v737_v12  ;;  %v4630_v26 = vpack.c.b16 %v837_v19, %v837_v19 }
  0xf0   : > { %v4626_v15 = vpack.c.b16 %v842_v11, %v842_v11  ;;  %v679_v16 = vpop.f32.mrf.mxu0 }
  0xf1   : > { %v693_v17 = vpop.f32.mrf.mxu1  ;;  %v680_v23 = vadd.f32 %v679_v16, %v534_v61 }
  0xf2   : > { %v694_v20 = vadd.f32 %v693_v17, %v535_v62  ;;  %844 = vrot.lane.b32.xlu0 %v4626_v15, %s4391_s26 }
  0xf3   : > { %v727_v31 = vpack.c.bf16 %v680_v23, %v680_v23 }
  0xf4   : > { %v729_v24 = vpack.c.bf16 %v694_v20, %v694_v20 }
  0xf5   : > { %v866_v36 = vunpack.c.l.b16 %v727_v31 }
  0xf6   : > { %3293 = vmatmul.msk.bf16.vlgmr.msrb.gmra.mxu0 %vm732_vm0, %v726_v10  ;;  %v756_v27 = vsel %vm732_vm0, %v729_v24, 0  ;;  %v871_v28 = vunpack.c.l.b16 %v729_v24 }
  0xf7   : > { %765 = vmatpush.bf16.xpose.msra.mxu3 %v756_v27  ;;  %v4641_v38 = vpack.c.b16 %v866_v36, %v866_v36 }
  0xf8   : > { %v4634_v32 = vpack.c.b16 %v871_v28, %v871_v28 }
  0xfa   : > { %873 = vrot.lane.b32.xlu1 %v4634_v32, %s4391_s26  ;;  %839 = vrot.lane.b32.xlu0 %v4630_v26, %s4391_s26  ;;  %v705_v52 = vpop.f32.mrf.mxu2 }
  0xfb   : > { %v706_v63 = vadd.f32 %v705_v52, %v536_v60 }
  0xfd   : > { %v730_v1 = vpack.c.bf16 %v706_v63, %v706_v63 }
  0xfe   : > { %3294 = vmatmul.msk.bf16.vlgmr.msra.gmra.mxu3 %vm732_vm0, %v727_v31 }
  0xff   : > { %v919_v3 = vunpack.c.l.b16 %v730_v1  ;;  %v801_v7 = vsel %vm799_vm2, %v730_v1, 0  ;;  %v3814_v1 = vld [vmem:[#allocation7 + $0x8] sm:$0xff] }
 0x100   : > { %810 = vmatpush.bf16.msrb.mxu3 %v801_v7 }
 0x101   : > { %v4657_v5 = vpack.c.b16 %v919_v3, %v919_v3 }
 0x102   : > { %868 = vrot.lane.b32.xlu1 %v4641_v38, %s4391_s26  ;;  %v707_v59 = vpop.f32.mrf.mxu2 }
 0x103   : > { %v708_v8 = vadd.f32 %v707_v59, %v536_v60 }
 0x105   : > { %v731_v9 = vpack.c.bf16 %v708_v8, %v708_v8 }
 0x107   : > { %v820_v10 = vsel %vm799_vm2, %v731_v9, 0 }
 0x108   : > { %829 = vmatpush.bf16.msra.mxu0 %v820_v10 }
 0x164   : > { %v845_v39 = vpop.permute.xlu0 %844 }
 0x165   : > { %v850_v40 = vsel %vm732_vm0, %v845_v39, 0  ;;  %v943_v39 = vunpack.c.l.b16 %v731_v9 }
 0x166   : > { %859 = vmatpush.bf16.xpose.msrb.mxu1 %v850_v40 }
 0x167   : > { %v4678_v40 = vpack.c.b16 %v943_v39, %v943_v39 }
 0x16c   : > { %v874_v41 = vpop.permute.xlu1 %873  ;;  %v840_v42 = vpop.permute.xlu0 %839 }
 0x16d   : > { %3297 = vmatmul.msk.bf16.vlgmr.msrb.gmra.mxu1 %vm732_vm0, %v840_v42  ;;  %v879_v43 = vsel %vm732_vm0, %v874_v41, 0 }
 0x16e   : > { %888 = vmatpush.bf16.xpose.msrb.mxu2 %v879_v43 }
 0x173   : > { %v748_v44 = vpop.f32.mrf.mxu0 }
 0x174   : > { %v869_v45 = vpop.permute.xlu1 %868  ;;  %v772_v46 = vsel %vm771_vm1, %v748_v44, -inf }
 0x175   : > { %3298 = vmatmul.msk.bf16.vlgmr.msrb.gmra.mxu2 %vm732_vm0, %v869_v45  ;;  %773 = vmax.xlane.f32.xlu2 %v772_v46 }
 0x176   : > { %1017 = vmatpush.bf16.msra.mxu2 %v3814_v1 }
 0x17b   : > { %v750_v47 = vpop.f32.mrf.mxu0 }
 0x181   : > { %v4651_v48 = vpop.f32.mrf.mxu3 }
 0x182   : > { %v775_v57 = vsel %vm771_vm1, %v4651_v48, -inf }
 0x189   : > { %v769_v51 = vpop.f32.mrf.mxu3 }
 0x1e8   : > { %v774_v53 = vpop.xlane.xlu2 %773 }
 0x1e9   : > { %v778_v54 = vsub.f32 %v748_v44, %v774_v53  ;;  %v3815_v53 = vld [vmem:[#allocation7 + $0x10] sm:$0xff] }
 0x1ea   : > { %v861_v55 = vpop.f32.mrf.mxu1 }
 0x1eb   : > { %v780_v56 = vmul.f32 1.442695, %v778_v54  ;;  %v894_v58 = vsel %vm771_vm1, %v861_v55, -inf }
 0x1ec   : > { %895 = vmax.xlane.f32.xlu2 %v894_v58 }
 0x1ed   : > { %4036 = vpow2.f32 %v780_v56 }
 0x1f2   : > { %v863_v61 = vpop.f32.mrf.mxu1 }
 0x1f3   : > { %v4037_v62 = vpop.eup %4036 }
 0x1f4   : > { %v784_v0 = vsel %vm771_vm1, %v4037_v62, 0.0 }
 0x1f5   : > { %785 = vadd.xlane.f32.xlu0 %v784_v0 }
 0x1f8   : > { %v890_v2 = vpop.f32.mrf.mxu2 }
 0x1f9   : > { %v897_v4 = vsel %vm771_vm1, %v890_v2, -inf }
 0x1fd   : > { %898 = vmax.xlane.f32.xlu0 %v897_v4 }
 0x200   : > { %v892_v6 = vpop.f32.mrf.mxu2 }
 0x204   : > { %921 = vrot.lane.b32.xlu2 %v4657_v5, %s4391_s26 }
 0x20c   : > { %1027 = vrot.lane.b32.xlu2 %v4626_v15, %s4392_s13 }
 0x214   : > { %1025 = vrot.lane.b32.xlu2 %v4630_v26, %s4392_s13 }
 0x23d   : > { %776 = vmax.xlane.f32.xlu2 %v775_v57  ;;  %v3813_v57 = vld [vmem:[#allocation7] sm:$0xff] }
 0x23e   : > { %1018 = vmatpush.bf16.msra.mxu2 %v3813_v57 }
 0x25f   : > { %v896_v11 = vpop.xlane.xlu2 %895 }
 0x260   : > { %v900_v12 = vsub.f32 %v861_v55, %v896_v11 }
 0x262   : > { %v902_v13 = vmul.f32 1.442695, %v900_v12 }
 0x264   : > { %4038 = vpow2.f32 %v902_v13 }
 0x267   : > { %v922_v14 = vpop.permute.xlu2 %921 }
 0x268   : > { %v927_v16 = vsel %vm799_vm2, %v922_v14, 0  ;;  %v786_v17 = vpop.xlane.xlu0 %785 }
 0x269   : > { %4040 = vrcp.f32 %v786_v17  ;;  %936 = vmatpush.bf16.msra.mxu3 %v927_v16 }
 0x26a   : > { %v4039_v18 = vpop.eup %4038 }
 0x26b   : > { %v906_v19 = vsel %vm771_vm1, %v4039_v18, 0.0 }
 0x26c   : > { %907 = vadd.xlane.f32.xlu1 %v906_v19 }
 0x26f   : > { %v4041_v20 = vpop.eup %4040  ;;  %v1028_v23 = vpop.permute.xlu2 %1027 }
 0x270   : > { %v792_v21 = vmul.f32 %v4041_v20, %v4037_v62  ;;  %v899_v22 = vpop.xlane.xlu0 %898  ;;  %v1033_v28 = vsel %vm732_vm0, %v1028_v23, 0 }
 0x271   : > { %v901_v24 = vsub.f32 %v890_v2, %v899_v22 }
 0x272   : > { %v794_v25 = vpack.c.bf16 %v792_v21, %v792_v21 }
 0x273   : > { %v904_v27 = vmul.f32 1.442695, %v901_v24 }
 0x274   : > { %3295 = vmatmul.msk.bf16.vlgmr.msrb.gmra.mxu3 %vm771_vm1, %v794_v25 }
 0x275   : > { %4042 = vpow2.f32 %v904_v27  ;;  %1042 = vmatpush.bf16.xpose.msrb.mxu3 %v1033_v28 }
 0x277   : > { %v1026_v31 = vpop.permute.xlu2 %1025 }
 0x27b   : > { %v4043_v29 = vpop.eup %4042 }
 0x27c   : > { %v909_v30 = vsel %vm771_vm1, %v4043_v29, 0.0 }
 0x27d   : > { %910 = vadd.xlane.f32.xlu0 %v909_v30 }
 0x291   : > { %1050 = vrot.lane.b32.xlu0 %v4634_v32, %s4392_s13 }
 0x2b0   : > { %v777_v33 = vpop.xlane.xlu2 %776 }
 0x2b1   : > { %v779_v34 = vsub.f32 %v4651_v48, %v777_v33  ;;  %v3816_v48 = vld [vmem:[#allocation7 + $0x18] sm:$0xff] }
 0x2b2   : > { %988 = vmatpush.bf16.msra.mxu1 %v3816_v48 }
 0x2b3   : > { %v782_v35 = vmul.f32 1.442695, %v779_v34 }
 0x2b5   : > { %4044 = vpow2.f32 %v782_v35 }
 0x2b6   : > { %989 = vmatpush.bf16.msra.mxu1 %v3815_v53 }
 0x2bb   : > { %v4045_v36 = vpop.eup %4044 }
 0x2bc   : > { %v787_v37 = vsel %vm771_vm1, %v4045_v36, 0.0 }
 0x2bd   : > { %788 = vadd.xlane.f32.xlu1 %v787_v37 }
 0x2d6   : > { %945 = vrot.lane.b32.xlu1 %v4678_v40, %s4391_s26 }
 0x2de   : > { %1048 = vrot.lane.b32.xlu1 %v4641_v38, %s4392_s13 }
 0x2df   : > { %v908_v41 = vpop.xlane.xlu1 %907 }
 0x2e0   : > { %4046 = vrcp.f32 %v908_v41 }
 0x2e6   : > { %v4047_v42 = vpop.eup %4046  ;;  %1095 = vrot.lane.b32.xlu1 %v4657_v5, %s4392_s13 }
 0x2e7   : > { %v914_v43 = vmul.f32 %v4047_v42, %v4039_v18 }
 0x2e9   : > { %v916_v44 = vpack.c.bf16 %v914_v43, %v914_v43 }
 0x2eb   : > { %3299 = vmatmul.msk.bf16.vlgmr.msra.gmra.mxu3 %vm771_vm1, %v916_v44 }
 0x2ee   : > { %1194 = vrot.lane.b32.xlu1 %v4634_v32, %s4393_s21 }
 0x2f0   : > { %v911_v32 = vpop.xlane.xlu0 %910 }
 0x2f6   : > { %1169 = vrot.lane.b32.xlu1 %v4630_v26, %s4393_s21 }
 0x2f7   : > { %v812_v45 = vpop.f32.mrf.mxu3 }
 0x2fb   : > { %3319 = vmatmul.msk.bf16.vlgmr.msrb.gmra.mxu3 %vm732_vm0, %v1026_v31 }
 0x2fe   : > { %1192 = vrot.lane.b32.xlu1 %v4641_v38, %s4393_s21 }
 0x2ff   : > { %v814_v46 = vpop.f32.mrf.mxu3 }
 0x303   : > { %v1051_v56 = vpop.permute.xlu0 %1050 }
 0x304   : > { %v1056_v59 = vsel %vm732_vm0, %v1051_v56, 0 }
 0x330   : > { %v789_v47 = vpop.xlane.xlu1 %788 }
 0x331   : > { %4048 = vrcp.f32 %v789_v47 }
 0x332   : > { %4050 = vrcp.f32 %v911_v32 }
 0x337   : > { %v4049_v51 = vpop.eup %4048 }
 0x338   : > { %v793_v52 = vmul.f32 %v4049_v51, %v4045_v36  ;;  %v4051_v26 = vpop.eup %4050 }
 0x339   : > { %v915_v55 = vmul.f32 %v4051_v26, %v4043_v29 }
 0x33a   : > { %v795_v54 = vpack.c.bf16 %v793_v52, %v793_v52 }
 0x33b   : > { %v917_v60 = vpack.c.bf16 %v915_v55, %v915_v55 }
 0x33c   : > { %3296 = vmatmul.msk.bf16.vlgmr.msra.gmra.mxu0 %vm771_vm1, %v795_v54 }
 0x348   : > { %v946_v58 = vpop.permute.xlu1 %945 }
 0x349   : > { %v951_v38 = vsel %vm799_vm2, %v946_v58, 0 }
 0x34a   : > { %960 = vmatpush.bf16.msrb.mxu0 %v951_v38 }
 0x34d   : > { %3300 = vmatmul.msk.bf16.vlgmr.msrb.gmra.mxu0 %vm771_vm1, %v917_v60 }
 0x34e   : > { %1065 = vmatpush.bf16.xpose.msra.mxu0 %v1056_v59 }
 0x350   : > { %v1049_v61 = vpop.permute.xlu1 %1048 }
 0x358   : > { %v1096_v62 = vpop.permute.xlu1 %1095 }
 0x359   : > { %v1101_v63 = vsel %vm799_vm2, %v1096_v62, 0 }
 0x35a   : > { %1110 = vmatpush.bf16.msrb.mxu1 %v1101_v63 }
 0x35d   : > { %3320 = vmatmul.msk.bf16.vlgmr.msra.gmra.mxu0 %vm732_vm0, %v1049_v61 }
 0x360   : > { %v1195_v10 = vpop.permute.xlu1 %1194 }
 0x361   : > { %v1200_v13 = vsel %vm732_vm0, %v1195_v10, 0 }
 0x368   : > { %v1170_v37 = vpop.permute.xlu1 %1169 }
 0x36e   : > { %v938_v0 = vpop.f32.mrf.mxu3 }
 0x376   : > { %v940_v2 = vpop.f32.mrf.mxu3 }
 0x377   : > { %v3818_v2 = vld [vmem:[#allocation7 + $0x28] sm:$0xff] }
 0x378   : > { %1159 = vmatpush.bf16.msra.mxu3 %v3818_v2  ;;  %v3834_v2 = vld [vmem:[#allocation8 + $0x64] sm:$0xf0] }
 0x37e   : > { %v1044_v3 = vpop.f32.mrf.mxu3 }
 0x37f   : > { %v1071_v4 = vsel %vm771_vm1, %v1044_v3, -inf }
 0x380   : > { %1072 = vmax.xlane.f32.xlu0 %v1071_v4 }
 0x386   : > { %v1046_v6 = vpop.f32.mrf.mxu3 }
 0x387   : > { %v3817_v6 = vld [vmem:[#allocation7 + $0x20] sm:$0xff] }
 0x388   : > { %1160 = vmatpush.bf16.msra.mxu3 %v3817_v6  ;;  %v3397_v6 = vld [vmem:[#allocation8 + $0x68] sm:$0xf0] }
 0x394   : > { %1116 = vrot.lane.b32.xlu0 %v4678_v40, %s4392_s13 }
 0x3b9   : > { %v831_v7 = vpop.f32.mrf.mxu0 }
 0x3ba   : > { %v835_v8 = vpack.c.bf16 %v831_v7, %v812_v45 }
 0x3bc   : > { %3318 = vmatmul.msk.bf16.vlgmr.msra.gmra.mxu2 %vm732_vm0, %v835_v8 }
 0x3c1   : > { %v833_v9 = vpop.f32.mrf.mxu0 }
 0x3ca   : > { %v962_v11 = vpop.f32.mrf.mxu0 }
 0x3cb   : > { %v966_v12 = vpack.c.bf16 %v962_v11, %v938_v0 }
 0x3cd   : > { %3309 = vmatmul.msk.bf16.vlgmr.msra.gmra.mxu1 %vm732_vm0, %v966_v12 }
 0x3ce   : > { %1209 = vmatpush.bf16.xpose.msra.mxu1 %v1200_v13 }
 0x3d2   : > { %v964_v14 = vpop.f32.mrf.mxu0 }
 0x3da   : > { %v1067_v16 = vpop.f32.mrf.mxu0 }
 0x3db   : > { %v1074_v25 = vsel %vm771_vm1, %v1067_v16, -inf }
 0x3e2   : > { %v1069_v17 = vpop.f32.mrf.mxu0 }
 0x3f3   : > { %v1073_v18 = vpop.xlane.xlu0 %1072 }
 0x3f4   : > { %v1077_v19 = vsub.f32 %v1044_v3, %v1073_v18 }
 0x3f6   : > { %v1079_v20 = vmul.f32 1.442695, %v1077_v19 }
 0x3f8   : > { %4052 = vpow2.f32 %v1079_v20 }
 0x3fe   : > { %v4053_v21 = vpop.eup %4052 }
 0x3ff   : > { %v1083_v22 = vsel %vm771_vm1, %v4053_v21, 0.0 }
 0x400   : > { %1084 = vadd.xlane.f32.xlu2 %v1083_v22 }
 0x406   : > { %v1117_v23 = vpop.permute.xlu0 %1116 }
 0x407   : > { %v1122_v24 = vsel %vm799_vm2, %v1117_v23, 0  ;;  %v3820_v23 = vld [vmem:[#allocation7 + $0x38] sm:$0xff] }
 0x408   : > { %1131 = vmatpush.bf16.msrb.mxu2 %v1122_v24  ;;  %v3819_v24 = vld [vmem:[#allocation7 + $0x30] sm:$0xff] }
 0x418   : > { %1171 = vrot.lane.b32.xlu2 %v4626_v15, %s4393_s21  ;;  %v1193_v15 = vpop.permute.xlu1 %1192 }
 0x43f   : > { %v1020_v27 = vpop.f32.mrf.mxu2 }
 0x441   : > { %1075 = vmax.xlane.f32.xlu2 %v1074_v25 }
 0x447   : > { %v1022_v57 = vpop.f32.mrf.mxu2 }
 0x44a   : > { %v991_v28 = vpop.f32.mrf.mxu1 }
 0x44b   : > { %v4711_v29 = vadd.f32 %v1020_v27, %v991_v28 }
 0x452   : > { %v4718_v45 = vpop.f32.mrf.mxu1 }
 0x473   : > { %v1085_v30 = vpop.xlane.xlu2 %1084 }
 0x474   : > { %4054 = vrcp.f32 %v1085_v30 }
 0x47a   : > { %v4055_v31 = vpop.eup %4054 }
 0x47b   : > { %v1091_v33 = vmul.f32 %v4055_v31, %v4053_v21  ;;  %v1172_v34 = vpop.permute.xlu2 %1171 }
 0x47c   : > { %v1177_v35 = vsel %vm732_vm0, %v1172_v34, 0  ;;  %v4739_v34 = vld [vmem:[%s4969_s8] sm:$0x3f] }
 0x47d   : > { %v1093_v36 = vpack.c.bf16 %v1091_v33, %v1091_v33  ;;  %1186 = vmatpush.bf16.xpose.msrb.mxu0 %v1177_v35  ;;  %v1313_v35 = vperm.slane %v4739_v34, 0 }
 0x47f   : > { %3321 = vmatmul.msk.bf16.vlgmr.msrb.gmra.mxu1 %vm771_vm1, %v1093_v36 }
 0x484   : > { %3332 = vmatmul.msk.bf16.vlgmr.msrb.gmra.mxu0 %vm732_vm0, %v1170_v37 }
 0x485   : > { %1303 = vmatpush.bf16.msra.mxu0 %v3820_v23 }
 0x489   : > { %1304 = vmatpush.bf16.msra.mxu0 %v3819_v24  ;;  %v3363_v24 = vld [vmem:[#allocation8 + $0x20] sm:$0xf] }
 0x48f   : > { %3333 = vmatmul.msk.bf16.vlgmr.msra.gmra.mxu1 %vm732_vm0, %v1193_v15  ;;  %v1023_v15 = vadd.f32 %v1022_v57, %v4718_v45 }
 0x4b4   : > { %v1076_v39 = vpop.xlane.xlu2 %1075 }
 0x4b5   : > { %v1078_v41 = vsub.f32 %v1067_v16, %v1076_v39 }
 0x4b7   : > { %v1081_v42 = vmul.f32 1.442695, %v1078_v41 }
 0x4b9   : > { %4056 = vpow2.f32 %v1081_v42 }
 0x4bf   : > { %v4057_v43 = vpop.eup %4056 }
 0x4c0   : > { %v1086_v44 = vsel %vm771_vm1, %v4057_v43, 0.0 }
 0x4c1   : > { %1087 = vadd.xlane.f32.xlu1 %v1086_v44 }
 0x4fc   : > { %v1112_v46 = vpop.f32.mrf.mxu1 }
 0x501   : > { %v1188_v47 = vpop.f32.mrf.mxu0 }
 0x502   : > { %v1215_v48 = vsel %vm771_vm1, %v1188_v47, -inf }
 0x503   : > { %1216 = vmax.xlane.f32.xlu0 %v1215_v48 }
 0x504   : > { %v1114_v51 = vpop.f32.mrf.mxu1 }
 0x509   : > { %v1190_v52 = vpop.f32.mrf.mxu0 }
 0x50c   : > { %v1211_v53 = vpop.f32.mrf.mxu1 }
 0x50d   : > { %v1218_v54 = vsel %vm771_vm1, %v1211_v53, -inf }
 0x50e   : > { %1219 = vmax.xlane.f32.xlu2 %v1218_v54 }
 0x514   : > { %v1213_v32 = vpop.f32.mrf.mxu1 }
 0x534   : > { %v1088_v26 = vpop.xlane.xlu1 %1087 }
 0x535   : > { %4058 = vrcp.f32 %v1088_v26 }
 0x53b   : > { %v4059_v55 = vpop.eup %4058 }
 0x53c   : > { %v1092_v56 = vmul.f32 %v4059_v55, %v4057_v43 }
 0x53e   : > { %v1094_v58 = vpack.c.bf16 %v1092_v56, %v1092_v56 }
 0x540   : > { %3322 = vmatmul.msk.bf16.vlgmr.msrb.gmra.mxu2 %vm771_vm1, %v1094_v58 }
 0x576   : > { %v1217_v38 = vpop.xlane.xlu0 %1216 }
 0x577   : > { %v1221_v59 = vsub.f32 %v1188_v47, %v1217_v38  ;;  %v4394_v47 = vmov 128.0  }
 0x579   : > { %v1223_v60 = vmul.f32 1.442695, %v1221_v59  ;;  %v3403_v59 = vld [vmem:[#allocation8 + $0x70] sm:$0xf] }
 0x57b   : > { %4060 = vpow2.f32 %v1223_v60  ;;  %v3836_v60 = vld [vmem:[#allocation8 + $0x74] sm:$0xf0] }
 0x581   : > { %v4061_v61 = vpop.eup %4060  ;;  %v1220_v62 = vpop.xlane.xlu2 %1219 }
 0x582   : > { %v1222_v63 = vsub.f32 %v1211_v53, %v1220_v62  ;;  %v1227_v0 = vsel %vm771_vm1, %v4061_v61, 0.0  ;;  %v3404_v62 = vor.u32 %v3836_v60, %v3403_v59  ;;  %v3842_v59 = vld [vmem:[#allocation10 + $0x28] sm:$0xff] }
 0x583   : > { %1228 = vadd.xlane.f32.xlu1 %v1227_v0  ;;  %v3850_v60 = vld [vmem:[#allocation10 + $0x68] sm:$0xff] }
 0x584   : > { %v1225_v1 = vmul.f32 1.442695, %v1222_v63  ;;  %v3405_v63 = vld [vmem:[#allocation8 + $0x78] sm:$0xf0]  ;;  %1474 = vmatpush.bf16.msrb.mxu1 %v3404_v62 }
 0x586   : > { %4062 = vpow2.f32 %v1225_v1  ;;  %v3395_v1 = vld [vmem:[#allocation8 + $0x60] sm:$0xf] }
 0x58c   : > { %v4063_v3 = vpop.eup %4062 }
 0x58d   : > { %v1230_v4 = vsel %vm771_vm1, %v4063_v3, 0.0 }
 0x58e   : > { %1231 = vadd.xlane.f32.xlu2 %v1230_v4  ;;  %v3396_v4 = vor.u32 %v3834_v2, %v3395_v1 }
 0x590   : > { %1475 = vmatpush.bf16.msrb.mxu1 %v3396_v4 }
 0x59c   : > { %1239 = vrot.lane.b32.xlu1 %v4657_v5, %s4393_s21 }
 0x5a6   : > { %1260 = vrot.lane.b32.xlu2 %v4678_v40, %s4393_s21 }
 0x5c3   : > { %v1133_v7 = vpop.f32.mrf.mxu2 }
 0x5c4   : > { %v1137_v8 = vpack.c.bf16 %v1133_v7, %v1112_v46  ;;  %v3387_v7 = vld [vmem:[#allocation8 + $0x50] sm:$0xf] }
 0x5c6   : > { %3331 = vmatmul.msk.bf16.vlgmr.msra.gmra.mxu3 %vm732_vm0, %v1137_v8  ;;  %v3832_v8 = vld [vmem:[#allocation8 + $0x54] sm:$0xf0] }
 0x5cb   : > { %v1135_v9 = vpop.f32.mrf.mxu2 }
 0x5cc   : > { %v3831_v9 = vld [vmem:[#allocation8 + $0x54] sm:$0xf] }
 0x5f6   : > { %v1229_v10 = vpop.xlane.xlu1 %1228 }
 0x601   : > { %v1232_v11 = vpop.xlane.xlu2 %1231 }
 0x602   : > { %4064 = vrcp.f32 %v1232_v11  ;;  %v3389_v11 = vld [vmem:[#allocation8 + $0x58] sm:$0xf0] }
 0x603   : > { %4066 = vrcp.f32 %v1229_v10  ;;  %v3388_v10 = vor.u32 %v3832_v8, %v3387_v7 }
 0x604   : > { %4068 = vrcp.f32 %v4394_v47 }
 0x605   : > { %1476 = vmatpush.bf16.msrb.mxu1 %v3388_v10 }
 0x608   : > { %v4065_v12 = vpop.eup %4064 }
 0x609   : > { %v1236_v13 = vmul.f32 %v4065_v12, %v4063_v3  ;;  %v1261_v14 = vpop.permute.xlu2 %1260  ;;  %v4067_v16 = vpop.eup %4066  ;;  %v3833_v3 = vld [vmem:[#allocation8 + $0x64] sm:$0xf]  ;;  %v3392_v12 = vor.u32 %v3831_v9, %v3389_v11  ;;  %v1365_v9 = vperm.slane %v4739_v34, 1 }
 0x60a   : > { %v1266_v5 = vsel %vm799_vm2, %v1261_v14, 0  ;;  %v1235_v18 = vmul.f32 %v4067_v16, %v4061_v61  ;;  %v4069_v48 = vpop.eup %4068  ;;  %v3835_v61 = vld [vmem:[#allocation8 + $0x74] sm:$0xf]  ;;  %v3400_v57 = vor.u32 %v3833_v3, %v3397_v6  ;;  %v3830_v14 = vld [vmem:[#allocation8 + $0x44] sm:$0xf0] }
 0x60b   : > { %v1238_v17 = vpack.c.bf16 %v1236_v13, %v1236_v13  ;;  %1275 = vmatpush.bf16.msrb.mxu3 %v1266_v5  ;;  %v1323_v51 = vmul.f32 128.0, %v4069_v48  ;;  %vm1327_vm3 = vweird.f32 %v4069_v48  ;;  %v3408_v0 = vor.u32 %v3835_v61, %v3405_v63  ;;  %v3379_v13 = vld [vmem:[#allocation8 + $0x40] sm:$0xf]  ;;  %v3829_v16 = vld [vmem:[#allocation8 + $0x44] sm:$0xf] }
 0x60c   : > { %v1237_v20 = vpack.c.bf16 %v1235_v18, %v1235_v18  ;;  %v3380_v5 = vor.u32 %v3830_v14, %v3379_v13  ;;  %v3841_v63 = vld [vmem:[#allocation10 + $0x20] sm:$0xff]  ;;  %v1368_v14 = vperm.slane %v4739_v34, 2 }
 0x60d   : > { %v1324_v52 = vsub.f32 1.0, %v1323_v51 }
 0x60e   : > { %3335 = vmatmul.msk.bf16.vlgmr.msrb.gmra.mxu3 %vm771_vm1, %v1238_v17  ;;  %v1240_v40 = vpop.permute.xlu1 %1239  ;;  %v3381_v17 = vld [vmem:[#allocation8 + $0x48] sm:$0xf0]  ;;  %1477 = vmatpush.bf16.msrb.mxu1 %v3380_v5 }
 0x60f   : > { %v1245_v19 = vsel %vm799_vm2, %v1240_v40, 0  ;;  %v1325_v53 = vmul.f32 %v4069_v48, %v1324_v52  ;;  %v3384_v18 = vor.u32 %v3829_v16, %v3381_v17  ;;  %v3371_v40 = vld [vmem:[#allocation8 + $0x30] sm:$0xf]  ;;  %v3844_v52 = vld [vmem:[#allocation10 + $0x38] sm:$0xff] }
 0x610   : > { %1254 = vmatpush.bf16.msra.mxu2 %v1245_v19  ;;  %v3828_v19 = vld [vmem:[#allocation8 + $0x34] sm:$0xf0]  ;;  %1637 = vmatpush.bf16.msra.mxu3 %v3844_v52 }
 0x611   : > { %v1326_v54 = vadd.f32 %v4069_v48, %v1325_v53  ;;  %v3852_v53 = vld [vmem:[#allocation10 + $0x78] sm:$0xff] }
 0x612   : > { %1651 = vmatpush.bf16.msrb.mxu0 %v3852_v53 }
 0x613   : > { %3334 = vmatmul.msk.bf16.vlgmr.msra.gmra.mxu2 %vm771_vm1, %v1237_v20  ;;  %v4745_v32 = vsel %vm1327_vm3, %v4069_v48, %v1326_v54  ;;  %v3827_v20 = vld [vmem:[#allocation8 + $0x34] sm:$0xf] }
 0x614   : > { %1488 = vmatpush.bf16.msrb.mxu2 %v3408_v0 }
 0x618   : > { %1489 = vmatpush.bf16.msrb.mxu2 %v3400_v57 }
 0x61c   : > { %1490 = vmatpush.bf16.msrb.mxu2 %v3392_v12 }
 0x620   : > { %1491 = vmatpush.bf16.msrb.mxu2 %v3384_v18 }
 0x649   : > { %v1162_v21 = vpop.f32.mrf.mxu3 }
 0x64a   : > { %v1167_v22 = vadd.f32 %v1162_v21, %v4711_v29  ;;  %v3372_v21 = vor.u32 %v3828_v19, %v3371_v40  ;;  %v3840_v40 = vld [vmem:[#allocation10 + $0x18] sm:$0xff]  ;;  %v3839_v19 = vld [vmem:[#allocation10 + $0x10] sm:$0xff] }
 0x64c   : > { %1478 = vmatpush.bf16.msrb.mxu1 %v3372_v21  ;;  %v3838_v21 = vld [vmem:[#allocation10 + $0x8] sm:$0xff] }
 0x651   : > { %v1164_v25 = vpop.f32.mrf.mxu3 }
 0x652   : > { %v1168_v41 = vadd.f32 %v1164_v25, %v1023_v15  ;;  %v3826_v25 = vld [vmem:[#allocation8 + $0x24] sm:$0xf0]  ;;  %v3347_v15 = vld [vmem:[#allocation8] sm:$0xf] }
 0x691   : > { %v1277_v27 = vpop.f32.mrf.mxu3 }
 0x696   : > { %v1256_v28 = vpop.f32.mrf.mxu2 }
 0x697   : > { %v1281_v30 = vpack.c.bf16 %v1277_v27, %v1256_v28  ;;  %v3825_v27 = vld [vmem:[#allocation8 + $0x24] sm:$0xf]  ;;  %v3364_v28 = vor.u32 %v3826_v25, %v3363_v24  ;;  %v1388_v25 = vld [vmem:[%s4967_s6] sm:$0x3] }
 0x698   : > { %v3845_v24 = vld [vmem:[#allocation10 + $0x40] sm:$0xff] }
 0x699   : > { %v1279_v31 = vpop.f32.mrf.mxu3  ;;  %3344 = vmatmul.msk.bf16.vlgmr.msra.gmra.mxu0 %vm732_vm0, %v1281_v30  ;;  %v3365_v30 = vld [vmem:[#allocation8 + $0x28] sm:$0xf0]  ;;  %1479 = vmatpush.bf16.msrb.mxu1 %v3364_v28  ;;  %v1390_v28 = vperm.slane %v1388_v25, 0 }
 0x69a   : > { %v3368_v31 = vor.u32 %v3825_v27, %v3365_v30 }
 0x69e   : > { %v1258_v33 = vpop.f32.mrf.mxu2 }
 0x69f   : > { %v3355_v33 = vld [vmem:[#allocation8 + $0x10] sm:$0xf] }
 0x716   : > { %v1306_v29 = vpop.f32.mrf.mxu0 }
 0x717   : > { %v1311_v36 = vadd.f32 %v1306_v29, %v1167_v22  ;;  %v3373_v22 = vld [vmem:[#allocation8 + $0x38] sm:$0xf0]  ;;  %v3823_v29 = vld [vmem:[#allocation8 + $0x14] sm:$0xf] }
 0x718   : > { %v3376_v23 = vor.u32 %v3827_v20, %v3373_v22  ;;  %v3848_v20 = vld [vmem:[#allocation10 + $0x58] sm:$0xff]  ;;  %v3837_v22 = vld [vmem:[#allocation10] sm:$0xff] }
 0x719   : > { %v1314_v37 = vadd.f32 %v1313_v35, %v1311_v36 }
 0x71a   : > { %1492 = vmatpush.bf16.msrb.mxu2 %v3376_v23  ;;  %v3846_v23 = vld [vmem:[#allocation10 + $0x48] sm:$0xff] }
 0x71b   : > { %v1316_v39 = vadd.f32 %v1314_v37, %v4608_v49  ;;  %v3357_v37 = vld [vmem:[#allocation8 + $0x18] sm:$0xf0] }
 0x71d   : > { %1318 = vadd.xlane.f32.xlu0 %v1316_v39 }
 0x71e   : > { %v1308_v42 = vpop.f32.mrf.mxu0  ;;  %1493 = vmatpush.bf16.msrb.mxu2 %v3368_v31 }
 0x71f   : > { %v1312_v43 = vadd.f32 %v1308_v42, %v1168_v41  ;;  %v3360_v42 = vor.u32 %v3823_v29, %v3357_v37 }
 0x721   : > { %v1315_v44 = vadd.f32 %v1313_v35, %v1312_v43  ;;  %v3824_v35 = vld [vmem:[#allocation8 + $0x14] sm:$0xf0]  ;;  %v3821_v43 = vld [vmem:[#allocation8 + $0x4] sm:$0xf] }
 0x722   : > { %v3356_v36 = vor.u32 %v3824_v35, %v3355_v33  ;;  %1494 = vmatpush.bf16.msrb.mxu2 %v3360_v42  ;;  %v1391_v35 = vperm.slane %v1388_v25, 1 }
 0x723   : > { %v1317_v46 = vadd.f32 %v1315_v44, %v4610_v50  ;;  %v3349_v44 = vld [vmem:[#allocation8 + $0x8] sm:$0xf0] }
 0x724   : > { %1480 = vmatpush.bf16.msrb.mxu1 %v3356_v36  ;;  %v3352_v48 = vor.u32 %v3821_v43, %v3349_v44 }
 0x725   : > { %1320 = vadd.xlane.f32.xlu0 %v1317_v46 }
 0x726   : > { %1495 = vmatpush.bf16.msrb.mxu2 %v3352_v48 }
 0x790   : > { %v1319_v45 = vpop.xlane.xlu0 %1318 }
 0x791   : > { %v1329_v49 = vmul.f32 %v4745_v32, %v1319_v45 }
 0x793   : > { %v4748_v26 = vsub.f32 %v1316_v39, %v1329_v49  ;;  %v3822_v39 = vld [vmem:[#allocation8 + $0x4] sm:$0xf0]  ;;  %v3843_v49 = vld [vmem:[#allocation10 + $0x30] sm:$0xff] }
 0x794   : > { %v3348_v47 = vor.u32 %v3822_v39, %v3347_v15  ;;  %1638 = vmatpush.bf16.msra.mxu3 %v3843_v49 }
 0x795   : > { %v1333_v55 = vmul.f32 %v4748_v26, %v4748_v26 }
 0x796   : > { %1481 = vmatpush.bf16.msrb.mxu1 %v3348_v47  ;;  %v1540_v47 = vperm.slane %v4739_v34, 3 }
 0x797   : > { %1335 = vadd.xlane.f32.xlu1 %v1333_v55  ;;  %v3851_v55 = vld [vmem:[#allocation10 + $0x70] sm:$0xff] }
 0x798   : > { %v1321_v50 = vpop.xlane.xlu0 %1320  ;;  %1652 = vmatpush.bf16.msrb.mxu0 %v3851_v55  ;;  %1639 = vmatpush.bf16.msra.mxu3 %v3842_v59 }
 0x799   : > { %v1330_v56 = vmul.f32 %v4745_v32, %v1321_v50 }
 0x79b   : > { %v4753_v58 = vsub.f32 %v1317_v46, %v1330_v56 }
 0x79c   : > { %1653 = vmatpush.bf16.msrb.mxu0 %v3850_v60  ;;  %1640 = vmatpush.bf16.msra.mxu3 %v3841_v63 }
 0x79d   : > { %v1334_v38 = vmul.f32 %v4753_v58, %v4753_v58 }
 0x79f   : > { %1337 = vadd.xlane.f32.xlu2 %v1334_v38 }
 0x7a0   : > { %1641 = vmatpush.bf16.msra.mxu3 %v3840_v40 }
 0x7a4   : > { %1642 = vmatpush.bf16.msra.mxu3 %v3839_v19  ;;  %v3869_v19 = vld [vmem:[#allocation5 + $0x140] sm:$0xf0] }
 0x7a8   : > { %1643 = vmatpush.bf16.msra.mxu3 %v3838_v21 }
 0x7ac   : > { %1644 = vmatpush.bf16.msra.mxu3 %v3837_v22  ;;  %v3545_v22 = vld [vmem:[#allocation5 + $0x140] sm:$0xf] }
 0x80a   : > { %v1336_v41 = vpop.xlane.xlu1 %1335 }
 0x80b   : > { %v1339_v46 = vmul.f32 %v1336_v41, %v4745_v32 }
 0x80d   : > { %v1341_v51 = vadd.f32 1e-05, %v1339_v46 }
 0x80f   : > { %4070 = vrsqrt.f32 %v1341_v51  ;;  %vm1349_vm5 = vweird.f32 %v1341_v51 }
 0x812   : > { %v1338_v54 = vpop.xlane.xlu2 %1337 }
 0x813   : > { %v1340_v45 = vmul.f32 %v1338_v54, %v4745_v32 }
 0x815   : > { %v4071_v50 = vpop.eup %4070  ;;  %v1342_v56 = vadd.f32 1e-05, %v1340_v45 }
 0x816   : > { %v1344_v38 = vmul.f32 %v4071_v50, %v1341_v51  ;;  %vm1350_vm4 = vweird.f32 %v4071_v50 }
 0x817   : > { %4072 = vrsqrt.f32 %v1342_v56  ;;  %vm1351_vm6 = vmor %vm1349_vm5, %vm1350_vm4  ;;  %vm1359_vm8 = vweird.f32 %v1342_v56 }
 0x818   : > { %v1345_v61 = vmul.f32 %v4071_v50, %v1344_v38 }
 0x81a   : > { %v1346_v62 = vmul.f32 0.5, %v1345_v61 }
 0x81c   : > { %v1347_v0 = vsub.f32 1.5, %v1346_v62 }
 0x81d   : > { %v4073_v1 = vpop.eup %4072 }
 0x81e   : > { %v1348_v2 = vmul.f32 %v4071_v50, %v1347_v0  ;;  %v1354_v3 = vmul.f32 %v4073_v1, %v1342_v56  ;;  %vm1360_vm7 = vweird.f32 %v4073_v1 }
 0x81f   : > { %vm1361_vm9 = vmor %vm1359_vm8, %vm1360_vm7 }
 0x820   : > { %v1355_v4 = vmul.f32 %v4073_v1, %v1354_v3  ;;  %v1352_v6 = vsel %vm1351_vm6, %v4071_v50, %v1348_v2  ;;  %v3561_v2 = vld [vmem:[#allocation5 + $0x168] sm:$0xf]  ;;  %v3875_v3 = vld [vmem:[#allocation5 + $0x170] sm:$0xf0] }
 0x821   : > { %v1363_v8 = vmul.f32 %v1352_v6, %v4748_v26  ;;  %v3849_v26 = vld [vmem:[#allocation10 + $0x60] sm:$0xff]  ;;  %v3562_v6 = vor.u32 %v3875_v3, %v3561_v2  ;;  %v3858_v2 = vld [vmem:[#allocation5 + $0xe8] sm:$0xf0] }
 0x822   : > { %v1356_v57 = vmul.f32 0.5, %v1355_v4  ;;  %1654 = vmatpush.bf16.msrb.mxu0 %v3849_v26  ;;  %v3874_v4 = vld [vmem:[#allocation5 + $0x16c] sm:$0xf]  ;;  %v3537_v26 = vld [vmem:[#allocation5 + $0x138] sm:$0xf] }
 0x823   : > { %v1366_v13 = vmul.f32 %v1365_v9, %v1363_v8  ;;  %v3876_v8 = vld [vmem:[#allocation5 + $0x178] sm:$0xf0]  ;;  %1886 = vmatpush.bf16.msra.mxu1 %v3562_v6  ;;  %v3538_v21 = vor.u32 %v3869_v19, %v3537_v26 }
 0x824   : > { %v1357_v7 = vsub.f32 1.5, %v1356_v57  ;;  %v3563_v57 = vld [vmem:[#allocation5 + $0x174] sm:$0xf0] }
 0x825   : > { %v1369_v5 = vadd.f32 %v1368_v14, %v1366_v13  ;;  %v3871_v13 = vld [vmem:[#allocation5 + $0x154] sm:$0xf] }
 0x826   : > { %v1358_v10 = vmul.f32 %v4073_v1, %v1357_v7  ;;  %1655 = vmatpush.bf16.msrb.mxu0 %v3848_v20  ;;  %v3569_v7 = vld [vmem:[#allocation5 + $0x170] sm:$0xf]  ;;  %v3868_v20 = vld [vmem:[#allocation5 + $0x13c] sm:$0xf] }
 0x828   : > { %v1362_v11 = vsel %vm1361_vm9, %v4073_v1, %v1358_v10  ;;  %v3570_v10 = vor.u32 %v3876_v8, %v3569_v7  ;;  %v3854_v7 = vld [vmem:[#allocation5 + $0xc8] sm:$0xf0]  ;;  %v3853_v8 = vld [vmem:[#allocation5 + $0xc4] sm:$0xf] }
 0x829   : > { %v1364_v12 = vmul.f32 %v1362_v11, %v4753_v58  ;;  %v3847_v58 = vld [vmem:[#allocation10 + $0x50] sm:$0xff] }
 0x82a   : > { %1656 = vmatpush.bf16.msrb.mxu0 %v3847_v58  ;;  %1914 = vmatpush.bf16.msrb.mxu3 %v3570_v10  ;;  %v3549_v11 = vld [vmem:[#allocation5 + $0x150] sm:$0xf]  ;;  %v3539_v58 = vld [vmem:[#allocation5 + $0x144] sm:$0xf0] }
 0x82b   : > { %v1367_v16 = vmul.f32 %v1365_v9, %v1364_v12  ;;  %v3566_v9 = vor.u32 %v3874_v4, %v3563_v57  ;;  %v3872_v12 = vld [vmem:[#allocation5 + $0x158] sm:$0xf0]  ;;  %v3477_v57 = vld [vmem:[#allocation5 + $0xc0] sm:$0xf] }
 0x82c   : > { %v3478_v10 = vor.u32 %v3854_v7, %v3477_v57 }
 0x82d   : > { %v1370_v17 = vadd.f32 %v1368_v14, %v1367_v16  ;;  %1900 = vmatpush.bf16.msra.mxu2 %v3566_v9  ;;  %v3550_v14 = vor.u32 %v3872_v12, %v3549_v11  ;;  %v3551_v16 = vld [vmem:[#allocation5 + $0x15c] sm:$0xf0]  ;;  %v3479_v11 = vld [vmem:[#allocation5 + $0xcc] sm:$0xf0]  ;;  %v3485_v12 = vld [vmem:[#allocation5 + $0xc8] sm:$0xf] }
 0x82e   : > { %1657 = vmatpush.bf16.msrb.mxu0 %v3846_v23  ;;  %v3870_v23 = vld [vmem:[#allocation5 + $0x148] sm:$0xf0] }
 0x82f   : > { %v1371_v18 = vpack.c.bf16 %v1370_v17, %v1369_v5  ;;  %1887 = vmatpush.bf16.msra.mxu1 %v3550_v14  ;;  %v3546_v25 = vor.u32 %v3870_v23, %v3545_v22  ;;  %v3482_v14 = vor.u32 %v3853_v8, %v3479_v11 }
 0x831   : > { %1482 = vmatmul.bf16.vlgmr.msrb.gmra.mxu1 %v1371_v18  ;;  %1496 = vmatmul.bf16.vlgmr.msrb.gmra.mxu2 %v1371_v18  ;;  %v3554_v18 = vor.u32 %v3871_v13, %v3551_v16  ;;  %v3855_v13 = vld [vmem:[#allocation5 + $0xd0] sm:$0xf0] }
 0x832   : > { %1658 = vmatpush.bf16.msrb.mxu0 %v3845_v24  ;;  %v3542_v24 = vor.u32 %v3868_v20, %v3539_v58  ;;  %v3486_v16 = vor.u32 %v3855_v13, %v3485_v12 }
 0x833   : > { %1901 = vmatpush.bf16.msra.mxu2 %v3554_v18  ;;  %1888 = vmatpush.bf16.msra.mxu1 %v3538_v21 }
 0x837   : > { %1902 = vmatpush.bf16.msra.mxu2 %v3542_v24 }
 0x8ae   : > { %v1483_v27 = vpop.f32.mrf.mxu1 }
 0x8af   : > { %v1484_v31 = vadd.f32 %v1483_v27, %v1390_v28  ;;  %v3525_v27 = vld [vmem:[#allocation5 + $0x120] sm:$0xf] }
 0x8b1   : > { %v1502_v36 = vmax.f32 %v1484_v31, 0.0 }
 0x8b4   : > { %v1497_v30 = vpop.f32.mrf.mxu2 }
 0x8b5   : > { %v1498_v15 = vadd.f32 %v1497_v30, %v1391_v35  ;;  %v3865_v30 = vld [vmem:[#allocation5 + $0x124] sm:$0xf] }
 0x8b6   : > { %v1485_v33 = vpop.f32.mrf.mxu1 }
 0x8b7   : > { %v1486_v29 = vadd.f32 %v1485_v33, %v1390_v28  ;;  %v1503_v43 = vmax.f32 %v1498_v15, 0.0  ;;  %v3866_v28 = vld [vmem:[#allocation5 + $0x128] sm:$0xf0]  ;;  %v3527_v33 = vld [vmem:[#allocation5 + $0x12c] sm:$0xf0] }
 0x8b8   : > { %v3526_v31 = vor.u32 %v3866_v28, %v3525_v27  ;;  %v3513_v15 = vld [vmem:[#allocation5 + $0x108] sm:$0xf] }
 0x8b9   : > { %v1504_v37 = vmax.f32 %v1486_v29, 0.0  ;;  %v3867_v29 = vld [vmem:[#allocation5 + $0x130] sm:$0xf0] }
 0x8ba   : > { %1889 = vmatpush.bf16.msra.mxu1 %v3526_v31 }
 0x8bb   : > { %v1506_v39 = vpack.c.bf16 %v1504_v37, %v1502_v36  ;;  %v3530_v36 = vor.u32 %v3865_v30, %v3527_v33  ;;  %v1707_v33 = vperm.slane %v4739_v34, 4 }
 0x8bc   : > { %v1499_v41 = vpop.f32.mrf.mxu2 }
 0x8bd   : > { %v1500_v42 = vadd.f32 %v1499_v41, %v1391_v35  ;;  %1645 = vmatmul.bf16.vlgmr.msra.gmra.mxu3 %v1506_v39  ;;  %v3533_v35 = vld [vmem:[#allocation5 + $0x128] sm:$0xf]  ;;  %1903 = vmatpush.bf16.msra.mxu2 %v3530_v36  ;;  %v3863_v39 = vld [vmem:[#allocation5 + $0x110] sm:$0xf0]  ;;  %v3862_v41 = vld [vmem:[#allocation5 + $0x10c] sm:$0xf] }
 0x8be   : > { %v3534_v37 = vor.u32 %v3867_v29, %v3533_v35 }
 0x8bf   : > { %v1505_v44 = vmax.f32 %v1500_v42, 0.0  ;;  %v3514_v42 = vor.u32 %v3863_v39, %v3513_v15  ;;  %v1710_v15 = vperm.slane %v4739_v34, 5 }
 0x8c1   : > { %v1507_v46 = vpack.c.bf16 %v1505_v44, %v1503_v43  ;;  %v3515_v43 = vld [vmem:[#allocation5 + $0x114] sm:$0xf0]  ;;  %v3521_v44 = vld [vmem:[#allocation5 + $0x110] sm:$0xf]  ;;  %1890 = vmatpush.bf16.msra.mxu1 %v3514_v42 }
 0x8c3   : > { %1659 = vmatmul.bf16.vlgmr.msrb.gmra.mxu0 %v1507_v46  ;;  %v3864_v46 = vld [vmem:[#allocation5 + $0x118] sm:$0xf0] }
 0x940   : > { %v1646_v48 = vpop.f32.mrf.mxu3  ;;  %v1660_v51 = vpop.f32.mrf.mxu0 }
 0x941   : > { %v1647_v52 = vadd.f32 %v1646_v48, %v1540_v47  ;;  %v3522_v48 = vor.u32 %v3864_v46, %v3521_v44 }
 0x943   : > { %v1661_v53 = vadd.f32 %v1660_v51, %v1647_v52  ;;  %v3501_v51 = vld [vmem:[#allocation5 + $0xf0] sm:$0xf]  ;;  %v3860_v52 = vld [vmem:[#allocation5 + $0xf8] sm:$0xf0] }
 0x945   : > { %v1665_v54 = vadd.f32 %v1661_v53, %v1369_v5  ;;  %v3557_v5 = vld [vmem:[#allocation5 + $0x158] sm:$0xf]  ;;  %v3859_v53 = vld [vmem:[#allocation5 + $0xf4] sm:$0xf] }
 0x947   : > { %1667 = vadd.xlane.f32.xlu0 %v1665_v54 }
 0x948   : > { %v1648_v45 = vpop.f32.mrf.mxu3  ;;  %v1662_v55 = vpop.f32.mrf.mxu0 }
 0x949   : > { %v1649_v49 = vadd.f32 %v1648_v45, %v1540_v47  ;;  %v3518_v47 = vor.u32 %v3862_v41, %v3515_v43  ;;  %v3503_v45 = vld [vmem:[#allocation5 + $0xfc] sm:$0xf0] }
 0x94b   : > { %v1663_v50 = vadd.f32 %v1662_v55, %v1649_v49  ;;  %1904 = vmatpush.bf16.msra.mxu2 %v3518_v47  ;;  %v3509_v49 = vld [vmem:[#allocation5 + $0xf8] sm:$0xf]  ;;  %v3861_v55 = vld [vmem:[#allocation5 + $0x100] sm:$0xf0] }
 0x94d   : > { %v1666_v56 = vadd.f32 %v1663_v50, %v1370_v17  ;;  %v3873_v17 = vld [vmem:[#allocation5 + $0x160] sm:$0xf0]  ;;  %v3506_v50 = vor.u32 %v3859_v53, %v3503_v45 }
 0x94e   : > { %v3558_v40 = vor.u32 %v3873_v17, %v3557_v5 }
 0x94f   : > { %1669 = vadd.xlane.f32.xlu0 %v1666_v56  ;;  %1905 = vmatpush.bf16.msra.mxu2 %v3506_v50 }
 0x950   : > { %1915 = vmatpush.bf16.msrb.mxu3 %v3558_v40 }
 0x954   : > { %1916 = vmatpush.bf16.msrb.mxu3 %v3546_v25 }
 0x958   : > { %1917 = vmatpush.bf16.msrb.mxu3 %v3534_v37 }
 0x95c   : > { %1918 = vmatpush.bf16.msrb.mxu3 %v3522_v48 }
 0x9ba   : > { %v1668_v38 = vpop.xlane.xlu0 %1667 }
 0x9bb   : > { %v1671_v59 = vmul.f32 %v1668_v38, %v4745_v32  ;;  %v3489_v38 = vld [vmem:[#allocation5 + $0xd8] sm:$0xf] }
 0x9bd   : > { %v4768_v60 = vsub.f32 %v1665_v54, %v1671_v59  ;;  %v3502_v54 = vor.u32 %v3860_v52, %v3501_v51  ;;  %v3857_v59 = vld [vmem:[#allocation5 + $0xe0] sm:$0xf0] }
 0x9bf   : > { %v1675_v61 = vmul.f32 %v4768_v60, %v4768_v60  ;;  %1891 = vmatpush.bf16.msra.mxu1 %v3502_v54 }
 0x9c1   : > { %1677 = vadd.xlane.f32.xlu0 %v1675_v61  ;;  %v3856_v61 = vld [vmem:[#allocation5 + $0xdc] sm:$0xf] }
 0x9c2   : > { %v1670_v62 = vpop.xlane.xlu0 %1669 }
 0x9c3   : > { %v1672_v63 = vmul.f32 %v1670_v62, %v4745_v32  ;;  %v3490_v62 = vor.u32 %v3857_v59, %v3489_v38 }
 0x9c5   : > { %v4773_v0 = vsub.f32 %v1666_v56, %v1672_v63  ;;  %v3510_v56 = vor.u32 %v3861_v55, %v3509_v49  ;;  %v3491_v63 = vld [vmem:[#allocation5 + $0xe4] sm:$0xf0]  ;;  %1892 = vmatpush.bf16.msra.mxu1 %v3490_v62 }
 0x9c6   : > { %v3494_v4 = vor.u32 %v3856_v61, %v3491_v63 }
 0x9c7   : > { %v1676_v1 = vmul.f32 %v4773_v0, %v4773_v0  ;;  %1919 = vmatpush.bf16.msrb.mxu3 %v3510_v56 }
 0x9c8   : > { %1906 = vmatpush.bf16.msra.mxu2 %v3494_v4 }
 0x9c9   : > { %1679 = vadd.xlane.f32.xlu0 %v1676_v1  ;;  %v3497_v1 = vld [vmem:[#allocation5 + $0xe0] sm:$0xf]  ;;  %1893 = vmatpush.bf16.msra.mxu1 %v3478_v10 }
 0x9ca   : > { %v3498_v6 = vor.u32 %v3858_v2, %v3497_v1 }
 0x9cc   : > { %1920 = vmatpush.bf16.msrb.mxu3 %v3498_v6  ;;  %1907 = vmatpush.bf16.msra.mxu2 %v3482_v14 }
 0x9d0   : > { %1921 = vmatpush.bf16.msrb.mxu3 %v3486_v16 }
 0xa34   : > { %v1678_v3 = vpop.xlane.xlu0 %1677 }
 0xa35   : > { %v1681_v9 = vmul.f32 %v1678_v3, %v4745_v32 }
 0xa37   : > { %v1683_v5 = vadd.f32 1e-05, %v1681_v9 }
 0xa39   : > { %4074 = vrsqrt.f32 %v1683_v5  ;;  %vm1691_vm11 = vweird.f32 %v1683_v5 }
 0xa3c   : > { %v1680_v17 = vpop.xlane.xlu0 %1679 }
 0xa3d   : > { %v1682_v18 = vmul.f32 %v1680_v17, %v4745_v32 }
 0xa3f   : > { %v4075_v40 = vpop.eup %4074  ;;  %v1684_v26 = vadd.f32 1e-05, %v1682_v18 }
 0xa40   : > { %v1686_v19 = vmul.f32 %v4075_v40, %v1683_v5  ;;  %vm1692_vm10 = vweird.f32 %v4075_v40 }
 0xa41   : > { %4076 = vrsqrt.f32 %v1684_v26  ;;  %vm1693_vm12 = vmor %vm1691_vm11, %vm1692_vm10  ;;  %vm1701_vm14 = vweird.f32 %v1684_v26 }
 0xa42   : > { %v1687_v20 = vmul.f32 %v4075_v40, %v1686_v19 }
 0xa44   : > { %v1688_v21 = vmul.f32 0.5, %v1687_v20 }
 0xa46   : > { %v1689_v58 = vsub.f32 1.5, %v1688_v21 }
 0xa47   : > { %v4077_v22 = vpop.eup %4076 }
 0xa48   : > { %v1690_v23 = vmul.f32 %v4075_v40, %v1689_v58  ;;  %v1696_v24 = vmul.f32 %v4077_v22, %v1684_v26  ;;  %vm1702_vm13 = vweird.f32 %v4077_v22 }
 0xa49   : > { %vm1703_vm15 = vmor %vm1701_vm14, %vm1702_vm13  ;;  %vm2972_vm13 = vcmask 1041409  }
 0xa4a   : > { %v1697_v25 = vmul.f32 %v4077_v22, %v1696_v24  ;;  %v1694_v27 = vsel %vm1693_vm12, %v4075_v40, %v1690_v23 }
 0xa4b   : > { %v1705_v31 = vmul.f32 %v1694_v27, %v4768_v60  ;;  %v3474_v60 = vld [vmem:[%s4964_s3 + $0x3] sm:$0x7] }
 0xa4c   : > { %v1698_v28 = vmul.f32 0.5, %v1697_v25  ;;  %v1752_v44 = vperm.slane %v3474_v60, 0  ;;  %v1753_v34 = vperm.slane %v3474_v60, 1  ;;  %v1754_v48 = vperm.slane %v3474_v60, 2 }
 0xa4d   : > { %v1708_v37 = vmul.f32 %v1707_v33, %v1705_v31 }
 0xa4e   : > { %v1699_v30 = vsub.f32 1.5, %v1698_v28 }
 0xa4f   : > { %v4783_v41 = vadd.f32 %v1710_v15, %v1708_v37 }
 0xa50   : > { %v1700_v35 = vmul.f32 %v4077_v22, %v1699_v30 }
 0xa52   : > { %v1704_v29 = vsel %vm1703_vm15, %v4077_v22, %v1700_v35 }
 0xa53   : > { %v1706_v36 = vmul.f32 %v1704_v29, %v4773_v0 }
 0xa55   : > { %v1709_v39 = vmul.f32 %v1707_v33, %v1706_v36 }
 0xa57   : > { %v4785_v42 = vadd.f32 %v1710_v15, %v1709_v39 }
 0xa59   : > { %v1715_v43 = vpack.c.bf16 %v4785_v42, %v4783_v41 }
 0xa5b   : > { %1894 = vmatmul.bf16.vlgmr.msra.gmra.mxu1 %v1715_v43  ;;  %1908 = vmatmul.bf16.vlgmr.msra.gmra.mxu2 %v1715_v43 }
 0xa5c   : > { %1922 = vmatmul.bf16.vlgmr.msrb.gmra.mxu3 %v1715_v43 }
 0xad8   : > { %v1895_v0 = vpop.f32.mrf.mxu1 }
 0xad9   : > { %v1896_v46 = vadd.f32 %v1895_v0, %v1752_v44 }
 0xadb   : > { %v1945_v47 = vpack.c.bf16 %v1896_v46, %v1896_v46 }
 0xadd   : > { %v2053_v51 = vunpack.c.l.b16 %v1945_v47 }
 0xade   : > { %v1909_v52 = vpop.f32.mrf.mxu2 }
 0xadf   : > { %v4792_v53 = vpack.c.b16 %v2053_v51, %v2053_v51  ;;  %v1910_v54 = vadd.f32 %v1909_v52, %v1753_v34  ;;  %v1923_v45 = vpop.f32.mrf.mxu3 }
 0xae0   : > { %v1924_v49 = vadd.f32 %v1923_v45, %v1754_v48  ;;  %v1897_v55 = vpop.f32.mrf.mxu1 }
 0xae1   : > { %v1947_v50 = vpack.c.bf16 %v1910_v54, %v1910_v54  ;;  %v1898_v56 = vadd.f32 %v1897_v55, %v1752_v44  ;;  %2055 = vrot.lane.b32.xlu1 %v4792_v53, %s4391_s26 }
 0xae2   : > { %v1949_v38 = vpack.c.bf16 %v1924_v49, %v1924_v49 }
 0xae3   : > { %v1955_v59 = vsel %vm732_vm0, %v1947_v50, 0  ;;  %v2058_v61 = vunpack.c.l.b16 %v1947_v50  ;;  %v1946_v1 = vpack.c.bf16 %v1898_v56, %v1898_v56 }
 0xae4   : > { %v2017_v62 = vsel %vm799_vm2, %v1949_v38, 0  ;;  %1964 = vmatpush.bf16.xpose.msra.mxu0 %v1955_v59  ;;  %v2135_v36 = vunpack.c.l.b16 %v1949_v38 }
 0xae5   : > { %v4798_v63 = vpack.c.b16 %v2058_v61, %v2058_v61  ;;  %2026 = vmatpush.bf16.msrb.mxu1 %v2017_v62  ;;  %v2082_v57 = vunpack.c.l.b16 %v1946_v1  ;;  %v3880_v62 = vld [vmem:[#allocation7 + $0x58] sm:$0xff] }
 0xae6   : > { %v1911_v2 = vpop.f32.mrf.mxu2  ;;  %v4819_v37 = vpack.c.b16 %v2135_v36, %v2135_v36 }
 0xae7   : > { %v1912_v3 = vadd.f32 %v1911_v2, %v1753_v34  ;;  %v1925_v4 = vpop.f32.mrf.mxu3  ;;  %2060 = vrot.lane.b32.xlu0 %v4798_v63, %s4391_s26  ;;  %v4805_v12 = vpack.c.b16 %v2082_v57, %v2082_v57 }
 0xae8   : > { %v1926_v6 = vadd.f32 %v1925_v4, %v1754_v48 }
 0xae9   : > { %v1948_v7 = vpack.c.bf16 %v1912_v3, %v1912_v3  ;;  %v3879_v3 = vld [vmem:[#allocation7 + $0x50] sm:$0xff] }
 0xaea   : > { %v1950_v8 = vpack.c.bf16 %v1926_v6, %v1926_v6 }
 0xaeb   : > { %v1974_v9 = vsel %vm732_vm0, %v1948_v7, 0  ;;  %v2087_v10 = vunpack.c.l.b16 %v1948_v7  ;;  %3571 = vmatmul.msk.bf16.vlgmr.msra.gmra.mxu0 %vm732_vm0, %v1945_v47 }
 0xaec   : > { %v2036_v11 = vsel %vm799_vm2, %v1950_v8, 0  ;;  %1983 = vmatpush.bf16.xpose.msrb.mxu0 %v1974_v9  ;;  %v2159_v46 = vunpack.c.l.b16 %v1950_v8 }
 0xaed   : > { %v2088_v13 = vpack.c.b16 %v2087_v10, %v2087_v10  ;;  %2045 = vmatpush.bf16.msrb.mxu2 %v2036_v11 }
 0xaee   : > { %v4827_v47 = vpack.c.b16 %v2159_v46, %v2159_v46 }
 0xaef   : > { %2089 = vrot.lane.b32.xlu2 %v2088_v13, %s4391_s26  ;;  %2084 = vrot.lane.b32.xlu0 %v4805_v12, %s4391_s26 }
 0xafb   : > { %3572 = vmatmul.msk.bf16.vlgmr.msrb.gmra.mxu0 %vm732_vm0, %v1946_v1 }
 0xb49   : > { %v2090_v14 = vpop.permute.xlu2 %2089 }
 0xb4a   : > { %v2095_v16 = vsel %vm732_vm0, %v2090_v14, 0 }
 0xb4b   : > { %2104 = vmatpush.bf16.xpose.msra.mxu0 %v2095_v16 }
 0xb53   : > { %v2056_v18 = vpop.permute.xlu1 %2055 }
 0xb59   : > { %v2061_v5 = vpop.permute.xlu0 %2060 }
 0xb5a   : > { %v2066_v17 = vsel %vm732_vm0, %v2061_v5, 0 }
 0xb5b   : > { %2075 = vmatpush.bf16.xpose.msra.mxu3 %v2066_v17 }
 0xb61   : > { %v2085_v40 = vpop.permute.xlu0 %2084 }
 0xb62   : > { %3575 = vmatmul.msk.bf16.vlgmr.msra.gmra.mxu3 %vm732_vm0, %v2056_v18  ;;  %3576 = vmatmul.msk.bf16.vlgmr.msra.gmra.mxu0 %vm732_vm0, %v2085_v40 }
 0xb63   : > { %2204 = vmatpush.bf16.msrb.mxu3 %v3880_v62 }
 0xb67   : > { %2205 = vmatpush.bf16.msrb.mxu3 %v3879_v3 }
 0xb68   : > { %v1966_v26 = vpop.f32.mrf.mxu0 }
 0xb69   : > { %v1989_v19 = vsel %vm771_vm1, %v1966_v26, -inf }
 0xb6a   : > { %1990 = vmax.xlane.f32.xlu1 %v1989_v19 }
 0xb70   : > { %v1968_v20 = vpop.f32.mrf.mxu0 }
 0xb78   : > { %v1985_v21 = vpop.f32.mrf.mxu0 }
 0xb79   : > { %v1992_v58 = vsel %vm771_vm1, %v1985_v21, -inf }
 0xb7a   : > { %1993 = vmax.xlane.f32.xlu1 %v1992_v58  ;;  %v3878_v58 = vld [vmem:[#allocation7 + $0x48] sm:$0xff] }
 0xb7b   : > { %2233 = vmatpush.bf16.msrb.mxu0 %v3878_v58 }
 0xb80   : > { %v1987_v22 = vpop.f32.mrf.mxu0 }
 0xb81   : > { %v3877_v22 = vld [vmem:[#allocation7 + $0x40] sm:$0xff] }
 0xb82   : > { %2234 = vmatpush.bf16.msrb.mxu0 %v3877_v22 }
 0xbdd   : > { %v1991_v23 = vpop.xlane.xlu1 %1990 }
 0xbde   : > { %v1995_v24 = vsub.f32 %v1966_v26, %v1991_v23 }
 0xbdf   : > { %v2106_v25 = vpop.f32.mrf.mxu0 }
 0xbe0   : > { %v1997_v27 = vmul.f32 1.442695, %v1995_v24  ;;  %v2113_v60 = vsel %vm771_vm1, %v2106_v25, -inf }
 0xbe2   : > { %4078 = vpow2.f32 %v1997_v27 }
 0xbe5   : > { %v2077_v28 = vpop.f32.mrf.mxu3 }
 0xbe6   : > { %v2110_v30 = vsel %vm771_vm1, %v2077_v28, -inf }
 0xbe7   : > { %2111 = vmax.xlane.f32.xlu0 %v2110_v30  ;;  %v2108_v31 = vpop.f32.mrf.mxu0 }
 0xbe8   : > { %v4079_v33 = vpop.eup %4078 }
 0xbe9   : > { %v2001_v35 = vsel %vm771_vm1, %v4079_v33, 0.0 }
 0xbea   : > { %2002 = vadd.xlane.f32.xlu2 %v2001_v35 }
 0xbed   : > { %v2079_v29 = vpop.f32.mrf.mxu3  ;;  %v1994_v15 = vpop.xlane.xlu1 %1993 }
 0xbee   : > { %v1996_v39 = vsub.f32 %v1985_v21, %v1994_v15 }
 0xbf0   : > { %v1999_v43 = vmul.f32 1.442695, %v1996_v39 }
 0xbf2   : > { %4080 = vpow2.f32 %v1999_v43 }
 0xbf8   : > { %v4081_v44 = vpop.eup %4080 }
 0xbf9   : > { %v2004_v0 = vsel %vm771_vm1, %v4081_v44, 0.0 }
 0xbfb   : > { %2137 = vrot.lane.b32.xlu0 %v4819_v37, %s4391_s26 }
 0xc02   : > { %2243 = vrot.lane.b32.xlu2 %v4798_v63, %s4392_s13 }
 0xc25   : > { %2114 = vmax.xlane.f32.xlu0 %v2113_v60 }
 0xc2b   : > { %2005 = vadd.xlane.f32.xlu2 %v2004_v0 }
 0xc39   : > { %2161 = vrot.lane.b32.xlu0 %v4827_v47, %s4391_s26  ;;  %s3196_s26 = sshll.u32 %s4581_s5, 1 }
 0xc3a   : > { %s489_s30 = scalar_lea.vmem [#allocation13], %s3196_s26 }
 0xc3b   : > { %s3054_s7 = sshll.u32 %s489_s30, 4  ;;  %s3055_s7 = int_to_ptr.vmem [resolvable:$true] %s3054_s7 }
 0xc41   : > { %2264 = vrot.lane.b32.xlu0 %v4805_v12, %s4392_s13 }
 0xc43   : > { %2266 = vrot.lane.b32.xlu2 %v2088_v13, %s4392_s13 }
 0xc49   : > { %2311 = vrot.lane.b32.xlu0 %v4819_v37, %s4392_s13 }
 0xc51   : > { %2410 = vrot.lane.b32.xlu0 %v2088_v13, %s4393_s21 }
 0xc59   : > { %2385 = vrot.lane.b32.xlu0 %v4792_v53, %s4393_s21 }
 0xc5a   : > { %v2112_v34 = vpop.xlane.xlu0 %2111 }
 0xc5b   : > { %v2116_v48 = vsub.f32 %v2077_v28, %v2112_v34 }
 0xc5d   : > { %v2118_v51 = vmul.f32 1.442695, %v2116_v48  ;;  %v2003_v52 = vpop.xlane.xlu2 %2002 }
 0xc5e   : > { %4082 = vrcp.f32 %v2003_v52 }
 0xc5f   : > { %4084 = vpow2.f32 %v2118_v51 }
 0xc61   : > { %2408 = vrot.lane.b32.xlu0 %v4805_v12, %s4393_s21 }
 0xc64   : > { %v4083_v54 = vpop.eup %4082 }
 0xc65   : > { %v4085_v45 = vpop.eup %4084  ;;  %v2009_v49 = vmul.f32 %v4083_v54, %v4079_v33  ;;  %v2244_v56 = vpop.permute.xlu2 %2243 }
 0xc66   : > { %v2122_v55 = vsel %vm771_vm1, %v4085_v45, 0.0  ;;  %v2249_v61 = vsel %vm732_vm0, %v2244_v56, 0 }
 0xc67   : > { %v2011_v50 = vpack.c.bf16 %v2009_v49, %v2009_v49  ;;  %2123 = vadd.xlane.f32.xlu1 %v2122_v55 }
 0xc69   : > { %3573 = vmatmul.msk.bf16.vlgmr.msrb.gmra.mxu1 %vm771_vm1, %v2011_v50 }
 0xc6d   : > { %v2138_v38 = vpop.permute.xlu0 %2137 }
 0xc6e   : > { %v2143_v59 = vsel %vm799_vm2, %v2138_v38, 0 }
 0xc6f   : > { %2152 = vmatpush.bf16.msra.mxu1 %v2143_v59 }
 0xc73   : > { %2258 = vmatpush.bf16.xpose.msrb.mxu1 %v2249_v61 }
 0xc80   : > { %2241 = vrot.lane.b32.xlu1 %v4792_v53, %s4392_s13 }
 0xc98   : > { %v2115_v1 = vpop.xlane.xlu0 %2114 }
 0xc99   : > { %v2117_v2 = vsub.f32 %v2106_v25, %v2115_v1 }
 0xc9b   : > { %v2120_v4 = vmul.f32 1.442695, %v2117_v2 }
 0xc9e   : > { %v2006_v6 = vpop.xlane.xlu2 %2005 }
 0xc9f   : > { %4086 = vrcp.f32 %v2006_v6 }
 0xca0   : > { %4088 = vpow2.f32 %v2120_v4 }
 0xca5   : > { %v4087_v57 = vpop.eup %4086 }
 0xca6   : > { %v4089_v7 = vpop.eup %4088  ;;  %v2010_v8 = vmul.f32 %v4087_v57, %v4081_v44  ;;  %v2267_v11 = vpop.permute.xlu2 %2266 }
 0xca7   : > { %v2125_v10 = vsel %vm771_vm1, %v4089_v7, 0.0  ;;  %v2272_v13 = vsel %vm732_vm0, %v2267_v11, 0 }
 0xca8   : > { %v2012_v9 = vpack.c.bf16 %v2010_v8, %v2010_v8 }
 0xcaa   : > { %3574 = vmatmul.msk.bf16.vlgmr.msrb.gmra.mxu2 %vm771_vm1, %v2012_v9  ;;  %2126 = vadd.xlane.f32.xlu1 %v2125_v10 }
 0xcab   : > { %v2162_v53 = vpop.permute.xlu0 %2161 }
 0xcac   : > { %v2167_v12 = vsel %vm799_vm2, %v2162_v53, 0 }
 0xcad   : > { %2176 = vmatpush.bf16.msra.mxu2 %v2167_v12 }
 0xcb1   : > { %2281 = vmatpush.bf16.xpose.msrb.mxu2 %v2272_v13 }
 0xcb3   : > { %v2265_v14 = vpop.permute.xlu0 %2264 }
 0xcbb   : > { %v2312_v16 = vpop.permute.xlu0 %2311 }
 0xcbc   : > { %v2317_v5 = vsel %vm799_vm2, %v2312_v16, 0 }
 0xcbd   : > { %2326 = vmatpush.bf16.msra.mxu3 %v2317_v5 }
 0xcc3   : > { %v2411_v39 = vpop.permute.xlu0 %2410 }
 0xcc4   : > { %v2416_v44 = vsel %vm732_vm0, %v2411_v39, 0 }
 0xccb   : > { %v2386_v50 = vpop.permute.xlu0 %2385 }
 0xcda   : > { %v2124_v17 = vpop.xlane.xlu1 %2123 }
 0xcdb   : > { %4090 = vrcp.f32 %v2124_v17 }
 0xce1   : > { %v4091_v18 = vpop.eup %4090 }
 0xce2   : > { %v2130_v40 = vmul.f32 %v4091_v18, %v4085_v45 }
 0xce4   : > { %v2132_v26 = vpack.c.bf16 %v2130_v40, %v2130_v40 }
 0xce6   : > { %v2028_v19 = vpop.f32.mrf.mxu1  ;;  %3577 = vmatmul.msk.bf16.vlgmr.msra.gmra.mxu1 %vm771_vm1, %v2132_v26  ;;  %v3882_v26 = vld [vmem:[#allocation7 + $0x68] sm:$0xff] }
 0xce7   : > { %2375 = vmatpush.bf16.msra.mxu1 %v3882_v26  ;;  %v3899_v26 = vld [vmem:[#allocation8 + $0xf4] sm:$0xf] }
 0xcee   : > { %v2030_v20 = vpop.f32.mrf.mxu1 }
 0xcf2   : > { %v2242_v21 = vpop.permute.xlu1 %2241 }
 0xcf6   : > { %3597 = vmatmul.msk.bf16.vlgmr.msrb.gmra.mxu1 %vm732_vm0, %v2242_v21 }
 0xd1d   : > { %v2127_v23 = vpop.xlane.xlu1 %2126 }
 0xd1e   : > { %4092 = vrcp.f32 %v2127_v23 }
 0xd24   : > { %v4093_v24 = vpop.eup %4092 }
 0xd25   : > { %v2131_v25 = vmul.f32 %v4093_v24, %v4089_v7  ;;  %v2409_v7 = vpop.permute.xlu0 %2408  ;;  %v3881_v24 = vld [vmem:[#allocation7 + $0x60] sm:$0xff] }
 0xd26   : > { %2376 = vmatpush.bf16.msra.mxu1 %v3881_v24 }
 0xd27   : > { %v2133_v27 = vpack.c.bf16 %v2131_v25, %v2131_v25 }
 0xd29   : > { %3578 = vmatmul.msk.bf16.vlgmr.msra.gmra.mxu2 %vm771_vm1, %v2133_v27 }
 0xd2d   : > { %v2047_v28 = vpop.f32.mrf.mxu2 }
 0xd2e   : > { %v2051_v30 = vpack.c.bf16 %v2047_v28, %v2028_v19 }
 0xd30   : > { %3596 = vmatmul.msk.bf16.vlgmr.msrb.gmra.mxu0 %vm732_vm0, %v2051_v30 }
 0xd35   : > { %v2049_v31 = vpop.f32.mrf.mxu2 }
 0xd39   : > { %3598 = vmatmul.msk.bf16.vlgmr.msrb.gmra.mxu2 %vm732_vm0, %v2265_v14 }
 0xd63   : > { %v2154_v33 = vpop.f32.mrf.mxu1 }
 0xd6b   : > { %v2156_v35 = vpop.f32.mrf.mxu1 }
 0xd73   : > { %v2260_v29 = vpop.f32.mrf.mxu1 }
 0xd74   : > { %v2287_v36 = vsel %vm771_vm1, %v2260_v29, -inf }
 0xd75   : > { %2288 = vmax.xlane.f32.xlu1 %v2287_v36 }
 0xd7b   : > { %v2262_v15 = vpop.f32.mrf.mxu1 }
 0xd8e   : > { %2387 = vrot.lane.b32.xlu1 %v4798_v63, %s4393_s21 }
 0xdac   : > { %v2178_v43 = vpop.f32.mrf.mxu2 }
 0xdad   : > { %v2182_v60 = vpack.c.bf16 %v2178_v43, %v2154_v33  ;;  %v2236_v25 = vpop.f32.mrf.mxu0 }
 0xdaf   : > { %3587 = vmatmul.msk.bf16.vlgmr.msrb.gmra.mxu3 %vm732_vm0, %v2182_v60 }
 0xdb0   : > { %2425 = vmatpush.bf16.xpose.msrb.mxu3 %v2416_v44 }
 0xdb4   : > { %v2180_v0 = vpop.f32.mrf.mxu2 }
 0xdb5   : > { %v2238_v27 = vpop.f32.mrf.mxu0 }
 0xdbc   : > { %v2283_v46 = vpop.f32.mrf.mxu2 }
 0xdbd   : > { %v2290_v34 = vsel %vm771_vm1, %v2283_v46, -inf }
 0xdbe   : > { %2291 = vmax.xlane.f32.xlu1 %v2290_v34 }
 0xdc4   : > { %v2285_v48 = vpop.f32.mrf.mxu2 }
 0xde8   : > { %v2289_v51 = vpop.xlane.xlu1 %2288 }
 0xde9   : > { %v2293_v52 = vsub.f32 %v2260_v29, %v2289_v51  ;;  %v3884_v51 = vld [vmem:[#allocation7 + $0x78] sm:$0xff] }
 0xdeb   : > { %v2295_v54 = vmul.f32 1.442695, %v2293_v52 }
 0xded   : > { %4094 = vpow2.f32 %v2295_v54 }
 0xdf3   : > { %v4095_v45 = vpop.eup %4094 }
 0xdf4   : > { %v2299_v63 = vsel %vm771_vm1, %v4095_v45, 0.0 }
 0xdf5   : > { %2300 = vadd.xlane.f32.xlu2 %v2299_v63 }
 0xe00   : > { %v2388_v49 = vpop.permute.xlu1 %2387 }
 0xe01   : > { %v2393_v55 = vsel %vm732_vm0, %v2388_v49, 0 }
 0xe02   : > { %2402 = vmatpush.bf16.xpose.msra.mxu2 %v2393_v55 }
 0xe09   : > { %3610 = vmatmul.msk.bf16.vlgmr.msra.gmra.mxu2 %vm732_vm0, %v2386_v50 }
 0xe0a   : > { %2519 = vmatpush.bf16.msrb.mxu2 %v3884_v51 }
 0xe0d   : > { %2332 = vrot.lane.b32.xlu2 %v4827_v47, %s4392_s13 }
 0xe31   : > { %v2292_v56 = vpop.xlane.xlu1 %2291 }
 0xe32   : > { %v2294_v38 = vsub.f32 %v2283_v46, %v2292_v56  ;;  %v2207_v14 = vpop.f32.mrf.mxu3 }
 0xe33   : > { %v2237_v46 = vadd.f32 %v2236_v25, %v2207_v14  ;;  %v3676_v25 = vld [vmem:[#allocation8 + $0xe8] sm:$0xf0] }
 0xe34   : > { %v2297_v59 = vmul.f32 1.442695, %v2294_v38  ;;  %v3883_v38 = vld [vmem:[#allocation7 + $0x70] sm:$0xff] }
 0xe35   : > { %2520 = vmatpush.bf16.msrb.mxu2 %v3883_v38  ;;  %v3887_v38 = vld [vmem:[#allocation8 + $0x94] sm:$0xf] }
 0xe36   : > { %4096 = vpow2.f32 %v2297_v59 }
 0xe3a   : > { %v4874_v16 = vpop.f32.mrf.mxu3 }
 0xe3c   : > { %v4097_v61 = vpop.eup %4096 }
 0xe3d   : > { %v2302_v62 = vsel %vm771_vm1, %v4097_v61, 0.0 }
 0xe3e   : > { %2303 = vadd.xlane.f32.xlu0 %v2302_v62 }
 0xe68   : > { %v2301_v1 = vpop.xlane.xlu2 %2300 }
 0xe69   : > { %4098 = vrcp.f32 %v2301_v1  ;;  %v4892_v1 = vld [vmem:[%s4969_s8 + $0x8] sm:$0x3f] }
 0xe6f   : > { %v4099_v2 = vpop.eup %4098 }
 0xe70   : > { %v2307_v3 = vmul.f32 %v4099_v2, %v4095_v45  ;;  %v2333_v4 = vpop.permute.xlu2 %2332  ;;  %v2529_v2 = vperm.slane %v4892_v1, 0 }
 0xe71   : > { %v2338_v6 = vsel %vm799_vm2, %v2333_v4, 0 }
 0xe72   : > { %v2309_v57 = vpack.c.bf16 %v2307_v3, %v2307_v3  ;;  %2347 = vmatpush.bf16.msra.mxu0 %v2338_v6 }
 0xe74   : > { %3599 = vmatmul.msk.bf16.vlgmr.msra.gmra.mxu3 %vm771_vm1, %v2309_v57  ;;  %v2239_v57 = vadd.f32 %v2238_v27, %v4874_v16 }
 0xe84   : > { %3611 = vmatmul.msk.bf16.vlgmr.msrb.gmra.mxu3 %vm732_vm0, %v2409_v7 }
 0xe8c   : > { %v2404_v8 = vpop.f32.mrf.mxu2 }
 0xe8d   : > { %v2431_v9 = vsel %vm771_vm1, %v2404_v8, -inf }
 0xe8e   : > { %2432 = vmax.xlane.f32.xlu2 %v2431_v9 }
 0xe94   : > { %v2406_v10 = vpop.f32.mrf.mxu2 }
 0xeb1   : > { %v2304_v11 = vpop.xlane.xlu0 %2303 }
 0xeb2   : > { %4100 = vrcp.f32 %v2304_v11 }
 0xeb8   : > { %v4101_v53 = vpop.eup %4100 }
 0xeb9   : > { %v2308_v12 = vmul.f32 %v4101_v53, %v4097_v61 }
 0xebb   : > { %v2310_v13 = vpack.c.bf16 %v2308_v12, %v2308_v12 }
 0xebd   : > { %3600 = vmatmul.msk.bf16.vlgmr.msra.gmra.mxu0 %vm771_vm1, %v2310_v13 }
 0xef7   : > { %v2328_v5 = vpop.f32.mrf.mxu3 }
 0xeff   : > { %v2330_v17 = vpop.f32.mrf.mxu3 }
 0xf01   : > { %v2433_v18 = vpop.xlane.xlu2 %2432 }
 0xf02   : > { %v2437_v40 = vsub.f32 %v2404_v8, %v2433_v18 }
 0xf04   : > { %v2439_v19 = vmul.f32 1.442695, %v2437_v40  ;;  %v3900_v40 = vld [vmem:[#allocation8 + $0xf4] sm:$0xf0] }
 0xf06   : > { %4102 = vpow2.f32 %v2439_v19 }
 0xf07   : > { %v2427_v20 = vpop.f32.mrf.mxu3 }
 0xf08   : > { %v2434_v21 = vsel %vm771_vm1, %v2427_v20, -inf }
 0xf09   : > { %2435 = vmax.xlane.f32.xlu1 %v2434_v21 }
 0xf0c   : > { %v4103_v58 = vpop.eup %4102 }
 0xf0d   : > { %v2443_v22 = vsel %vm771_vm1, %v4103_v58, 0.0 }
 0xf0e   : > { %2444 = vadd.xlane.f32.xlu0 %v2443_v22  ;;  %v3898_v22 = vld [vmem:[#allocation8 + $0xe4] sm:$0xf0] }
 0xf0f   : > { %v2429_v23 = vpop.f32.mrf.mxu3 }
 0xf10   : > { %v3897_v23 = vld [vmem:[#allocation8 + $0xe4] sm:$0xf] }
 0xf11   : > { %v3679_v27 = vor.u32 %v3897_v23, %v3676_v25 }
 0xf22   : > { %2455 = vrot.lane.b32.xlu0 %v4819_v37, %s4393_s21 }
 0xf3a   : > { %v2349_v28 = vpop.f32.mrf.mxu0 }
 0xf3b   : > { %v2353_v30 = vpack.c.bf16 %v2349_v28, %v2328_v5  ;;  %v3666_v28 = vld [vmem:[#allocation8 + $0xd0] sm:$0xf] }
 0xf3d   : > { %3609 = vmatmul.msk.bf16.vlgmr.msra.gmra.mxu1 %vm732_vm0, %v2353_v30  ;;  %v3896_v30 = vld [vmem:[#allocation8 + $0xd4] sm:$0xf0] }
 0xf42   : > { %v2351_v31 = vpop.f32.mrf.mxu0 }
 0xf43   : > { %v3895_v31 = vld [vmem:[#allocation8 + $0xd4] sm:$0xf] }
 0xf7c   : > { %v2436_v33 = vpop.xlane.xlu1 %2435 }
 0xf7d   : > { %v2438_v35 = vsub.f32 %v2427_v20, %v2436_v33  ;;  %v3684_v20 = vld [vmem:[#allocation8 + $0xf8] sm:$0xf0]  ;;  %v3667_v33 = vor.u32 %v3896_v30, %v3666_v28  ;;  %v2574_v30 = vperm.slane %v4892_v1, 1 }
 0xf7e   : > { %v3687_v21 = vor.u32 %v3899_v26, %v3684_v20  ;;  %v3913_v20 = vld [vmem:[#allocation10 + $0xe0] sm:$0xff] }
 0xf7f   : > { %v2441_v29 = vmul.f32 1.442695, %v2438_v35  ;;  %v3668_v35 = vld [vmem:[#allocation8 + $0xd8] sm:$0xf0] }
 0xf81   : > { %4104 = vpow2.f32 %v2441_v29  ;;  %v2445_v15 = vpop.xlane.xlu0 %2444  ;;  %v3671_v29 = vor.u32 %v3895_v31, %v3668_v35 }
 0xf82   : > { %4106 = vrcp.f32 %v2445_v15  ;;  %v3894_v15 = vld [vmem:[#allocation8 + $0xc4] sm:$0xf0] }
 0xf87   : > { %v4105_v36 = vpop.eup %4104 }
 0xf88   : > { %v2446_v39 = vsel %vm771_vm1, %v4105_v36, 0.0  ;;  %v4107_v43 = vpop.eup %4106 }
 0xf89   : > { %2447 = vadd.xlane.f32.xlu1 %v2446_v39  ;;  %v2451_v60 = vmul.f32 %v4107_v43, %v4103_v58  ;;  %v3674_v58 = vld [vmem:[#allocation8 + $0xe0] sm:$0xf]  ;;  %v3893_v39 = vld [vmem:[#allocation8 + $0xc4] sm:$0xf] }
 0xf8a   : > { %v3675_v24 = vor.u32 %v3898_v22, %v3674_v58 }
 0xf8b   : > { %v2453_v0 = vpack.c.bf16 %v2451_v60, %v2451_v60  ;;  %v3660_v60 = vld [vmem:[#allocation8 + $0xc8] sm:$0xf0] }
 0xf94   : > { %v2456_v37 = vpop.permute.xlu0 %2455 }
 0xf95   : > { %v2461_v44 = vsel %vm799_vm2, %v2456_v37, 0  ;;  %v3663_v37 = vor.u32 %v3893_v39, %v3660_v60 }
 0xf96   : > { %2470 = vmatpush.bf16.msrb.mxu0 %v2461_v44  ;;  %v3650_v44 = vld [vmem:[#allocation8 + $0xb0] sm:$0xf] }
 0xf99   : > { %3612 = vmatmul.msk.bf16.vlgmr.msrb.gmra.mxu0 %vm771_vm1, %v2453_v0  ;;  %v3892_v0 = vld [vmem:[#allocation8 + $0xb4] sm:$0xf0] }
 0xf9a   : > { %2699 = vmatpush.bf16.msra.mxu0 %v3687_v21 }
 0xf9e   : > { %2700 = vmatpush.bf16.msra.mxu0 %v3679_v27 }
 0xfa2   : > { %2476 = vrot.lane.b32.xlu1 %v4827_v47, %s4393_s21  ;;  %2701 = vmatpush.bf16.msra.mxu0 %v3671_v29  ;;  %v2577_v29 = vperm.slane %v4892_v1, 2 }
 0xfa6   : > { %2702 = vmatpush.bf16.msra.mxu0 %v3663_v37 }
 0xfba   : > { %v2378_v34 = vpop.f32.mrf.mxu1 }
 0xfbb   : > { %v2383_v48 = vadd.f32 %v2378_v34, %v2237_v46  ;;  %v3891_v46 = vld [vmem:[#allocation8 + $0xb4] sm:$0xf]  ;;  %v3651_v34 = vor.u32 %v3892_v0, %v3650_v44  ;;  %v3912_v44 = vld [vmem:[#allocation10 + $0xd8] sm:$0xff]  ;;  %v3905_v0 = vld [vmem:[#allocation10 + $0xa0] sm:$0xff] }
 0xfc2   : > { %v2380_v47 = vpop.f32.mrf.mxu1 }
 0xfc3   : > { %v2384_v8 = vadd.f32 %v2380_v47, %v2239_v57 }
 0xffc   : > { %v2448_v52 = vpop.xlane.xlu1 %2447 }
 0xffd   : > { %4108 = vrcp.f32 %v2448_v52  ;;  %v3642_v52 = vld [vmem:[#allocation8 + $0xa0] sm:$0xf] }
0x1003   : > { %v4109_v54 = vpop.eup %4108 }
0x1004   : > { %v2452_v45 = vmul.f32 %v4109_v54, %v4105_v36  ;;  %v3658_v36 = vld [vmem:[#allocation8 + $0xc0] sm:$0xf]  ;;  %v3890_v54 = vld [vmem:[#allocation8 + $0xa4] sm:$0xf0] }
0x1005   : > { %v3659_v43 = vor.u32 %v3894_v15, %v3658_v36 }
0x1006   : > { %v2454_v50 = vpack.c.bf16 %v2452_v45, %v2452_v45  ;;  %v3889_v45 = vld [vmem:[#allocation8 + $0xa4] sm:$0xf] }
0x1014   : > { %v2477_v63 = vpop.permute.xlu1 %2476 }
0x1015   : > { %v2482_v49 = vsel %vm799_vm2, %v2477_v63, 0  ;;  %v3643_v63 = vor.u32 %v3890_v54, %v3642_v52  ;;  %v3901_v52 = vld [vmem:[#allocation10 + $0x80] sm:$0xff] }
0x1016   : > { %v2472_v55 = vpop.f32.mrf.mxu0  ;;  %2491 = vmatpush.bf16.msrb.mxu1 %v2482_v49  ;;  %v3644_v49 = vld [vmem:[#allocation8 + $0xa8] sm:$0xf0]  ;;  %v3623_v54 = vld [vmem:[%s4967_s6 + $0x2] sm:$0x3] }
0x1019   : > { %3613 = vmatmul.msk.bf16.vlgmr.msrb.gmra.mxu1 %vm771_vm1, %v2454_v50  ;;  %v3634_v50 = vld [vmem:[#allocation8 + $0x90] sm:$0xf] }
0x101e   : > { %v2474_v56 = vpop.f32.mrf.mxu0 }
0x101f   : > { %v3888_v56 = vld [vmem:[#allocation8 + $0x94] sm:$0xf0] }
0x1020   : > { %v3635_v47 = vor.u32 %v3888_v56, %v3634_v50  ;;  %v2601_v56 = vperm.slane %v3623_v54, 0 }
0x1096   : > { %v2493_v59 = vpop.f32.mrf.mxu1 }
0x1097   : > { %v2497_v61 = vpack.c.bf16 %v2493_v59, %v2472_v55  ;;  %v3647_v55 = vor.u32 %v3889_v45, %v3644_v49  ;;  %v3636_v59 = vld [vmem:[#allocation8 + $0x98] sm:$0xf0] }
0x1099   : > { %3622 = vmatmul.msk.bf16.vlgmr.msrb.gmra.mxu2 %vm732_vm0, %v2497_v61 }
0x109e   : > { %v2495_v62 = vpop.f32.mrf.mxu1 }
0x109f   : > { %v3639_v62 = vor.u32 %v3887_v38, %v3636_v59 }
0x111c   : > { %v2522_v3 = vpop.f32.mrf.mxu2 }
0x111d   : > { %v2527_v4 = vadd.f32 %v2522_v3, %v2383_v48  ;;  %v3652_v48 = vld [vmem:[#allocation8 + $0xb8] sm:$0xf0]  ;;  %v3626_v3 = vld [vmem:[#allocation8 + $0x80] sm:$0xf] }
0x111e   : > { %v3655_v51 = vor.u32 %v3891_v46, %v3652_v48  ;;  %v3904_v46 = vld [vmem:[#allocation10 + $0x98] sm:$0xff]  ;;  %v3903_v48 = vld [vmem:[#allocation10 + $0x90] sm:$0xff] }
0x111f   : > { %v2530_v6 = vadd.f32 %v2529_v2, %v2527_v4  ;;  %v3886_v4 = vld [vmem:[#allocation8 + $0x84] sm:$0xf0] }
0x1120   : > { %2703 = vmatpush.bf16.msra.mxu0 %v3655_v51  ;;  %v3909_v51 = vld [vmem:[#allocation10 + $0xc0] sm:$0xff] }
0x1121   : > { %v2532_v7 = vadd.f32 %v2530_v6, %v4783_v41  ;;  %v3885_v6 = vld [vmem:[#allocation8 + $0x84] sm:$0xf] }
0x1123   : > { %2534 = vadd.xlane.f32.xlu0 %v2532_v7 }
0x1124   : > { %v2524_v9 = vpop.f32.mrf.mxu2  ;;  %2704 = vmatpush.bf16.msra.mxu0 %v3647_v55 }
0x1125   : > { %v2528_v10 = vadd.f32 %v2524_v9, %v2384_v8  ;;  %v3628_v8 = vld [vmem:[#allocation8 + $0x88] sm:$0xf0] }
0x1126   : > { %v3631_v9 = vor.u32 %v3885_v6, %v3628_v8 }
0x1127   : > { %v2531_v11 = vadd.f32 %v2529_v2, %v2528_v10  ;;  %v3916_v10 = vld [vmem:[#allocation10 + $0xf8] sm:$0xff] }
0x1128   : > { %2705 = vmatpush.bf16.msra.mxu0 %v3639_v62  ;;  %2863 = vmatpush.bf16.msra.mxu2 %v3916_v10 }
0x1129   : > { %v2533_v53 = vadd.f32 %v2531_v11, %v4785_v42  ;;  %v3682_v42 = vld [vmem:[#allocation8 + $0xf0] sm:$0xf]  ;;  %v3908_v11 = vld [vmem:[#allocation10 + $0xb8] sm:$0xff] }
0x112a   : > { %v3683_v19 = vor.u32 %v3900_v40, %v3682_v42  ;;  %2849 = vmatpush.bf16.msra.mxu1 %v3908_v11  ;;  %v3914_v42 = vld [vmem:[#allocation10 + $0xe8] sm:$0xff] }
0x112b   : > { %2536 = vadd.xlane.f32.xlu2 %v2533_v53  ;;  %v3906_v40 = vld [vmem:[#allocation10 + $0xa8] sm:$0xff] }
0x112c   : > { %2685 = vmatpush.bf16.msra.mxu3 %v3683_v19  ;;  %2706 = vmatpush.bf16.msra.mxu0 %v3631_v9 }
0x1130   : > { %2686 = vmatpush.bf16.msra.mxu3 %v3675_v24 }
0x1134   : > { %2687 = vmatpush.bf16.msra.mxu3 %v3667_v33 }
0x1138   : > { %2688 = vmatpush.bf16.msra.mxu3 %v3659_v43 }
0x113c   : > { %2689 = vmatpush.bf16.msra.mxu3 %v3651_v34  ;;  %v3910_v34 = vld [vmem:[#allocation10 + $0xc8] sm:$0xff] }
0x1140   : > { %2690 = vmatpush.bf16.msra.mxu3 %v3643_v63  ;;  %v2602_v63 = vperm.slane %v3623_v54, 1  ;;  %v2922_v54 = vperm.slane %v4892_v1, 5 }
0x1144   : > { %2691 = vmatpush.bf16.msra.mxu3 %v3635_v47 }
0x1196   : > { %v2535_v12 = vpop.xlane.xlu0 %2534 }
0x1197   : > { %v2538_v13 = vmul.f32 %v2535_v12, %v4745_v32 }
0x1199   : > { %v4899_v14 = vsub.f32 %v2532_v7, %v2538_v13  ;;  %v3627_v7 = vor.u32 %v3886_v4, %v3626_v3  ;;  %v3915_v13 = vld [vmem:[#allocation10 + $0xf0] sm:$0xff] }
0x119a   : > { %2864 = vmatpush.bf16.msra.mxu2 %v3915_v13 }
0x119b   : > { %v2542_v5 = vmul.f32 %v4899_v14, %v4899_v14  ;;  %2692 = vmatpush.bf16.msra.mxu3 %v3627_v7  ;;  %v2752_v7 = vperm.slane %v4892_v1, 3 }
0x119d   : > { %2544 = vadd.xlane.f32.xlu1 %v2542_v5  ;;  %v3907_v5 = vld [vmem:[#allocation10 + $0xb0] sm:$0xff] }
0x119e   : > { %v2537_v16 = vpop.xlane.xlu2 %2536  ;;  %2850 = vmatpush.bf16.msra.mxu1 %v3907_v5  ;;  %2865 = vmatpush.bf16.msra.mxu2 %v3914_v42 }
0x119f   : > { %v2539_v41 = vmul.f32 %v2537_v16, %v4745_v32 }
0x11a1   : > { %v4904_v17 = vsub.f32 %v2533_v53, %v2539_v41 }
0x11a2   : > { %2851 = vmatpush.bf16.msra.mxu1 %v3906_v40  ;;  %2866 = vmatpush.bf16.msra.mxu2 %v3913_v20 }
0x11a3   : > { %v2543_v18 = vmul.f32 %v4904_v17, %v4904_v17 }
0x11a5   : > { %2546 = vadd.xlane.f32.xlu2 %v2543_v18 }
0x11a6   : > { %2867 = vmatpush.bf16.msra.mxu2 %v3912_v44  ;;  %2852 = vmatpush.bf16.msra.mxu1 %v3905_v0  ;;  %v4395_v44 = vmov 8.0  }
0x11aa   : > { %2853 = vmatpush.bf16.msra.mxu1 %v3904_v46 }
0x11ae   : > { %2854 = vmatpush.bf16.msra.mxu1 %v3903_v48  ;;  %v2919_v48 = vperm.slane %v4892_v1, 4 }
0x1210   : > { %v2545_v61 = vpop.xlane.xlu1 %2544 }
0x1211   : > { %v2548_v2 = vmul.f32 %v2545_v61, %v4745_v32 }
0x1213   : > { %v2550_v57 = vadd.f32 1e-05, %v2548_v2 }
0x1215   : > { %4110 = vrsqrt.f32 %v2550_v57  ;;  %vm2558_vm1 = vweird.f32 %v2550_v57 }
0x1218   : > { %v2547_v53 = vpop.xlane.xlu2 %2546 }
0x1219   : > { %v2549_v12 = vmul.f32 %v2547_v53, %v4745_v32 }
0x121b   : > { %v4111_v16 = vpop.eup %4110  ;;  %v2551_v41 = vadd.f32 1e-05, %v2549_v12 }
0x121c   : > { %v2553_v18 = vmul.f32 %v4111_v16, %v2550_v57  ;;  %vm2559_vm0 = vweird.f32 %v4111_v16 }
0x121d   : > { %4112 = vrsqrt.f32 %v2551_v41  ;;  %vm2560_vm2 = vmor %vm2558_vm1, %vm2559_vm0  ;;  %vm2568_vm4 = vweird.f32 %v2551_v41 }
0x121e   : > { %v2554_v26 = vmul.f32 %v4111_v16, %v2553_v18 }
0x1220   : > { %v2555_v19 = vmul.f32 0.5, %v2554_v26 }
0x1222   : > { %v2556_v21 = vsub.f32 1.5, %v2555_v19 }
0x1223   : > { %v4113_v58 = vpop.eup %4112 }
0x1224   : > { %v2557_v22 = vmul.f32 %v4111_v16, %v2556_v21  ;;  %v2563_v23 = vmul.f32 %v4113_v58, %v2551_v41  ;;  %vm2569_vm3 = vweird.f32 %v4113_v58 }
0x1225   : > { %vm2570_vm5 = vmor %vm2568_vm4, %vm2569_vm3 }
0x1226   : > { %v2564_v24 = vmul.f32 %v4113_v58, %v2563_v23  ;;  %v2561_v25 = vsel %vm2560_vm2, %v4111_v16, %v2557_v22  ;;  %v3924_v22 = vld [vmem:[#allocation11 + $0x38] sm:$0xff]  ;;  %v3923_v23 = vld [vmem:[#allocation11 + $0x30] sm:$0xff] }
0x1227   : > { %v2572_v31 = vmul.f32 %v2561_v25, %v4899_v14  ;;  %v3911_v14 = vld [vmem:[#allocation10 + $0xd0] sm:$0xff]  ;;  %3024 = vmatpush.bf16.msrb.mxu3 %v3924_v22 }
0x1228   : > { %v2565_v27 = vmul.f32 0.5, %v2564_v24  ;;  %2868 = vmatpush.bf16.msra.mxu2 %v3911_v14 }
0x1229   : > { %v2575_v36 = vmul.f32 %v2574_v30, %v2572_v31 }
0x122a   : > { %v2566_v28 = vsub.f32 1.5, %v2565_v27  ;;  %v3922_v27 = vld [vmem:[#allocation11 + $0x28] sm:$0xff] }
0x122b   : > { %v2578_v43 = vadd.f32 %v2577_v29, %v2575_v36  ;;  %3025 = vmatpush.bf16.msrb.mxu3 %v3923_v23 }
0x122c   : > { %v2567_v33 = vmul.f32 %v4113_v58, %v2566_v28  ;;  %2869 = vmatpush.bf16.msra.mxu2 %v3910_v34 }
0x122e   : > { %v2571_v35 = vsel %vm2570_vm5, %v4113_v58, %v2567_v33 }
0x122f   : > { %v2573_v15 = vmul.f32 %v2571_v35, %v4904_v17  ;;  %v3902_v17 = vld [vmem:[#allocation10 + $0x88] sm:$0xff]  ;;  %3026 = vmatpush.bf16.msrb.mxu3 %v3922_v27  ;;  %v3920_v35 = vld [vmem:[#allocation11 + $0x18] sm:$0xff] }
0x1230   : > { %2870 = vmatpush.bf16.msra.mxu2 %v3909_v51  ;;  %2855 = vmatpush.bf16.msra.mxu1 %v3902_v17 }
0x1231   : > { %v2576_v39 = vmul.f32 %v2574_v30, %v2573_v15  ;;  %v3921_v30 = vld [vmem:[#allocation11 + $0x20] sm:$0xff] }
0x1233   : > { %v2579_v60 = vadd.f32 %v2577_v29, %v2576_v39  ;;  %3027 = vmatpush.bf16.msrb.mxu3 %v3921_v30  ;;  %v3919_v39 = vld [vmem:[#allocation11 + $0x10] sm:$0xff] }
0x1234   : > { %2856 = vmatpush.bf16.msra.mxu1 %v3901_v52 }
0x1235   : > { %v2580_v37 = vpack.c.bf16 %v2579_v60, %v2578_v43 }
0x1237   : > { %2693 = vmatmul.bf16.vlgmr.msra.gmra.mxu3 %v2580_v37  ;;  %2707 = vmatmul.bf16.vlgmr.msra.gmra.mxu0 %v2580_v37  ;;  %v3918_v37 = vld [vmem:[#allocation11 + $0x8] sm:$0xff] }
0x1238   : > { %3028 = vmatpush.bf16.msrb.mxu3 %v3920_v35 }
0x123c   : > { %3029 = vmatpush.bf16.msrb.mxu3 %v3919_v39 }
0x1240   : > { %3030 = vmatpush.bf16.msrb.mxu3 %v3918_v37 }
0x12b4   : > { %v2708_v45 = vpop.f32.mrf.mxu0 }
0x12b5   : > { %v2709_v55 = vadd.f32 %v2708_v45, %v2602_v63 }
0x12b7   : > { %v2714_v47 = vmax.f32 %v2709_v55, 0.0 }
0x12ba   : > { %v2694_v49 = vpop.f32.mrf.mxu3 }
0x12bb   : > { %v2695_v61 = vadd.f32 %v2694_v49, %v2601_v56 }
0x12bc   : > { %v2710_v50 = vpop.f32.mrf.mxu0 }
0x12bd   : > { %v2711_v38 = vadd.f32 %v2710_v50, %v2602_v63  ;;  %v2713_v4 = vmax.f32 %v2695_v61, 0.0 }
0x12bf   : > { %v2716_v59 = vmax.f32 %v2711_v38, 0.0 }
0x12c1   : > { %v2718_v62 = vpack.c.bf16 %v2716_v59, %v2714_v47 }
0x12c2   : > { %v2696_v2 = vpop.f32.mrf.mxu3 }
0x12c3   : > { %v2697_v3 = vadd.f32 %v2696_v2, %v2601_v56  ;;  %2871 = vmatmul.bf16.vlgmr.msra.gmra.mxu2 %v2718_v62 }
0x12c5   : > { %v2715_v6 = vmax.f32 %v2697_v3, 0.0 }
0x12c7   : > { %v2717_v57 = vpack.c.bf16 %v2715_v6, %v2713_v4 }
0x12c9   : > { %2857 = vmatmul.bf16.vlgmr.msra.gmra.mxu1 %v2717_v57 }
0x1346   : > { %v2858_v8 = vpop.f32.mrf.mxu1  ;;  %v2872_v9 = vpop.f32.mrf.mxu2 }
0x1347   : > { %v2859_v10 = vadd.f32 %v2858_v8, %v2752_v7 }
0x1349   : > { %v2873_v11 = vadd.f32 %v2872_v9, %v2859_v10 }
0x134b   : > { %v2877_v53 = vadd.f32 %v2873_v11, %v2578_v43 }
0x134d   : > { %2879 = vadd.xlane.f32.xlu2 %v2877_v53 }
0x134e   : > { %v2860_v12 = vpop.f32.mrf.mxu1  ;;  %v2874_v5 = vpop.f32.mrf.mxu2 }
0x134f   : > { %v2861_v13 = vadd.f32 %v2860_v12, %v2752_v7 }
0x1351   : > { %v2875_v16 = vadd.f32 %v2874_v5, %v2861_v13 }
0x1353   : > { %v2878_v41 = vadd.f32 %v2875_v16, %v2579_v60 }
0x1355   : > { %2881 = vadd.xlane.f32.xlu2 %v2878_v41 }
0x13c0   : > { %v2880_v18 = vpop.xlane.xlu2 %2879 }
0x13c1   : > { %v2883_v42 = vmul.f32 %v2880_v18, %v4745_v32 }
0x13c3   : > { %v2885_v40 = vsub.f32 %v2877_v53, %v2883_v42 }
0x13c5   : > { %v2887_v26 = vmul.f32 %v2885_v40, %v2885_v40 }
0x13c7   : > { %2889 = vadd.xlane.f32.xlu2 %v2887_v26 }
0x13c8   : > { %v2882_v19 = vpop.xlane.xlu2 %2881 }
0x13c9   : > { %v2884_v20 = vmul.f32 %v2882_v19, %v4745_v32 }
0x13cb   : > { %v2886_v21 = vsub.f32 %v2878_v41, %v2884_v20 }
0x13cd   : > { %v2888_v58 = vmul.f32 %v2886_v21, %v2886_v21 }
0x13cf   : > { %2891 = vadd.xlane.f32.xlu0 %v2888_v58  ;;  %v4035_v58 = vld [vmem:[%s4971_s10] ss:$0 sm:$0xff] }
0x143a   : > { %v2890_v24 = vpop.xlane.xlu2 %2889 }
0x143b   : > { %v2893_v25 = vmul.f32 %v2890_v24, %v4745_v32 }
0x143d   : > { %v2895_v28 = vadd.f32 1e-05, %v2893_v25 }
0x143f   : > { %4114 = vrsqrt.f32 %v2895_v28  ;;  %vm2903_vm7 = vweird.f32 %v2895_v28 }
0x1442   : > { %v2892_v31 = vpop.xlane.xlu0 %2891 }
0x1443   : > { %v2894_v33 = vmul.f32 %v2892_v31, %v4745_v32  ;;  %v3917_v32 = vld [vmem:[#allocation11] sm:$0xff] }
0x1444   : > { %3031 = vmatpush.bf16.msrb.mxu3 %v3917_v32 }
0x1445   : > { %v4115_v29 = vpop.eup %4114  ;;  %v2896_v36 = vadd.f32 1e-05, %v2894_v33 }
0x1446   : > { %v2898_v15 = vmul.f32 %v4115_v29, %v2895_v28  ;;  %vm2904_vm6 = vweird.f32 %v4115_v29 }
0x1447   : > { %4116 = vrsqrt.f32 %v2896_v36  ;;  %vm2905_vm8 = vmor %vm2903_vm7, %vm2904_vm6  ;;  %vm2913_vm10 = vweird.f32 %v2896_v36 }
0x1448   : > { %v2899_v43 = vmul.f32 %v4115_v29, %v2898_v15  ;;  %4118 = vrcp.f32 %v4395_v44 }
0x144a   : > { %v2900_v60 = vmul.f32 0.5, %v2899_v43 }
0x144c   : > { %v2901_v0 = vsub.f32 1.5, %v2900_v60 }
0x144d   : > { %v4117_v14 = vpop.eup %4116 }
0x144e   : > { %v2902_v46 = vmul.f32 %v4115_v29, %v2901_v0  ;;  %v2908_v34 = vmul.f32 %v4117_v14, %v2896_v36  ;;  %v4119_v52 = vpop.eup %4118  ;;  %vm2914_vm9 = vweird.f32 %v4117_v14 }
0x144f   : > { %v2938_v50 = vmul.f32 8.0, %v4119_v52  ;;  %vm2915_vm11 = vmor %vm2913_vm10, %vm2914_vm9  ;;  %vm2942_vm12 = vweird.f32 %v4119_v52 }
0x1450   : > { %v2906_v51 = vsel %vm2905_vm8, %v4115_v29, %v2902_v46  ;;  %v2909_v17 = vmul.f32 %v4117_v14, %v2908_v34 }
0x1451   : > { %v2917_v45 = vmul.f32 %v2906_v51, %v2885_v40  ;;  %v2939_v61 = vsub.f32 1.0, %v2938_v50 }
0x1452   : > { %v2910_v63 = vmul.f32 0.5, %v2909_v17 }
0x1453   : > { %v2920_v49 = vmul.f32 %v2919_v48, %v2917_v45  ;;  %v2940_v6 = vmul.f32 %v4119_v52, %v2939_v61 }
0x1454   : > { %v2911_v55 = vsub.f32 1.5, %v2910_v63 }
0x1455   : > { %v2923_v56 = vadd.f32 %v2922_v54, %v2920_v49  ;;  %v2941_v9 = vadd.f32 %v4119_v52, %v2940_v6 }
0x1456   : > { %v2912_v38 = vmul.f32 %v4117_v14, %v2911_v55 }
0x1457   : > { %v2925_v47 = vrot.slane %v2923_v56, 4  ;;  %v2943_v12 = vsel %vm2942_vm12, %v4119_v52, %v2941_v9 }
0x1458   : > { %v2916_v59 = vsel %vm2915_vm11, %v4117_v14, %v2912_v38 }
0x1459   : > { %v2926_v62 = vadd.f32 %v2925_v47, %v2923_v56  ;;  %v2918_v2 = vmul.f32 %v2916_v59, %v2886_v21 }
0x145b   : > { %v2927_v3 = vrot.slane %v2926_v62, 2  ;;  %v2921_v4 = vmul.f32 %v2919_v48, %v2918_v2 }
0x145d   : > { %v2928_v1 = vadd.f32 %v2927_v3, %v2926_v62  ;;  %v2924_v57 = vadd.f32 %v2922_v54, %v2921_v4 }
0x145f   : > { %v2929_v7 = vrot.slane %v2928_v1, 1  ;;  %v2931_v8 = vrot.slane %v2924_v57, 4 }
0x1461   : > { %v2932_v10 = vadd.f32 %v2931_v8, %v2924_v57  ;;  %v2930_v53 = vadd.f32 %v2929_v7, %v2928_v1 }
0x1463   : > { %v2933_v11 = vrot.slane %v2932_v10, 2  ;;  %v2944_v16 = vmul.f32 %v2943_v12, %v2930_v53 }
0x1465   : > { %v2934_v13 = vadd.f32 %v2933_v11, %v2932_v10  ;;  %v2946_v42 = vpack.c.bf16 %v2944_v16, %v2944_v16 }
0x1467   : > { %v2935_v5 = vrot.slane %v2934_v13, 1  ;;  %v2970_v26 = vunpack.c.l.b16 %v2946_v42 }
0x1469   : > { %v2936_v41 = vadd.f32 %v2935_v5, %v2934_v13 }
0x146b   : > { %v2945_v18 = vmul.f32 %v2943_v12, %v2936_v41 }
0x146d   : > { %v2947_v40 = vpack.c.bf16 %v2945_v18, %v2945_v18 }
0x146f   : > { %v2971_v19 = vunpack.c.l.b16 %v2947_v40 }
0x1471   : > { %v2973_v20 = vsel %vm2972_vm13, %v2971_v19, %v2970_v26 }
0x1472   : > { %v2974_v21 = vpack.c.b16 %v2973_v20, %v2973_v20 }
0x1474   : > { %3032 = vmatmul.bf16.vlgmr.msrb.gmra.mxu3 %v2974_v21 }
0x14f7   : > { %v3033_v22 = vpop.f32.mrf.mxu3 }
0x14f8   : > { %v3034_v23 = vadd.f32 %v4035_v58, %v3033_v22 }
0x14fa   : > { %v3038_v24 = vrot.slane %v3034_v23, 1  ;;  %3040 = vst [vmem:[%s489_s30] sm:$0x1] %v3034_v23 }
0x14fc   : > { %3041 = vst [vmem:[%s489_s30 + $0x1] sm:$0x1] %v3038_v24 }
0x14fd   : > { %4327 = shalt.err (!%p4324_p9)
}
0x14fe   : > { %s4396_s5 = smov 16   ;;  %s4397_s21 = smov 1  }
0x14ff   : > { %3947 = dma.vmem_to_hbm [thread:$0]  (%p4547_p13), %s3055_s7, 32, %s3057_s9, %s3043_s24, %s4396_s5, %s4396_s5, %s4397_s21   ;;  %v3035_v25 = vpop.f32.mrf.mxu3 }
0x1500 PF: > { %s3071_s28 = sand.u32 1, %s4366_s17   ;;  %p4993_p10 = scmp.ge.s32.totalorder %s4378_s20, 2 }
0x1501   : > { %s3072_s29 = scalar_lea.sflag [#allocation4], %s3071_s28 }
0x1502   : > { %p3970_p11 = pnand %p4993_p10, %p4552_p4 }
0x1504   : > { %p3971_p0 = pneg %p3970_p11 }
0x1506   : > { %4361 = dma.done.wait (%p3971_p0), %s3072_s29, 32  }
0x1507   : > { %4363 = vsyncadd (%p3971_p0), %s3072_s29, 4294967264  ;;  %p27_p2 = scmp.ge.s32.totalorder %s4527_s23, 4   ;;  %s4994_s17 = smov %s4370_s18 }
0x1508   : > { %s4995_s18 = smov %s4374_s19  ;;  %s4996_s19 = smov %s4539_s27 }
0x1509   : > { %s4997_s20 = smov %s4527_s23  ;;  %29 = sbr.rel (!%p27_p2) target bundleno = 14 (0xe), region = 136 }
0x150e   :  { %3078 = vsyncpa [#allocation3], 1 }
0x150f   :  { %3080 = vsyncpa [#allocation3 + $0x1], 1 }
0x1510   :  { %3081 = vsyncpa [#allocation6], 1 }
0x1511   :  { %3082 = vsyncpa [#allocation9], 1 }
0x1512   :  { %3083 = vsyncpa [#allocation12], 1 }
0x1513   :  { %3084 = vsyncpa [#allocation4], 1 }
0x1514   :  { %3086 = vsyncpa [#allocation4 + $0x1], 1 }

</bundles_post_ra>
